<compile_context>
chip_gen: v7x
topology: tpu7x:2x2x1
jax: 0.10.0
libtpu: 0.0.40
codegen_flags: <defaults>
</compile_context>

<pallas_src>
import jax
import jax.numpy as jnp
from jax.experimental import pallas as pl
from jax.experimental.pallas import tpu as pltpu


# --------------------------------------------------------------------------- #
# Pallas kernels
# --------------------------------------------------------------------------- #
def _conv_bn_relu_kernel(p_ref, w_ref, b_ref, o_ref):
    # p_ref: (1, TM, K)   bf16  im2col patches (raw pixels for 1x1 convs)
    # w_ref: (1, K, CP)   bf16  BN-folded weights (CP padded to 128 lanes)
    # b_ref: (1, 1, CP)   f32   BN-folded bias
    # o_ref: (1, TM, CP)  bf16
    acc = jnp.dot(p_ref[0], w_ref[0], preferred_element_type=jnp.float32)
    y = jnp.maximum(acc + b_ref[0], 0.0)            # epilogue stays in f32 vregs
    o_ref[0] = y.astype(o_ref.dtype)


def _proj_residual_relu_kernel(c_ref, w_ref, b_ref, x_ref, o_ref):
    # c_ref: (TM, KP)  bf16  concatenated branch outputs (96 valid, padded to 128)
    # w_ref: (KP, CO)  bf16  projection weight * residual scale (scale folded)
    # b_ref: (1, CO)   f32   projection bias * residual scale
    # x_ref: (TM, CO)  f32   residual input
    # o_ref: (TM, CO)  f32
    acc = jnp.dot(c_ref[...], w_ref[...], preferred_element_type=jnp.float32)
    o_ref[...] = jnp.maximum(acc + b_ref[...] + x_ref[...], 0.0).astype(o_ref.dtype)


# --------------------------------------------------------------------------- #
# pallas_call wrappers
# --------------------------------------------------------------------------- #
def _conv_matmul(patches, w, b, tm):
    """relu(patches @ w + b) per group.  patches:[G,Mp,K] bf16, w:[G,K,CP] bf16."""
    g, m_pad, k = patches.shape
    cp = w.shape[-1]
    return pl.pallas_call(
        _conv_bn_relu_kernel,
        out_shape=jax.ShapeDtypeStruct((g, m_pad, cp), jnp.bfloat16),
        grid_spec=pltpu.PrefetchScalarGridSpec(
            num_scalar_prefetch=0,
            grid=(g, m_pad // tm),
            in_specs=[
                pl.BlockSpec((1, tm, k), lambda gi, mi: (gi, mi, 0)),
                pl.BlockSpec((1, k, cp), lambda gi, mi: (gi, 0, 0)),
                pl.BlockSpec((1, 1, cp), lambda gi, mi: (gi, 0, 0)),
            ],
            out_specs=pl.BlockSpec((1, tm, cp), lambda gi, mi: (gi, mi, 0)),
        ),
        compiler_params=pltpu.CompilerParams(
            dimension_semantics=("parallel", "parallel"),
            vmem_limit_bytes=32 * 1024 * 1024,
        ),
    )(patches, w, b)


def _proj_residual(c, w, b, x_res, tm):
    """relu(c @ w + b + x_res) — projection conv + scaled residual + final ReLU."""
    m_pad, kp = c.shape
    co = w.shape[-1]
    return pl.pallas_call(
        _proj_residual_relu_kernel,
        out_shape=jax.ShapeDtypeStruct((m_pad, co), jnp.float32),
        grid_spec=pltpu.PrefetchScalarGridSpec(
            num_scalar_prefetch=0,
            grid=(m_pad // tm,),
            in_specs=[
                pl.BlockSpec((tm, kp), lambda i: (i, 0)),
                pl.BlockSpec((kp, co), lambda i: (0, 0)),
                pl.BlockSpec((1, co), lambda i: (0, 0)),
                pl.BlockSpec((tm, co), lambda i: (i, 0)),
            ],
            out_specs=pl.BlockSpec((tm, co), lambda i: (i, 0)),
        ),
        compiler_params=pltpu.CompilerParams(
            dimension_semantics=("parallel",),
            vmem_limit_bytes=32 * 1024 * 1024,
        ),
    )(c, w, b, x_res)


# --------------------------------------------------------------------------- #
# JAX glue: im2col (only for the small 32-channel 3x3 convs), BN folding
# --------------------------------------------------------------------------- #
def _im2col_3x3_same(x_nhwc):
    n, h, w, c = x_nhwc.shape
    xp = jnp.pad(x_nhwc, ((0, 0), (1, 1), (1, 1), (0, 0)))
    cols = [xp[:, i:i + h, j:j + w, :] for i in range(3) for j in range(3)]
    return jnp.concatenate(cols, axis=-1).reshape(n * h * w, 9 * c)


def _fold_bn(w_mat, gamma, beta, mean, var, eps):
    # w_mat: [K, C_out] f32.  Fold BN scale into the weight, return bf16 weight.
    s = gamma / jnp.sqrt(var + eps)
    return (w_mat * s[None, :]).astype(jnp.bfloat16), (beta - mean * s).astype(jnp.float32)


def _pad_lanes(a, target):
    pad = target - a.shape[-1]
    if pad == 0:
        return a
    return jnp.pad(a, [(0, 0)] * (a.ndim - 1) + [(0, pad)])


@jax.jit
def block35_forward(x_nchw, params):
    eps = 1e-3
    n, c_in, h, w = x_nchw.shape          # c_in == 256 for Block35
    m = n * h * w

    # Largest M tile that still leaves >= 2 grid steps (megacore on v7x).
    tm = 128
    for cand in (1024, 512, 256):
        if m >= 2 * cand:
            tm = cand
            break
    m_pad = ((m + tm - 1) // tm) * tm

    x_nhwc = jnp.transpose(x_nchw, (0, 2, 3, 1))
    x_flat = x_nhwc.reshape(m, c_in)

    def pad_m(a):
        return jnp.pad(a, ((0, m_pad - a.shape[0]), (0, 0)))

    # ---- stage 1: three branch-opening 1x1 convs fused into one matmul ----- #
    w_cols, b_cols = [], []
    for name in ("b0", "b1a", "b2a"):
        p = params[name]
        w_mat = p["w"].reshape(p["w"].shape[0], c_in).T               # [256, 32]
        wf, bf = _fold_bn(w_mat, p["gamma"], p["beta"], p["mean"], p["var"], eps)
        w_cols.append(wf)
        b_cols.append(bf)
    w1 = _pad_lanes(jnp.concatenate(w_cols, axis=1), 128)             # [256, 128]
    b1 = _pad_lanes(jnp.concatenate(b_cols, axis=0), 128)             # [128]

    p1 = pad_m(x_flat.astype(jnp.bfloat16))[None]                     # [1, Mp, 256]
    y1 = _conv_matmul(p1, w1[None], b1.reshape(1, 1, 128), tm)[0, :m]  # [M, 128] bf16
    x0 = y1[:, 0:32]
    b1_pre = y1[:, 32:64]
    b2_pre = y1[:, 64:96]

    # ---- stage 2: branch1 3x3 + branch2 first 3x3 as one grouped call ------ #
    def fold_3x3(p):
        w_mat = jnp.transpose(p["w"], (2, 3, 1, 0)).reshape(9 * 32, 32)
        wf, bf = _fold_bn(w_mat, p["gamma"], p["beta"], p["mean"], p["var"], eps)
        return _pad_lanes(wf, 128), _pad_lanes(bf, 128)

    w_b1b, bias_b1b = fold_3x3(params["b1b"])
    w_b2b, bias_b2b = fold_3x3(params["b2b"])
    patches_b1 = pad_m(_im2col_3x3_same(b1_pre.reshape(n, h, w, 32)))
    patches_b2 = pad_m(_im2col_3x3_same(b2_pre.reshape(n, h, w, 32)))
    p2 = jnp.stack([patches_b1, patches_b2])                          # [2, Mp, 288]
    w2 = jnp.stack([w_b1b, w_b2b])                                    # [2, 288, 128]
    bb2 = jnp.stack([bias_b1b, bias_b2b]).reshape(2, 1, 128)
    y2 = _conv_matmul(p2, w2, bb2, tm)                                # [2, Mp, 128]
    x1 = y2[0, :m, 0:32]
    b2_mid = y2[1, :m, 0:32]

    # ---- stage 3: branch2 second 3x3 --------------------------------------- #
    w_b2c, bias_b2c = fold_3x3(params["b2c"])
    p3 = pad_m(_im2col_3x3_same(b2_mid.reshape(n, h, w, 32)))[None]
    y3 = _conv_matmul(p3, w_b2c[None], bias_b2c.reshape(1, 1, 128), tm)
    x2 = y3[0, :m, 0:32]

    # ---- stage 4: 1x1 projection + bias + residual scale/add + ReLU -------- #
    cat = jnp.concatenate([x0, x1, x2], axis=1)                       # [M, 96] bf16
    cat = pad_m(_pad_lanes(cat, 128))                                 # [Mp, 128]
    wp = (params["proj_w"].reshape(256, 96).T * params["scale"]).astype(jnp.bfloat16)
    wp = jnp.pad(wp, ((0, 128 - 96), (0, 0)))                         # [128, 256]
    bp = (params["proj_b"] * params["scale"]).reshape(1, 256).astype(jnp.float32)
    x_res = pad_m(x_flat.astype(jnp.float32))                         # [Mp, 256]
    out_flat = _proj_residual(cat, wp, bp, x_res, tm)[:m]             # [M, 256] f32

    out = out_flat.reshape(n, h, w, 256)
    return jnp.transpose(out, (0, 3, 1, 2))


# --------------------------------------------------------------------------- #
# Pure-JAX reference (PyTorch semantics, f32)
# --------------------------------------------------------------------------- #
def _conv_ref(x, w, b=None, padding=0):
    y = jax.lax.conv_general_dilated(
        x, w, (1, 1), [(padding, padding), (padding, padding)],
        dimension_numbers=("NCHW", "OIHW", "NCHW"))
    if b is not None:
        y = y + b.reshape(1, -1, 1, 1)
    return y


def _basic_conv_ref(x, p, padding, eps=1e-3):
    y = _conv_ref(x, p["w"], padding=padding)
    s = p["gamma"] / jnp.sqrt(p["var"] + eps)
    y = y * s.reshape(1, -1, 1, 1) + (p["beta"] - p["mean"] * s).reshape(1, -1, 1, 1)
    return jnp.maximum(y, 0.0)


def block35_reference(x, params):
    x0 = _basic_conv_ref(x, params["b0"], 0)
    x1 = _basic_conv_ref(_basic_conv_ref(x, params["b1a"], 0), params["b1b"], 1)
    x2 = _basic_conv_ref(
        _basic_conv_ref(_basic_conv_ref(x, params["b2a"], 0), params["b2b"], 1),
        params["b2c"], 1)
    cat = jnp.concatenate([x0, x1, x2], axis=1)
    out = _conv_ref(cat, params["proj_w"], params["proj_b"])
    out = out * params["scale"] + x
    return jnp.maximum(out, 0.0)


def _init_basic(key, c_in, c_out, ksize):
    kw_, kg, kb, km, kv = jax.random.split(key, 5)
    return {
        "w": jax.random.normal(kw_, (c_out, c_in, ksize, ksize), jnp.float32) * 0.1,
        "gamma": 1.0 + 0.1 * jax.random.normal(kg, (c_out,), jnp.float32),
        "beta": 0.1 * jax.random.normal(kb, (c_out,), jnp.float32),
        "mean": 0.1 * jax.random.normal(km, (c_out,), jnp.float32),
        "var": 1.0 + 0.1 * jnp.abs(jax.random.normal(kv, (c_out,), jnp.float32)),
    }


# --------------------------------------------------------------------------- #
# main
# --------------------------------------------------------------------------- #
if __name__ == "__main__":
    key = jax.random.PRNGKey(0)
    keys = jax.random.split(key, 9)

    # Block35 structurally requires 256 input channels; batch/spatial kept small.
    N, C, H, W = 2, 256, 16, 16
    x = jax.random.normal(keys[0], (N, C, H, W), jnp.float32)

    params = {
        "b0":  _init_basic(keys[1], 256, 32, 1),
        "b1a": _init_basic(keys[2], 256, 32, 1),
        "b1b": _init_basic(keys[3], 32, 32, 3),
        "b2a": _init_basic(keys[4], 256, 32, 1),
        "b2b": _init_basic(keys[5], 32, 32, 3),
        "b2c": _init_basic(keys[6], 32, 32, 3),
        "proj_w": jax.random.normal(keys[7], (256, 96, 1, 1), jnp.float32) * 0.1,
        "proj_b": jax.random.normal(keys[8], (256,), jnp.float32) * 0.1,
        "scale": jnp.float32(0.17),
    }

    out = jax.block_until_ready(block35_forward(x, params))
    ref = jax.block_until_ready(block35_reference(x, params))

    assert out.shape == (N, 256, H, W)
    err = float(jnp.max(jnp.abs(out - ref)))
    tol = 0.02 * float(jnp.max(jnp.abs(ref))) + 0.05   # bf16 operands, f32 accum
    assert err <= tol, f"max abs err {err} > tol {tol}"

    print("KERNEL_OK")
</pallas_src>

<mosaic_0001>
module attributes {stable_mosaic.version = 11 : i64} {
  func.func @_conv_bn_relu_kernel(%arg0: i32, %arg1: i32, %arg2: memref<1x256x256xbf16, #tpu.memory_space<vmem>>, %arg3: memref<1x256x128xbf16, #tpu.memory_space<vmem>>, %arg4: memref<1x1x128xf32, #tpu.memory_space<vmem>>, %arg5: memref<1x256x128xbf16, #tpu.memory_space<vmem>>) attributes {dimension_semantics = [#tpu.dimension_semantics<parallel>, #tpu.dimension_semantics<parallel>], iteration_bounds = array<i64: 1, 2>, scalar_prefetch = 0 : i64, scratch_operands = 0 : i64, tpu.core_type = #tpu.core_type<tc>, window_params = [{transform_indices = @transform_0, window_bounds = array<i64: 1, 256, 256>}, {transform_indices = @transform_1, window_bounds = array<i64: 1, 256, 128>}, {transform_indices = @transform_2, window_bounds = array<i64: 1, 1, 128>}, {transform_indices = @transform_3, window_bounds = array<i64: 1, 256, 128>}]} {
    %c0 = arith.constant 0 : index
    %c0_0 = arith.constant 0 : index
    %c0_1 = arith.constant 0 : index
    %0 = vector.load %arg2[%c0, %c0_0, %c0_1] : memref<1x256x256xbf16, #tpu.memory_space<vmem>>, vector<1x256x256xbf16>
    %1 = vector.shape_cast %0 : vector<1x256x256xbf16> to vector<256x256xbf16>
    %c0_2 = arith.constant 0 : index
    %c0_3 = arith.constant 0 : index
    %c0_4 = arith.constant 0 : index
    %2 = vector.load %arg3[%c0_2, %c0_3, %c0_4] : memref<1x256x128xbf16, #tpu.memory_space<vmem>>, vector<1x256x128xbf16>
    %3 = vector.shape_cast %2 : vector<1x256x128xbf16> to vector<256x128xbf16>
    %cst = arith.constant dense<0.000000e+00> : vector<256x128xf32>
    %4 = tpu.matmul %1, %3, %cst {dimension_numbers = #tpu.dot_dimension_numbers<[1], [0], [0], [1], [0, 0, 1, 1], [], []>} : vector<256x256xbf16>, vector<256x128xbf16>, vector<256x128xf32> -> vector<256x128xf32>
    %c0_5 = arith.constant 0 : index
    %c0_6 = arith.constant 0 : index
    %c0_7 = arith.constant 0 : index
    %5 = vector.load %arg4[%c0_5, %c0_6, %c0_7] : memref<1x1x128xf32, #tpu.memory_space<vmem>>, vector<1x1x128xf32>
    %6 = vector.shape_cast %5 : vector<1x1x128xf32> to vector<1x128xf32>
    %7 = vector.broadcast %6 : vector<1x128xf32> to vector<256x128xf32>
    %8 = arith.addf %4, %7 : vector<256x128xf32>
    %cst_8 = arith.constant 0.000000e+00 : f32
    %9 = vector.broadcast %cst_8 : f32 to vector<256x128xf32>
    %10 = arith.maximumf %8, %9 : vector<256x128xf32>
    %11 = arith.truncf %10 : vector<256x128xf32> to vector<256x128xbf16>
    %c0_9 = arith.constant 0 : index
    %c0_10 = arith.constant 0 : index
    %c0_11 = arith.constant 0 : index
    %12 = vector.load %arg5[%c0_9, %c0_10, %c0_11] : memref<1x256x128xbf16, #tpu.memory_space<vmem>>, vector<1x256x128xbf16>
    %13 = vector.shape_cast %12 : vector<1x256x128xbf16> to vector<256x128xbf16>
    %14 = vector.shape_cast %11 : vector<256x128xbf16> to vector<1x256x128xbf16>
    tpu.vector_store %arg5[%c0_9, %c0_10, %c0_11], %14 {strides = array<i32>} : memref<1x256x128xbf16, #tpu.memory_space<vmem>>, vector<1x256x128xbf16>,
    return
  }
  func.func @transform_0(%arg0: i32, %arg1: i32) -> (i32, i32, i32) {
    %c0_i32 = arith.constant 0 : i32
    %c0_i32_0 = arith.constant 0 : i32
    return %arg0, %arg1, %c0_i32 : i32, i32, i32
  }
  func.func @transform_1(%arg0: i32, %arg1: i32) -> (i32, i32, i32) {
    %c0_i32 = arith.constant 0 : i32
    %c0_i32_0 = arith.constant 0 : i32
    %c0_i32_1 = arith.constant 0 : i32
    return %arg0, %c0_i32, %c0_i32_0 : i32, i32, i32
  }
  func.func @transform_2(%arg0: i32, %arg1: i32) -> (i32, i32, i32) {
    %c0_i32 = arith.constant 0 : i32
    %c0_i32_0 = arith.constant 0 : i32
    %c0_i32_1 = arith.constant 0 : i32
    return %arg0, %c0_i32, %c0_i32_0 : i32, i32, i32
  }
  func.func @transform_3(%arg0: i32, %arg1: i32) -> (i32, i32, i32) {
    %c0_i32 = arith.constant 0 : i32
    %c0_i32_0 = arith.constant 0 : i32
    return %arg0, %arg1, %c0_i32 : i32, i32, i32
  }
}

module attributes {stable_mosaic.version = 11 : i64} {
  func.func @_conv_bn_relu_kernel(%arg0: i32, %arg1: i32, %arg2: memref<1x256x288xbf16, #tpu.memory_space<vmem>>, %arg3: memref<1x288x128xbf16, #tpu.memory_space<vmem>>, %arg4: memref<1x1x128xf32, #tpu.memory_space<vmem>>, %arg5: memref<1x256x128xbf16, #tpu.memory_space<vmem>>) attributes {dimension_semantics = [#tpu.dimension_semantics<parallel>, #tpu.dimension_semantics<parallel>], iteration_bounds = array<i64: 2, 2>, scalar_prefetch = 0 : i64, scratch_operands = 0 : i64, tpu.core_type = #tpu.core_type<tc>, window_params = [{transform_indices = @transform_0, window_bounds = array<i64: 1, 256, 288>}, {transform_indices = @transform_1, window_bounds = array<i64: 1, 288, 128>}, {transform_indices = @transform_2, window_bounds = array<i64: 1, 1, 128>}, {transform_indices = @transform_3, window_bounds = array<i64: 1, 256, 128>}]} {
    %c0 = arith.constant 0 : index
    %c0_0 = arith.constant 0 : index
    %c0_1 = arith.constant 0 : index
    %0 = vector.load %arg2[%c0, %c0_0, %c0_1] : memref<1x256x288xbf16, #tpu.memory_space<vmem>>, vector<1x256x288xbf16>
    %1 = vector.shape_cast %0 : vector<1x256x288xbf16> to vector<256x288xbf16>
    %c0_2 = arith.constant 0 : index
    %c0_3 = arith.constant 0 : index
    %c0_4 = arith.constant 0 : index
    %2 = vector.load %arg3[%c0_2, %c0_3, %c0_4] : memref<1x288x128xbf16, #tpu.memory_space<vmem>>, vector<1x288x128xbf16>
    %3 = vector.shape_cast %2 : vector<1x288x128xbf16> to vector<288x128xbf16>
    %cst = arith.constant dense<0.000000e+00> : vector<256x128xf32>
    %4 = tpu.matmul %1, %3, %cst {dimension_numbers = #tpu.dot_dimension_numbers<[1], [0], [0], [1], [0, 0, 1, 1], [], []>} : vector<256x288xbf16>, vector<288x128xbf16>, vector<256x128xf32> -> vector<256x128xf32>
    %c0_5 = arith.constant 0 : index
    %c0_6 = arith.constant 0 : index
    %c0_7 = arith.constant 0 : index
    %5 = vector.load %arg4[%c0_5, %c0_6, %c0_7] : memref<1x1x128xf32, #tpu.memory_space<vmem>>, vector<1x1x128xf32>
    %6 = vector.shape_cast %5 : vector<1x1x128xf32> to vector<1x128xf32>
    %7 = vector.broadcast %6 : vector<1x128xf32> to vector<256x128xf32>
    %8 = arith.addf %4, %7 : vector<256x128xf32>
    %cst_8 = arith.constant 0.000000e+00 : f32
    %9 = vector.broadcast %cst_8 : f32 to vector<256x128xf32>
    %10 = arith.maximumf %8, %9 : vector<256x128xf32>
    %11 = arith.truncf %10 : vector<256x128xf32> to vector<256x128xbf16>
    %c0_9 = arith.constant 0 : index
    %c0_10 = arith.constant 0 : index
    %c0_11 = arith.constant 0 : index
    %12 = vector.load %arg5[%c0_9, %c0_10, %c0_11] : memref<1x256x128xbf16, #tpu.memory_space<vmem>>, vector<1x256x128xbf16>
    %13 = vector.shape_cast %12 : vector<1x256x128xbf16> to vector<256x128xbf16>
    %14 = vector.shape_cast %11 : vector<256x128xbf16> to vector<1x256x128xbf16>
    tpu.vector_store %arg5[%c0_9, %c0_10, %c0_11], %14 {strides = array<i32>} : memref<1x256x128xbf16, #tpu.memory_space<vmem>>, vector<1x256x128xbf16>,
    return
  }
  func.func @transform_0(%arg0: i32, %arg1: i32) -> (i32, i32, i32) {
    %c0_i32 = arith.constant 0 : i32
    %c0_i32_0 = arith.constant 0 : i32
    return %arg0, %arg1, %c0_i32 : i32, i32, i32
  }
  func.func @transform_1(%arg0: i32, %arg1: i32) -> (i32, i32, i32) {
    %c0_i32 = arith.constant 0 : i32
    %c0_i32_0 = arith.constant 0 : i32
    %c0_i32_1 = arith.constant 0 : i32
    return %arg0, %c0_i32, %c0_i32_0 : i32, i32, i32
  }
  func.func @transform_2(%arg0: i32, %arg1: i32) -> (i32, i32, i32) {
    %c0_i32 = arith.constant 0 : i32
    %c0_i32_0 = arith.constant 0 : i32
    %c0_i32_1 = arith.constant 0 : i32
    return %arg0, %c0_i32, %c0_i32_0 : i32, i32, i32
  }
  func.func @transform_3(%arg0: i32, %arg1: i32) -> (i32, i32, i32) {
    %c0_i32 = arith.constant 0 : i32
    %c0_i32_0 = arith.constant 0 : i32
    return %arg0, %arg1, %c0_i32 : i32, i32, i32
  }
}

module attributes {stable_mosaic.version = 11 : i64} {
  func.func @_conv_bn_relu_kernel(%arg0: i32, %arg1: i32, %arg2: memref<1x256x288xbf16, #tpu.memory_space<vmem>>, %arg3: memref<1x288x128xbf16, #tpu.memory_space<vmem>>, %arg4: memref<1x1x128xf32, #tpu.memory_space<vmem>>, %arg5: memref<1x256x128xbf16, #tpu.memory_space<vmem>>) attributes {dimension_semantics = [#tpu.dimension_semantics<parallel>, #tpu.dimension_semantics<parallel>], iteration_bounds = array<i64: 1, 2>, scalar_prefetch = 0 : i64, scratch_operands = 0 : i64, tpu.core_type = #tpu.core_type<tc>, window_params = [{transform_indices = @transform_0, window_bounds = array<i64: 1, 256, 288>}, {transform_indices = @transform_1, window_bounds = array<i64: 1, 288, 128>}, {transform_indices = @transform_2, window_bounds = array<i64: 1, 1, 128>}, {transform_indices = @transform_3, window_bounds = array<i64: 1, 256, 128>}]} {
    %c0 = arith.constant 0 : index
    %c0_0 = arith.constant 0 : index
    %c0_1 = arith.constant 0 : index
    %0 = vector.load %arg2[%c0, %c0_0, %c0_1] : memref<1x256x288xbf16, #tpu.memory_space<vmem>>, vector<1x256x288xbf16>
    %1 = vector.shape_cast %0 : vector<1x256x288xbf16> to vector<256x288xbf16>
    %c0_2 = arith.constant 0 : index
    %c0_3 = arith.constant 0 : index
    %c0_4 = arith.constant 0 : index
    %2 = vector.load %arg3[%c0_2, %c0_3, %c0_4] : memref<1x288x128xbf16, #tpu.memory_space<vmem>>, vector<1x288x128xbf16>
    %3 = vector.shape_cast %2 : vector<1x288x128xbf16> to vector<288x128xbf16>
    %cst = arith.constant dense<0.000000e+00> : vector<256x128xf32>
    %4 = tpu.matmul %1, %3, %cst {dimension_numbers = #tpu.dot_dimension_numbers<[1], [0], [0], [1], [0, 0, 1, 1], [], []>} : vector<256x288xbf16>, vector<288x128xbf16>, vector<256x128xf32> -> vector<256x128xf32>
    %c0_5 = arith.constant 0 : index
    %c0_6 = arith.constant 0 : index
    %c0_7 = arith.constant 0 : index
    %5 = vector.load %arg4[%c0_5, %c0_6, %c0_7] : memref<1x1x128xf32, #tpu.memory_space<vmem>>, vector<1x1x128xf32>
    %6 = vector.shape_cast %5 : vector<1x1x128xf32> to vector<1x128xf32>
    %7 = vector.broadcast %6 : vector<1x128xf32> to vector<256x128xf32>
    %8 = arith.addf %4, %7 : vector<256x128xf32>
    %cst_8 = arith.constant 0.000000e+00 : f32
    %9 = vector.broadcast %cst_8 : f32 to vector<256x128xf32>
    %10 = arith.maximumf %8, %9 : vector<256x128xf32>
    %11 = arith.truncf %10 : vector<256x128xf32> to vector<256x128xbf16>
    %c0_9 = arith.constant 0 : index
    %c0_10 = arith.constant 0 : index
    %c0_11 = arith.constant 0 : index
    %12 = vector.load %arg5[%c0_9, %c0_10, %c0_11] : memref<1x256x128xbf16, #tpu.memory_space<vmem>>, vector<1x256x128xbf16>
    %13 = vector.shape_cast %12 : vector<1x256x128xbf16> to vector<256x128xbf16>
    %14 = vector.shape_cast %11 : vector<256x128xbf16> to vector<1x256x128xbf16>
    tpu.vector_store %arg5[%c0_9, %c0_10, %c0_11], %14 {strides = array<i32>} : memref<1x256x128xbf16, #tpu.memory_space<vmem>>, vector<1x256x128xbf16>,
    return
  }
  func.func @transform_0(%arg0: i32, %arg1: i32) -> (i32, i32, i32) {
    %c0_i32 = arith.constant 0 : i32
    %c0_i32_0 = arith.constant 0 : i32
    return %arg0, %arg1, %c0_i32 : i32, i32, i32
  }
  func.func @transform_1(%arg0: i32, %arg1: i32) -> (i32, i32, i32) {
    %c0_i32 = arith.constant 0 : i32
    %c0_i32_0 = arith.constant 0 : i32
    %c0_i32_1 = arith.constant 0 : i32
    return %arg0, %c0_i32, %c0_i32_0 : i32, i32, i32
  }
  func.func @transform_2(%arg0: i32, %arg1: i32) -> (i32, i32, i32) {
    %c0_i32 = arith.constant 0 : i32
    %c0_i32_0 = arith.constant 0 : i32
    %c0_i32_1 = arith.constant 0 : i32
    return %arg0, %c0_i32, %c0_i32_0 : i32, i32, i32
  }
  func.func @transform_3(%arg0: i32, %arg1: i32) -> (i32, i32, i32) {
    %c0_i32 = arith.constant 0 : i32
    %c0_i32_0 = arith.constant 0 : i32
    return %arg0, %arg1, %c0_i32 : i32, i32, i32
  }
}

module attributes {stable_mosaic.version = 11 : i64} {
  func.func @_proj_residual_relu_kernel(%arg0: i32, %arg1: memref<256x128xbf16, #tpu.memory_space<vmem>>, %arg2: memref<128x256xbf16, #tpu.memory_space<vmem>>, %arg3: memref<1x256xf32, #tpu.memory_space<vmem>>, %arg4: memref<256x256xf32, #tpu.memory_space<vmem>>, %arg5: memref<256x256xf32, #tpu.memory_space<vmem>>) attributes {dimension_semantics = [#tpu.dimension_semantics<parallel>], iteration_bounds = array<i64: 2>, scalar_prefetch = 0 : i64, scratch_operands = 0 : i64, tpu.core_type = #tpu.core_type<tc>, window_params = [{transform_indices = @transform_0, window_bounds = array<i64: 256, 128>}, {pipeline_mode = #tpu.pipeline_mode<synchronous>, transform_indices = @transform_1, window_bounds = array<i64: 128, 256>}, {pipeline_mode = #tpu.pipeline_mode<synchronous>, transform_indices = @transform_2, window_bounds = array<i64: 1, 256>}, {transform_indices = @transform_3, window_bounds = array<i64: 256, 256>}, {transform_indices = @transform_4, window_bounds = array<i64: 256, 256>}]} {
    %c0 = arith.constant 0 : index
    %c0_0 = arith.constant 0 : index
    %0 = vector.load %arg1[%c0, %c0_0] : memref<256x128xbf16, #tpu.memory_space<vmem>>, vector<256x128xbf16>
    %c0_1 = arith.constant 0 : index
    %c0_2 = arith.constant 0 : index
    %1 = vector.load %arg2[%c0_1, %c0_2] : memref<128x256xbf16, #tpu.memory_space<vmem>>, vector<128x256xbf16>
    %cst = arith.constant dense<0.000000e+00> : vector<256x256xf32>
    %2 = tpu.matmul %0, %1, %cst {dimension_numbers = #tpu.dot_dimension_numbers<[1], [0], [0], [1], [0, 0, 1, 1], [], []>} : vector<256x128xbf16>, vector<128x256xbf16>, vector<256x256xf32> -> vector<256x256xf32>
    %c0_3 = arith.constant 0 : index
    %c0_4 = arith.constant 0 : index
    %3 = vector.load %arg3[%c0_3, %c0_4] : memref<1x256xf32, #tpu.memory_space<vmem>>, vector<1x256xf32>
    %4 = vector.broadcast %3 : vector<1x256xf32> to vector<256x256xf32>
    %5 = arith.addf %2, %4 : vector<256x256xf32>
    %c0_5 = arith.constant 0 : index
    %c0_6 = arith.constant 0 : index
    %6 = vector.load %arg4[%c0_5, %c0_6] : memref<256x256xf32, #tpu.memory_space<vmem>>, vector<256x256xf32>
    %7 = arith.addf %5, %6 : vector<256x256xf32>
    %cst_7 = arith.constant 0.000000e+00 : f32
    %8 = vector.broadcast %cst_7 : f32 to vector<256x256xf32>
    %9 = arith.maximumf %7, %8 : vector<256x256xf32>
    %c0_8 = arith.constant 0 : index
    %c0_9 = arith.constant 0 : index
    %10 = vector.load %arg5[%c0_8, %c0_9] : memref<256x256xf32, #tpu.memory_space<vmem>>, vector<256x256xf32>
    tpu.vector_store %arg5[%c0_8, %c0_9], %9 {strides = array<i32>} : memref<256x256xf32, #tpu.memory_space<vmem>>, vector<256x256xf32>,
    return
  }
  func.func @transform_0(%arg0: i32) -> (i32, i32) {
    %c0_i32 = arith.constant 0 : i32
    %c0_i32_0 = arith.constant 0 : i32
    return %arg0, %c0_i32 : i32, i32
  }
  func.func @transform_1(%arg0: i32) -> (i32, i32) {
    %c0_i32 = arith.constant 0 : i32
    %c0_i32_0 = arith.constant 0 : i32
    %c0_i32_1 = arith.constant 0 : i32
    return %c0_i32, %c0_i32_0 : i32, i32
  }
  func.func @transform_2(%arg0: i32) -> (i32, i32) {
    %c0_i32 = arith.constant 0 : i32
    %c0_i32_0 = arith.constant 0 : i32
    %c0_i32_1 = arith.constant 0 : i32
    return %c0_i32, %c0_i32_0 : i32, i32
  }
  func.func @transform_3(%arg0: i32) -> (i32, i32) {
    %c0_i32 = arith.constant 0 : i32
    %c0_i32_0 = arith.constant 0 : i32
    return %arg0, %c0_i32 : i32, i32
  }
  func.func @transform_4(%arg0: i32) -> (i32, i32) {
    %c0_i32 = arith.constant 0 : i32
    %c0_i32_0 = arith.constant 0 : i32
    return %arg0, %c0_i32 : i32, i32
  }
}

</mosaic_0001>

<bundles_post_ra>
// kernel: block35_forward.4
= control target key start
LH: loop header
LB: loop body
LE: loop exit
PB: predicated region body
PF: predicated region fallthrough
CT: control target
= control target key end

     0   :  { %s1528_s12 = smov 0   ;;  %s1530_s13 = smov 0   ;;  %s1702_s0 = inlined_call_operand.vmem [shape: bf16[1,512,256], index: 0, kind: input, shape index: {}]   ;;  %s1703_s1 = inlined_call_operand.vmem [shape: bf16[1,256,128], index: 1, kind: input, shape index: {}]   ;;  %s1704_s2 = inlined_call_operand.vmem [shape: f32[1,1,128], index: 2, kind: input, shape index: {}]   ;;  %s1705_s3 = inlined_call_operand.vmem [shape: bf16[1,512,128], index: 3, kind: output, shape index: {}]  }
   0x1   :  { %s1532_s14 = smov 0  }
   0x2 LB: > { %s22_s15 = sadd.s32 1, %s1502_s13  ;;  %p1051_p0 = scmp.ge.s32.totalorder %s1506_s14, 1  ;;  %s1506_s14 = sphi %s1532_s14, %s13_s14   ;;  %s1502_s13 = sphi %s1530_s13, %s1707_s13   ;;  %s1498_s12 = sphi %s1528_s12, %s1706_s12  }
   0x3   : > { %p23_p1 = scmp.ge.s32.totalorder %s22_s15, 2  ;;  %p177_p2 = scmp.lt.s32.totalorder %s1506_s14, 3 }
   0x5   : > { %s1709_s15 = smov (%p23_p1, %s22_s15), 0  ;;  %p178_p3 = pnand %p1051_p0, %p177_p2 }
   0x6   : > { %v1420_v0 = vld [vmem:[%s1703_s1 + $0x40] sm:$0xff] (!%p178_p3)   ;;  %s1052_s18 = sshll.u32 (!%p178_p3), %s1498_s12, 5  ;;  %v1422_v2 = vld [vmem:[%s1703_s1 + $0x48] sm:$0xff] (!%p178_p3)   ;;  %v1424_v4 = vld [vmem:[%s1703_s1 + $0x50] sm:$0xff] (!%p178_p3)  }
   0x7   : > { %181 = sbr.rel (%p178_p3) target bundleno = 320 (0x140), region = 32  ;;  %v1421_v1 = vld [vmem:[%s1703_s1] sm:$0xff] (!%p178_p3)   ;;  %1268 = vmatprep.subr.bf16.mxu0 (!%p178_p3), %v1420_v0  ;;  %1380 = vmatprep.subr.bf16.mxu1 (!%p178_p3), %v1420_v0  ;;  %v1423_v3 = vld [vmem:[%s1703_s1 + $0x8] sm:$0xff] (!%p178_p3)   ;;  %p221_p4 = scmp.lt.s32.totalorder (!%p178_p3), %s1052_s18, 63  ;;  %v1425_v5 = vld [vmem:[%s1703_s1 + $0x10] sm:$0xff] (!%p178_p3)  }
   0x8   : > { %1269 = vmatpush3.bf16.msra.mxu0 (!%p178_p3), %v1421_v1  ;;  %1388 = vmatpush3.bf16.msra.mxu1 (!%p178_p3), %v1421_v1  ;;  %v1426_v6 = vld [vmem:[%s1703_s1 + $0x58] sm:$0xff] (!%p178_p3)   ;;  %v1428_v8 = vld [vmem:[%s1703_s1 + $0x60] sm:$0xff] (!%p178_p3)   ;;  %v1430_v10 = vld [vmem:[%s1703_s1 + $0x68] sm:$0xff] (!%p178_p3)  }
   0x9   : > { %1270 = vmatprep.subr.bf16.mxu0 (!%p178_p3), %v1422_v2  ;;  %1381 = vmatprep.subr.bf16.mxu1 (!%p178_p3), %v1422_v2  ;;  %v1427_v7 = vld [vmem:[%s1703_s1 + $0x18] sm:$0xff] (!%p178_p3)   ;;  %v1429_v9 = vld [vmem:[%s1703_s1 + $0x20] sm:$0xff] (!%p178_p3)   ;;  %v1431_v13 = vld [vmem:[%s1703_s1 + $0x28] sm:$0xff] (!%p178_p3)  }
   0xa   : > { %v1432_v14 = vld [vmem:[%s1703_s1 + $0x70] sm:$0xff] (!%p178_p3)   ;;  %v1434_v16 = vld [vmem:[%s1703_s1 + $0x78] sm:$0xff] (!%p178_p3)   ;;  %v1637_v50 = vld [vmem:[%s1704_s2] ss:$0 sm:$0xff] (!%p178_p3) }
   0xb   : > { %v1433_v15 = vld [vmem:[%s1703_s1 + $0x30] sm:$0xff] (!%p178_p3)   ;;  %v1435_v17 = vld [vmem:[%s1703_s1 + $0x38] sm:$0xff] (!%p178_p3)  }
   0xc   : > { %1271 = vmatpush3.bf16.msra.mxu0 (!%p178_p3), %v1423_v3  ;;  %1389 = vmatpush3.bf16.msra.mxu1 (!%p178_p3), %v1423_v3 }
   0xd   : > { %1272 = vmatprep.subr.bf16.mxu0 (!%p178_p3), %v1424_v4  ;;  %1382 = vmatprep.subr.bf16.mxu1 (!%p178_p3), %v1424_v4 }
   0xe   : > { %s1711_s18 = smov (!%p221_p4, %s1052_s18), 63 }
   0xf   : > { %s1140_s6 = sshll.u32 %s1711_s18, 3  ;;  %s1056_s5 = sshll.u32 %s1711_s18, 2 }
  0x10   : > { %1273 = vmatpush3.bf16.msra.mxu0 %v1425_v5  ;;  %1390 = vmatpush3.bf16.msra.mxu1 %v1425_v5  ;;  %s1579_s11 = scalar_lea.vmem %s1702_s0, %s1140_s6  ;;  %s1647_s8 = scalar_lea.vmem %s1705_s3, %s1056_s5 }
  0x11   : > { %1274 = vmatprep.subr.bf16.mxu0 %v1426_v6  ;;  %1383 = vmatprep.subr.bf16.mxu1 %v1426_v6  ;;  %v1438_v11 = vld [vmem:[%s1579_s11 + $0x4] ss:$8 sps:$4 sm:$0xff]   ;;  %v1436_v18 = vld [vmem:[%s1579_s11] ss:$8 sps:$4 sm:$0xff]   ;;  %v1442_v20 = vld [vmem:[%s1579_s11 + $0x14] ss:$8 sps:$4 sm:$0xff]  }
  0x12   : > { %v1441_v12 = vld [vmem:[%s1579_s11 + $0x84] ss:$8 sps:$4 sm:$0xff]   ;;  %607 = vmatprep.mubr.bf16.mxu0 %v1438_v11  ;;  %v1439_v19 = vld [vmem:[%s1579_s11 + $0x80] ss:$8 sps:$4 sm:$0xff]   ;;  %v1444_v21 = vld [vmem:[%s1579_s11 + $0x94] ss:$8 sps:$4 sm:$0xff]  }
  0x13   : > { %671 = vmatprep.mubr.bf16.mxu1 %v1441_v12  ;;  %v1446_v22 = vld [vmem:[%s1579_s11 + $0x10] ss:$8 sps:$4 sm:$0xff]   ;;  %v1448_v24 = vld [vmem:[%s1579_s11 + $0x24] ss:$8 sps:$4 sm:$0xff]   ;;  %v1452_v26 = vld [vmem:[%s1579_s11 + $0x20] ss:$8 sps:$4 sm:$0xff]  }
  0x14   : > { %1275 = vmatpush3.bf16.msra.mxu0 %v1427_v7  ;;  %1391 = vmatpush3.bf16.msra.mxu1 %v1427_v7  ;;  %v1447_v23 = vld [vmem:[%s1579_s11 + $0x90] ss:$8 sps:$4 sm:$0xff]   ;;  %v1450_v25 = vld [vmem:[%s1579_s11 + $0xa4] ss:$8 sps:$4 sm:$0xff]   ;;  %v1453_v27 = vld [vmem:[%s1579_s11 + $0xa0] ss:$8 sps:$4 sm:$0xff]  }
  0x15   : > { %1276 = vmatprep.subr.bf16.mxu0 %v1428_v8  ;;  %1384 = vmatprep.subr.bf16.mxu1 %v1428_v8  ;;  %v1454_v28 = vld [vmem:[%s1579_s11 + $0x34] ss:$8 sps:$4 sm:$0xff]   ;;  %v1458_v30 = vld [vmem:[%s1579_s11 + $0x30] ss:$8 sps:$4 sm:$0xff]   ;;  %v1460_v32 = vld [vmem:[%s1579_s11 + $0x44] ss:$8 sps:$4 sm:$0xff]  }
  0x16   : > { %v1456_v29 = vld [vmem:[%s1579_s11 + $0xb4] ss:$8 sps:$4 sm:$0xff]   ;;  %v1459_v31 = vld [vmem:[%s1579_s11 + $0xb0] ss:$8 sps:$4 sm:$0xff]   ;;  %v1462_v33 = vld [vmem:[%s1579_s11 + $0xc4] ss:$8 sps:$4 sm:$0xff]  }
  0x17   : > { %v1464_v34 = vld [vmem:[%s1579_s11 + $0x40] ss:$8 sps:$4 sm:$0xff]   ;;  %v1466_v36 = vld [vmem:[%s1579_s11 + $0x54] ss:$8 sps:$4 sm:$0xff]   ;;  %v1470_v38 = vld [vmem:[%s1579_s11 + $0x50] ss:$8 sps:$4 sm:$0xff]  }
  0x18   : > { %1277 = vmatpush3.bf16.msra.mxu0 %v1429_v9  ;;  %1392 = vmatpush3.bf16.msra.mxu1 %v1429_v9  ;;  %v1465_v35 = vld [vmem:[%s1579_s11 + $0xc0] ss:$8 sps:$4 sm:$0xff]   ;;  %v1468_v37 = vld [vmem:[%s1579_s11 + $0xd4] ss:$8 sps:$4 sm:$0xff]   ;;  %v1471_v39 = vld [vmem:[%s1579_s11 + $0xd0] ss:$8 sps:$4 sm:$0xff]  }
  0x19   : > { %1278 = vmatprep.subr.bf16.mxu0 %v1430_v10  ;;  %1385 = vmatprep.subr.bf16.mxu1 %v1430_v10  ;;  %v1472_v40 = vld [vmem:[%s1579_s11 + $0x64] ss:$8 sps:$4 sm:$0xff]   ;;  %v1476_v42 = vld [vmem:[%s1579_s11 + $0x60] ss:$8 sps:$4 sm:$0xff]   ;;  %v1478_v44 = vld [vmem:[%s1579_s11 + $0x74] ss:$8 sps:$4 sm:$0xff]  }
  0x1a   : > { %v1474_v41 = vld [vmem:[%s1579_s11 + $0xe4] ss:$8 sps:$4 sm:$0xff]   ;;  %v1477_v43 = vld [vmem:[%s1579_s11 + $0xe0] ss:$8 sps:$4 sm:$0xff]   ;;  %v1480_v45 = vld [vmem:[%s1579_s11 + $0xf4] ss:$8 sps:$4 sm:$0xff]  }
  0x1b   : > { %v1482_v46 = vld [vmem:[%s1579_s11 + $0x70] ss:$8 sps:$4 sm:$0xff]  }
  0x1c   : > { %1279 = vmatpush3.bf16.msra.mxu0 %v1431_v13  ;;  %1393 = vmatpush3.bf16.msra.mxu1 %v1431_v13  ;;  %v1483_v47 = vld [vmem:[%s1579_s11 + $0xf0] ss:$8 sps:$4 sm:$0xff]  }
  0x1d   : > { %1280 = vmatprep.subr.bf16.mxu0 %v1432_v14  ;;  %1386 = vmatprep.subr.bf16.mxu1 %v1432_v14 }
  0x20   : > { %1281 = vmatpush3.bf16.msra.mxu0 %v1433_v15  ;;  %1394 = vmatpush3.bf16.msra.mxu1 %v1433_v15 }
  0x21   : > { %1282 = vmatprep.subr.bf16.mxu0 %v1434_v16  ;;  %1387 = vmatprep.subr.bf16.mxu1 %v1434_v16 }
  0x24   : > { %1283 = vmatpush3.bf16.msra.mxu0 %v1435_v17  ;;  %1395 = vmatpush3.bf16.msra.mxu1 %v1435_v17 }
  0x27   : > { %608 = vmatmul.mubr.bf16.vlgmr.msra.gmra.mrb[0].mxu0 %v1436_v18  ;;  %672 = vmatmul.mubr.bf16.vlgmr.msra.gmra.mrb[0].mxu1 %v1439_v19 }
  0x28   : > { %615 = vmatprep.mubr.bf16.mxu0 %v1442_v20  ;;  %679 = vmatprep.mubr.bf16.mxu1 %v1444_v21 }
  0x2f   : > { %616 = vmatmul.mubr.bf16.gmra.mrb[4].mxu0 %v1446_v22  ;;  %680 = vmatmul.mubr.bf16.gmra.mrb[4].mxu1 %v1447_v23 }
  0x30   : > { %623 = vmatprep.mubr.bf16.mxu0 %v1448_v24  ;;  %687 = vmatprep.mubr.bf16.mxu1 %v1450_v25 }
  0x37   : > { %624 = vmatmul.mubr.bf16.gmra.mrb[8].mxu0 %v1452_v26  ;;  %688 = vmatmul.mubr.bf16.gmra.mrb[8].mxu1 %v1453_v27 }
  0x38   : > { %631 = vmatprep.mubr.bf16.mxu0 %v1454_v28  ;;  %695 = vmatprep.mubr.bf16.mxu1 %v1456_v29 }
  0x3f   : > { %632 = vmatmul.mubr.bf16.gmra.mrb[12].mxu0 %v1458_v30  ;;  %696 = vmatmul.mubr.bf16.gmra.mrb[12].mxu1 %v1459_v31 }
  0x40   : > { %639 = vmatprep.mubr.bf16.mxu0 %v1460_v32  ;;  %703 = vmatprep.mubr.bf16.mxu1 %v1462_v33 }
  0x47   : > { %640 = vmatmul.mubr.bf16.gmra.mrb[16].mxu0 %v1464_v34  ;;  %704 = vmatmul.mubr.bf16.gmra.mrb[16].mxu1 %v1465_v35 }
  0x48   : > { %647 = vmatprep.mubr.bf16.mxu0 %v1466_v36  ;;  %711 = vmatprep.mubr.bf16.mxu1 %v1468_v37 }
  0x4f   : > { %648 = vmatmul.mubr.bf16.gmra.mrb[20].mxu0 %v1470_v38  ;;  %712 = vmatmul.mubr.bf16.gmra.mrb[20].mxu1 %v1471_v39 }
  0x50   : > { %655 = vmatprep.mubr.bf16.mxu0 %v1472_v40  ;;  %719 = vmatprep.mubr.bf16.mxu1 %v1474_v41 }
  0x57   : > { %656 = vmatmul.mubr.bf16.gmra.mrb[24].mxu0 %v1476_v42  ;;  %720 = vmatmul.mubr.bf16.gmra.mrb[24].mxu1 %v1477_v43 }
  0x58   : > { %663 = vmatprep.mubr.bf16.mxu0 %v1478_v44  ;;  %727 = vmatprep.mubr.bf16.mxu1 %v1480_v45 }
  0x5f   : > { %664 = vmatmul.mubr.bf16.gmra.mrb[28].mxu0 %v1482_v46  ;;  %728 = vmatmul.mubr.bf16.gmra.mrb[28].mxu1 %v1483_v47 }
  0xfa   : > { %v1284_v48 = vpop.f32.mrb[0].mxu0  ;;  %v1332_v49 = vpop.f32.mrb[0].mxu1 }
  0xfb   : > { %v1285_v51 = vpop.f32.mrb[1].mxu0  ;;  %v1333_v52 = vpop.f32.mrb[1].mxu1 }
  0xfc   : > { %v1286_v53 = vadd.f32 %v1285_v51, %v1284_v48  ;;  %v1334_v54 = vadd.f32 %v1333_v52, %v1332_v49  ;;  %v1287_v55 = vpop.f32.mrb[2].mxu0  ;;  %v1335_v56 = vpop.f32.mrb[2].mxu1 }
  0xfd   : > { %v1288_v57 = vpop.f32.mrb[3].mxu0  ;;  %v1336_v58 = vpop.f32.mrb[3].mxu1 }
  0xfe   : > { %v610_v59 = vadd.f32 %v1286_v53, %v1637_v50  ;;  %v674_v60 = vadd.f32 %v1334_v54, %v1637_v50  ;;  %v1289_v61 = vadd.f32 %v1288_v57, %v1287_v55  ;;  %v1337_v62 = vadd.f32 %v1336_v58, %v1335_v56 }
 0x100   : > { %v613_v63 = vadd.f32 %v1289_v61, %v1637_v50  ;;  %v677_v0 = vadd.f32 %v1337_v62, %v1637_v50  ;;  %v736_v1 = vmax.f32 %v610_v59, 0.0  ;;  %v752_v2 = vmax.f32 %v674_v60, 0.0 }
 0x102   : > { %v737_v3 = vmax.f32 %v613_v63, 0.0  ;;  %v753_v4 = vmax.f32 %v677_v0, 0.0  ;;  %v1290_v5 = vpop.f32.mrb[4].mxu0  ;;  %v1338_v6 = vpop.f32.mrb[4].mxu1 }
 0x103   : > { %v1291_v7 = vpop.f32.mrb[5].mxu0  ;;  %v1339_v8 = vpop.f32.mrb[5].mxu1 }
 0x104   : > { %v1176_v9 = vpack.c.bf16 %v737_v3, %v736_v1  ;;  %v1216_v10 = vpack.c.bf16 %v753_v4, %v752_v2  ;;  %v1292_v11 = vadd.f32 %v1291_v7, %v1290_v5  ;;  %v1340_v12 = vadd.f32 %v1339_v8, %v1338_v6  ;;  %v1293_v13 = vpop.f32.mrb[6].mxu0  ;;  %v1341_v14 = vpop.f32.mrb[6].mxu1 }
 0x105   : > { %v1294_v15 = vpop.f32.mrb[7].mxu0  ;;  %v1342_v16 = vpop.f32.mrb[7].mxu1 }
 0x106   : > { %1177 = vst [vmem:[%s1647_s8] sm:$0xff] %v1176_v9   ;;  %1260 = vst [vmem:[%s1647_s8 + $0x40] sm:$0xff] %v1216_v10   ;;  %v618_v17 = vadd.f32 %v1292_v11, %v1637_v50  ;;  %v682_v18 = vadd.f32 %v1340_v12, %v1637_v50  ;;  %v1295_v19 = vadd.f32 %v1294_v15, %v1293_v13 }
 0x107   : > { %v1343_v20 = vadd.f32 %v1342_v16, %v1341_v14 }
 0x108   : > { %v621_v21 = vadd.f32 %v1295_v19, %v1637_v50  ;;  %v738_v23 = vmax.f32 %v618_v17, 0.0  ;;  %v754_v24 = vmax.f32 %v682_v18, 0.0 }
 0x109   : > { %v685_v22 = vadd.f32 %v1343_v20, %v1637_v50 }
 0x10a   : > { %v739_v25 = vmax.f32 %v621_v21, 0.0  ;;  %v1296_v27 = vpop.f32.mrb[8].mxu0  ;;  %v1344_v28 = vpop.f32.mrb[8].mxu1 }
 0x10b   : > { %v755_v26 = vmax.f32 %v685_v22, 0.0  ;;  %v1297_v29 = vpop.f32.mrb[9].mxu0  ;;  %v1345_v30 = vpop.f32.mrb[9].mxu1 }
 0x10c   : > { %v1181_v31 = vpack.c.bf16 %v739_v25, %v738_v23  ;;  %v1298_v33 = vadd.f32 %v1297_v29, %v1296_v27  ;;  %v1346_v34 = vadd.f32 %v1345_v30, %v1344_v28  ;;  %v1299_v35 = vpop.f32.mrb[10].mxu0  ;;  %v1347_v36 = vpop.f32.mrb[10].mxu1 }
 0x10d   : > { %v1221_v32 = vpack.c.bf16 %v755_v26, %v754_v24  ;;  %v1300_v37 = vpop.f32.mrb[11].mxu0  ;;  %v1348_v38 = vpop.f32.mrb[11].mxu1 }
 0x10e   : > { %1253 = vst [vmem:[%s1647_s8 + $0x8] sm:$0xff] %v1181_v31   ;;  %v626_v39 = vadd.f32 %v1298_v33, %v1637_v50  ;;  %v690_v40 = vadd.f32 %v1346_v34, %v1637_v50  ;;  %v1301_v41 = vadd.f32 %v1300_v37, %v1299_v35  ;;  %v1349_v42 = vadd.f32 %v1348_v38, %v1347_v36 }
 0x10f   : > { %1261 = vst [vmem:[%s1647_s8 + $0x48] sm:$0xff] %v1221_v32  }
 0x110   : > { %v629_v43 = vadd.f32 %v1301_v41, %v1637_v50  ;;  %v693_v44 = vadd.f32 %v1349_v42, %v1637_v50  ;;  %v740_v45 = vmax.f32 %v626_v39, 0.0  ;;  %v756_v46 = vmax.f32 %v690_v40, 0.0 }
 0x112   : > { %v741_v47 = vmax.f32 %v629_v43, 0.0  ;;  %v757_v48 = vmax.f32 %v693_v44, 0.0  ;;  %v1302_v49 = vpop.f32.mrb[12].mxu0  ;;  %v1350_v51 = vpop.f32.mrb[12].mxu1 }
 0x113   : > { %v1303_v52 = vpop.f32.mrb[13].mxu0  ;;  %v1351_v53 = vpop.f32.mrb[13].mxu1 }
 0x114   : > { %v1186_v54 = vpack.c.bf16 %v741_v47, %v740_v45  ;;  %v1226_v55 = vpack.c.bf16 %v757_v48, %v756_v46  ;;  %v1304_v56 = vadd.f32 %v1303_v52, %v1302_v49  ;;  %v1352_v57 = vadd.f32 %v1351_v53, %v1350_v51  ;;  %v1305_v58 = vpop.f32.mrb[14].mxu0  ;;  %v1353_v59 = vpop.f32.mrb[14].mxu1 }
 0x115   : > { %v1306_v60 = vpop.f32.mrb[15].mxu0  ;;  %v1354_v61 = vpop.f32.mrb[15].mxu1 }
 0x116   : > { %1254 = vst [vmem:[%s1647_s8 + $0x10] sm:$0xff] %v1186_v54   ;;  %1262 = vst [vmem:[%s1647_s8 + $0x50] sm:$0xff] %v1226_v55   ;;  %v634_v62 = vadd.f32 %v1304_v56, %v1637_v50  ;;  %v698_v63 = vadd.f32 %v1352_v57, %v1637_v50  ;;  %v1307_v0 = vadd.f32 %v1306_v60, %v1305_v58 }
 0x117   : > { %v1355_v1 = vadd.f32 %v1354_v61, %v1353_v59 }
 0x118   : > { %v637_v2 = vadd.f32 %v1307_v0, %v1637_v50  ;;  %v742_v4 = vmax.f32 %v634_v62, 0.0  ;;  %v758_v5 = vmax.f32 %v698_v63, 0.0 }
 0x119   : > { %v701_v3 = vadd.f32 %v1355_v1, %v1637_v50 }
 0x11a   : > { %v743_v6 = vmax.f32 %v637_v2, 0.0  ;;  %v1308_v8 = vpop.f32.mrb[16].mxu0  ;;  %v1356_v9 = vpop.f32.mrb[16].mxu1 }
 0x11b   : > { %v759_v7 = vmax.f32 %v701_v3, 0.0  ;;  %v1309_v10 = vpop.f32.mrb[17].mxu0  ;;  %v1357_v11 = vpop.f32.mrb[17].mxu1 }
 0x11c   : > { %v1191_v12 = vpack.c.bf16 %v743_v6, %v742_v4  ;;  %v1310_v14 = vadd.f32 %v1309_v10, %v1308_v8  ;;  %v1358_v15 = vadd.f32 %v1357_v11, %v1356_v9  ;;  %v1311_v16 = vpop.f32.mrb[18].mxu0  ;;  %v1359_v17 = vpop.f32.mrb[18].mxu1 }
 0x11d   : > { %v1231_v13 = vpack.c.bf16 %v759_v7, %v758_v5  ;;  %v1312_v18 = vpop.f32.mrb[19].mxu0  ;;  %v1360_v19 = vpop.f32.mrb[19].mxu1 }
 0x11e   : > { %1255 = vst [vmem:[%s1647_s8 + $0x18] sm:$0xff] %v1191_v12   ;;  %v642_v20 = vadd.f32 %v1310_v14, %v1637_v50  ;;  %v706_v21 = vadd.f32 %v1358_v15, %v1637_v50  ;;  %v1313_v22 = vadd.f32 %v1312_v18, %v1311_v16  ;;  %v1361_v23 = vadd.f32 %v1360_v19, %v1359_v17 }
 0x11f   : > { %1263 = vst [vmem:[%s1647_s8 + $0x58] sm:$0xff] %v1231_v13  }
 0x120   : > { %v645_v24 = vadd.f32 %v1313_v22, %v1637_v50  ;;  %v709_v25 = vadd.f32 %v1361_v23, %v1637_v50  ;;  %v744_v26 = vmax.f32 %v642_v20, 0.0  ;;  %v760_v27 = vmax.f32 %v706_v21, 0.0 }
 0x122   : > { %v745_v28 = vmax.f32 %v645_v24, 0.0  ;;  %v761_v29 = vmax.f32 %v709_v25, 0.0  ;;  %v1314_v30 = vpop.f32.mrb[20].mxu0  ;;  %v1362_v31 = vpop.f32.mrb[20].mxu1 }
 0x123   : > { %v1315_v32 = vpop.f32.mrb[21].mxu0  ;;  %v1363_v33 = vpop.f32.mrb[21].mxu1 }
 0x124   : > { %v1196_v34 = vpack.c.bf16 %v745_v28, %v744_v26  ;;  %v1236_v35 = vpack.c.bf16 %v761_v29, %v760_v27  ;;  %v1316_v36 = vadd.f32 %v1315_v32, %v1314_v30  ;;  %v1364_v37 = vadd.f32 %v1363_v33, %v1362_v31  ;;  %v1317_v38 = vpop.f32.mrb[22].mxu0  ;;  %v1365_v39 = vpop.f32.mrb[22].mxu1 }
 0x125   : > { %v1318_v40 = vpop.f32.mrb[23].mxu0  ;;  %v1366_v41 = vpop.f32.mrb[23].mxu1 }
 0x126   : > { %1256 = vst [vmem:[%s1647_s8 + $0x20] sm:$0xff] %v1196_v34   ;;  %1264 = vst [vmem:[%s1647_s8 + $0x60] sm:$0xff] %v1236_v35   ;;  %v650_v42 = vadd.f32 %v1316_v36, %v1637_v50  ;;  %v714_v43 = vadd.f32 %v1364_v37, %v1637_v50  ;;  %v1319_v44 = vadd.f32 %v1318_v40, %v1317_v38 }
 0x127   : > { %v1367_v45 = vadd.f32 %v1366_v41, %v1365_v39 }
 0x128   : > { %v653_v46 = vadd.f32 %v1319_v44, %v1637_v50  ;;  %v746_v48 = vmax.f32 %v650_v42, 0.0  ;;  %v762_v49 = vmax.f32 %v714_v43, 0.0 }
 0x129   : > { %v717_v47 = vadd.f32 %v1367_v45, %v1637_v50 }
 0x12a   : > { %v747_v51 = vmax.f32 %v653_v46, 0.0  ;;  %v1320_v53 = vpop.f32.mrb[24].mxu0  ;;  %v1368_v54 = vpop.f32.mrb[24].mxu1 }
 0x12b   : > { %v763_v52 = vmax.f32 %v717_v47, 0.0  ;;  %v1321_v55 = vpop.f32.mrb[25].mxu0  ;;  %v1369_v56 = vpop.f32.mrb[25].mxu1 }
 0x12c   : > { %v1201_v57 = vpack.c.bf16 %v747_v51, %v746_v48  ;;  %v1322_v59 = vadd.f32 %v1321_v55, %v1320_v53  ;;  %v1370_v60 = vadd.f32 %v1369_v56, %v1368_v54  ;;  %v1323_v61 = vpop.f32.mrb[26].mxu0  ;;  %v1371_v62 = vpop.f32.mrb[26].mxu1 }
 0x12d   : > { %v1241_v58 = vpack.c.bf16 %v763_v52, %v762_v49  ;;  %v1324_v63 = vpop.f32.mrb[27].mxu0  ;;  %v1372_v0 = vpop.f32.mrb[27].mxu1 }
 0x12e   : > { %1257 = vst [vmem:[%s1647_s8 + $0x28] sm:$0xff] %v1201_v57   ;;  %v658_v1 = vadd.f32 %v1322_v59, %v1637_v50  ;;  %v722_v2 = vadd.f32 %v1370_v60, %v1637_v50  ;;  %v1325_v3 = vadd.f32 %v1324_v63, %v1323_v61  ;;  %v1373_v4 = vadd.f32 %v1372_v0, %v1371_v62 }
 0x12f   : > { %1265 = vst [vmem:[%s1647_s8 + $0x68] sm:$0xff] %v1241_v58  }
 0x130   : > { %v661_v5 = vadd.f32 %v1325_v3, %v1637_v50  ;;  %v725_v6 = vadd.f32 %v1373_v4, %v1637_v50  ;;  %v748_v7 = vmax.f32 %v658_v1, 0.0  ;;  %v764_v8 = vmax.f32 %v722_v2, 0.0 }
 0x132   : > { %v749_v9 = vmax.f32 %v661_v5, 0.0  ;;  %v765_v10 = vmax.f32 %v725_v6, 0.0  ;;  %v1326_v11 = vpop.f32.mrb[28].mxu0  ;;  %v1374_v12 = vpop.f32.mrb[28].mxu1 }
 0x133   : > { %v1327_v13 = vpop.f32.mrb[29].mxu0  ;;  %v1375_v14 = vpop.f32.mrb[29].mxu1 }
 0x134   : > { %v1206_v15 = vpack.c.bf16 %v749_v9, %v748_v7  ;;  %v1246_v16 = vpack.c.bf16 %v765_v10, %v764_v8  ;;  %v1328_v17 = vadd.f32 %v1327_v13, %v1326_v11  ;;  %v1376_v18 = vadd.f32 %v1375_v14, %v1374_v12  ;;  %v1329_v19 = vpop.f32.mrb[30].mxu0  ;;  %v1377_v20 = vpop.f32.mrb[30].mxu1 }
 0x135   : > { %v1330_v21 = vpop.f32.mrb[31].mxu0  ;;  %v1378_v22 = vpop.f32.mrb[31].mxu1 }
 0x136   : > { %1258 = vst [vmem:[%s1647_s8 + $0x30] sm:$0xff] %v1206_v15   ;;  %1266 = vst [vmem:[%s1647_s8 + $0x70] sm:$0xff] %v1246_v16   ;;  %v666_v23 = vadd.f32 %v1328_v17, %v1637_v50  ;;  %v730_v24 = vadd.f32 %v1376_v18, %v1637_v50  ;;  %v1331_v25 = vadd.f32 %v1330_v21, %v1329_v19 }
 0x137   : > { %v1379_v26 = vadd.f32 %v1378_v22, %v1377_v20 }
 0x138   : > { %v669_v27 = vadd.f32 %v1331_v25, %v1637_v50  ;;  %v750_v29 = vmax.f32 %v666_v23, 0.0  ;;  %v766_v30 = vmax.f32 %v730_v24, 0.0 }
 0x139   : > { %v733_v28 = vadd.f32 %v1379_v26, %v1637_v50 }
 0x13a   : > { %v751_v31 = vmax.f32 %v669_v27, 0.0 }
 0x13b   : > { %v767_v32 = vmax.f32 %v733_v28, 0.0 }
 0x13c   : > { %v1211_v33 = vpack.c.bf16 %v751_v31, %v750_v29 }
 0x13d   : > { %v1251_v34 = vpack.c.bf16 %v767_v32, %v766_v30 }
 0x13e   : > { %1259 = vst [vmem:[%s1647_s8 + $0x38] sm:$0xff] %v1211_v33  }
 0x13f   : > { %1267 = vst [vmem:[%s1647_s8 + $0x78] sm:$0xff] %v1251_v34  }
 0x140 PF: > { %s13_s14 = sadd.s32 1, %s1506_s14   ;;  %s1706_s12 = smov %s1502_s13 }
 0x141   : > { %p10_p5 = scmp.ge.s32.totalorder %s13_s14, 4   ;;  %s1707_s13 = smov %s1709_s15 }
 0x143   :  { %12 = sbr.rel (!%p10_p5) target bundleno = 2 (0x2), region = 68 }

// kernel: block35_forward.5
= control target key start
LH: loop header
LB: loop body
LE: loop exit
PB: predicated region body
PF: predicated region fallthrough
CT: control target
= control target key end

     0   :  { %s2002_s12 = smov 0   ;;  %s2004_s13 = smov 0   ;;  %s2237_s0 = inlined_call_operand.vmem [shape: bf16[2,512,288], index: 0, kind: input, shape index: {}]   ;;  %s2238_s1 = inlined_call_operand.vmem [shape: bf16[2,288,128], index: 1, kind: input, shape index: {}]   ;;  %s2239_s2 = inlined_call_operand.vmem [shape: f32[2,1,128], index: 2, kind: input, shape index: {}]   ;;  %s2240_s3 = inlined_call_operand.vmem [shape: bf16[2,512,128], index: 3, kind: output, shape index: {}]  }
   0x1   :  { %s2006_s14 = smov 0   ;;  %s2008_s15 = smov 0  }
   0x2   :  { %s2010_s16 = smov 0  }
   0x3 LB: > { %s22_s17 = sadd.s32 1, %s1972_s14  ;;  %s25_s18 = sadd.s32 1, %s1976_s15  ;;  %s1980_s16 = sphi %s2010_s16, %s13_s16   ;;  %s1976_s15 = sphi %s2008_s15, %s2244_s15   ;;  %s1972_s14 = sphi %s2006_s14, %s2243_s14   ;;  %s1968_s13 = sphi %s2004_s13, %s2242_s13   ;;  %s1964_s12 = sphi %s2002_s12, %s2241_s12  }
   0x4   : > { %p23_p0 = scmp.ge.s32.totalorder %s22_s17, 2  ;;  %p1384_p1 = scmp.ge.s32.totalorder %s1980_s16, 1 }
   0x5   : > { %p177_p2 = scmp.lt.s32.totalorder %s1980_s16, 5 }
   0x6   : > { %s2246_s17 = smov (%p23_p0, %s22_s17), 0  ;;  %s2248_s18 = smov (!%p23_p0, %s25_s18), %s1976_s15 }
   0x7   : > { %p178_p3 = pnand %p1384_p1, %p177_p2  ;;  %p27_p4 = scmp.ge.s32.totalorder %s2248_s18, 2 }
   0x8   : > { %p219_p5 = scmp.lt.s32.totalorder (!%p178_p3), %s1968_s13, 1  ;;  %s1385_s19 = sshll.u32 (!%p178_p3), %s1964_s12, 5  ;;  %vm703_vm0 = vcmask (!%p178_p3), 261120  }
   0x9   : > { %s2250_s18 = smov (%p27_p4, %s2248_s18), 0  ;;  %181 = sbr.rel (%p178_p3) target bundleno = 367 (0x16f), region = 32 }
   0xa   : > { %p221_p6 = scmp.lt.s32.totalorder (!%p178_p3), %s1385_s19, 63 }
  0x10   : > { %s2252_s13 = smov (!%p219_p5, %s1968_s13), 1  ;;  %s2254_s19 = smov (!%p221_p6, %s1385_s19), 63 }
  0x11   : > { %s1819_s20 = smul.u32 144, %s2252_s13  ;;  %s236_s6 = scalar_lea.vmem %s2239_s2, %s2252_s13 }
  0x12   : > { %s1818_s24 = smul.u32 192, %s2252_s13  ;;  %s1389_s7 = sshll.u32 %s2252_s13, 6 }
  0x13   : > { %s2038_s23 = scalar_lea.vmem %s2238_s1, %s1819_s20  ;;  %s1817_s25 = smul.u32 3, %s2254_s19 }
  0x14   : > { %v1860_v0 = vld [vmem:[%s2038_s23 + $0x40] sm:$0xff]   ;;  %v1862_v2 = vld [vmem:[%s2038_s23 + $0x48] sm:$0xff]   ;;  %v1864_v4 = vld [vmem:[%s2038_s23 + $0x50] sm:$0xff]   ;;  %s243_s8 = sadd.s32 %s1389_s7, %s2254_s19 }
  0x15   : > { %v1861_v1 = vld [vmem:[%s2038_s23] sm:$0xff]   ;;  %1635 = vmatprep.subr.bf16.mxu0 %v1860_v0  ;;  %1801 = vmatprep.subr.bf16.mxu1 %v1860_v0  ;;  %v1863_v3 = vld [vmem:[%s2038_s23 + $0x8] sm:$0xff]   ;;  %v1865_v5 = vld [vmem:[%s2038_s23 + $0x10] sm:$0xff]   ;;  %s225_s26 = sadd.s32 %s1818_s24, %s1817_s25  ;;  %s1390_s9 = sshll.u32 %s243_s8, 2 }
  0x16   : > { %1636 = vmatpush3.bf16.msra.mxu0 %v1861_v1  ;;  %1809 = vmatpush3.bf16.msra.mxu1 %v1861_v1  ;;  %v1866_v6 = vld [vmem:[%s2038_s23 + $0x58] sm:$0xff]   ;;  %s1386_s27 = sshll.u32 %s225_s26, 2  ;;  %v1868_v8 = vld [vmem:[%s2038_s23 + $0x60] sm:$0xff]   ;;  %v1870_v10 = vld [vmem:[%s2038_s23 + $0x68] sm:$0xff]   ;;  %s2162_s12 = scalar_lea.vmem %s2240_s3, %s1390_s9 }
  0x17   : > { %1637 = vmatprep.subr.bf16.mxu0 %v1862_v2  ;;  %1802 = vmatprep.subr.bf16.mxu1 %v1862_v2  ;;  %v1867_v7 = vld [vmem:[%s2038_s23 + $0x18] sm:$0xff]   ;;  %s2056_s30 = scalar_lea.vmem %s2237_s0, %s1386_s27  ;;  %v1869_v9 = vld [vmem:[%s2038_s23 + $0x20] sm:$0xff]   ;;  %v1871_v13 = vld [vmem:[%s2038_s23 + $0x28] sm:$0xff]  }
  0x18   : > { %v1878_v11 = vld [vmem:[%s2056_s30 + $0x4] ss:$12 sps:$4 sm:$0xff]   ;;  %v1874_v16 = vld [vmem:[%s2038_s23 + $0x78] sm:$0xff]   ;;  %v1876_v19 = vld [vmem:[%s2056_s30] ss:$12 sps:$4 sm:$0xff]  }
  0x19   : > { %v1881_v12 = vld [vmem:[%s2056_s30 + $0x124] ss:$12 sps:$4 sm:$0xff]   ;;  %784 = vmatprep.mubr.bf16.mxu0 %v1878_v11  ;;  %v1875_v17 = vld [vmem:[%s2038_s23 + $0x38] sm:$0xff]   ;;  %v1879_v20 = vld [vmem:[%s2056_s30 + $0x120] ss:$12 sps:$4 sm:$0xff]  }
  0x1a   : > { %1638 = vmatpush3.bf16.msra.mxu0 %v1863_v3  ;;  %1810 = vmatpush3.bf16.msra.mxu1 %v1863_v3  ;;  %v1872_v14 = vld [vmem:[%s2038_s23 + $0x70] sm:$0xff]   ;;  %v1882_v18 = vld [vmem:[%s2038_s23 + $0x80] sm:$0xff]   ;;  %v1883_v21 = vld [vmem:[%s2056_s30 + $0x1c] ss:$12 sps:$4 sm:$0xff]  }
  0x1b   : > { %1639 = vmatprep.subr.bf16.mxu0 %v1864_v4  ;;  %1803 = vmatprep.subr.bf16.mxu1 %v1864_v4  ;;  %v1873_v15 = vld [vmem:[%s2038_s23 + $0x30] sm:$0xff]   ;;  %v1885_v22 = vld [vmem:[%s2056_s30 + $0x13c] ss:$12 sps:$4 sm:$0xff]   ;;  %v1887_v24 = vld [vmem:[%s2056_s30 + $0x18] ss:$12 sps:$4 sm:$0xff]  }
  0x1c   : > { %880 = vmatprep.mubr.bf16.mxu1 %v1881_v12  ;;  %v1895_v23 = vld [vmem:[%s2038_s23 + $0x88] sm:$0xff]   ;;  %v1888_v25 = vld [vmem:[%s2056_s30 + $0x138] ss:$12 sps:$4 sm:$0xff]   ;;  %v1889_v26 = vld [vmem:[%s2056_s30 + $0x34] ss:$12 sps:$4 sm:$0xff]  }
  0x1d   : > { %v1891_v27 = vld [vmem:[%s2056_s30 + $0x154] ss:$12 sps:$4 sm:$0xff]   ;;  %v1893_v28 = vld [vmem:[%s2056_s30 + $0x30] ss:$12 sps:$4 sm:$0xff]   ;;  %v1896_v30 = vld [vmem:[%s2056_s30 + $0x4c] ss:$12 sps:$4 sm:$0xff]  }
  0x1e   : > { %1640 = vmatpush3.bf16.msra.mxu0 %v1865_v5  ;;  %1811 = vmatpush3.bf16.msra.mxu1 %v1865_v5  ;;  %v1894_v29 = vld [vmem:[%s2056_s30 + $0x150] ss:$12 sps:$4 sm:$0xff]   ;;  %v1898_v31 = vld [vmem:[%s2056_s30 + $0x16c] ss:$12 sps:$4 sm:$0xff]   ;;  %v1900_v32 = vld [vmem:[%s2056_s30 + $0x48] ss:$12 sps:$4 sm:$0xff]  }
  0x1f   : > { %1641 = vmatprep.subr.bf16.mxu0 %v1866_v6  ;;  %1804 = vmatprep.subr.bf16.mxu1 %v1866_v6  ;;  %v1901_v33 = vld [vmem:[%s2056_s30 + $0x168] ss:$12 sps:$4 sm:$0xff]   ;;  %v1902_v34 = vld [vmem:[%s2056_s30 + $0x64] ss:$12 sps:$4 sm:$0xff]   ;;  %v1905_v36 = vld [vmem:[%s2056_s30 + $0x60] ss:$12 sps:$4 sm:$0xff]  }
  0x20   : > { %v1904_v35 = vld [vmem:[%s2056_s30 + $0x8] ss:$12 sps:$4 sm:$0xff]   ;;  %v1906_v37 = vld [vmem:[%s2056_s30 + $0x20] ss:$12 sps:$4 sm:$0xff]   ;;  %v1909_v39 = vld [vmem:[%s2056_s30 + $0x38] ss:$12 sps:$4 sm:$0xff]  }
  0x21   : > { %v1907_v38 = vld [vmem:[%s2056_s30 + $0x7c] ss:$12 sps:$4 sm:$0xff]   ;;  %v1910_v40 = vld [vmem:[%s2056_s30 + $0x78] ss:$12 sps:$4 sm:$0xff]   ;;  %v1912_v42 = vld [vmem:[%s2056_s30 + $0x94] ss:$12 sps:$4 sm:$0xff]  }
  0x22   : > { %1642 = vmatpush3.bf16.msra.mxu0 %v1867_v7  ;;  %1812 = vmatpush3.bf16.msra.mxu1 %v1867_v7  ;;  %v1911_v41 = vld [vmem:[%s2056_s30 + $0x50] ss:$12 sps:$4 sm:$0xff]   ;;  %v1914_v43 = vld [vmem:[%s2056_s30 + $0x68] ss:$12 sps:$4 sm:$0xff]   ;;  %v1916_v45 = vld [vmem:[%s2056_s30 + $0x80] ss:$12 sps:$4 sm:$0xff]  }
  0x23   : > { %1643 = vmatprep.subr.bf16.mxu0 %v1868_v8  ;;  %1805 = vmatprep.subr.bf16.mxu1 %v1868_v8  ;;  %v1915_v44 = vld [vmem:[%s2056_s30 + $0x90] ss:$12 sps:$4 sm:$0xff]   ;;  %v1917_v46 = vld [vmem:[%s2056_s30 + $0xac] ss:$12 sps:$4 sm:$0xff]   ;;  %v1920_v48 = vld [vmem:[%s2056_s30 + $0xa8] ss:$12 sps:$4 sm:$0xff]  }
  0x24   : > { %v1919_v47 = vld [vmem:[%s2056_s30 + $0x98] ss:$12 sps:$4 sm:$0xff]   ;;  %v1921_v49 = vld [vmem:[%s2056_s30 + $0xb0] ss:$12 sps:$4 sm:$0xff]   ;;  %v1924_v51 = vld [vmem:[%s2056_s30 + $0xc8] ss:$12 sps:$4 sm:$0xff]  }
  0x25   : > { %v1922_v50 = vld [vmem:[%s2056_s30 + $0xc4] ss:$12 sps:$4 sm:$0xff]   ;;  %v1925_v52 = vld [vmem:[%s2056_s30 + $0xc0] ss:$12 sps:$4 sm:$0xff]   ;;  %v1927_v54 = vld [vmem:[%s2056_s30 + $0xdc] ss:$12 sps:$4 sm:$0xff]  }
  0x26   : > { %1644 = vmatpush3.bf16.msra.mxu0 %v1869_v9  ;;  %1813 = vmatpush3.bf16.msra.mxu1 %v1869_v9  ;;  %v1926_v53 = vld [vmem:[%s2056_s30 + $0xe0] ss:$12 sps:$4 sm:$0xff]   ;;  %v1929_v55 = vld [vmem:[%s2056_s30 + $0xf8] ss:$12 sps:$4 sm:$0xff]   ;;  %v1931_v57 = vld [vmem:[%s2056_s30 + $0x110] ss:$12 sps:$4 sm:$0xff]  }
  0x27   : > { %1645 = vmatprep.subr.bf16.mxu0 %v1870_v10  ;;  %1806 = vmatprep.subr.bf16.mxu1 %v1870_v10  ;;  %v1930_v56 = vld [vmem:[%s2056_s30 + $0xd8] ss:$12 sps:$4 sm:$0xff]   ;;  %v1932_v58 = vld [vmem:[%s2056_s30 + $0xf4] ss:$12 sps:$4 sm:$0xff]   ;;  %v1935_v60 = vld [vmem:[%s2056_s30 + $0xf0] ss:$12 sps:$4 sm:$0xff]  }
  0x28   : > { %v1934_v59 = vld [vmem:[%s2056_s30 + $0x128] ss:$12 sps:$4 sm:$0xff]   ;;  %v1936_v61 = vld [vmem:[%s2056_s30 + $0x140] ss:$12 sps:$4 sm:$0xff]   ;;  %v1939_v63 = vld [vmem:[%s2056_s30 + $0x158] ss:$12 sps:$4 sm:$0xff]  }
  0x29   : > { %v1937_v62 = vld [vmem:[%s2056_s30 + $0x10c] ss:$12 sps:$4 sm:$0xff]   ;;  %v1940_v0 = vld [vmem:[%s2056_s30 + $0x108] ss:$12 sps:$4 sm:$0xff]   ;;  %v1941_v1 = vld [vmem:[%s2056_s30 + $0x170] ss:$12 sps:$4 sm:$0xff]  }
  0x2a   : > { %1646 = vmatpush3.bf16.msra.mxu0 %v1871_v13  ;;  %1814 = vmatpush3.bf16.msra.mxu1 %v1871_v13 }
  0x2b   : > { %1647 = vmatprep.subr.bf16.mxu0 %v1872_v14  ;;  %1807 = vmatprep.subr.bf16.mxu1 %v1872_v14 }
  0x2e   : > { %1648 = vmatpush3.bf16.msra.mxu0 %v1873_v15  ;;  %1815 = vmatpush3.bf16.msra.mxu1 %v1873_v15 }
  0x2f   : > { %1649 = vmatprep.subr.bf16.mxu0 %v1874_v16  ;;  %1808 = vmatprep.subr.bf16.mxu1 %v1874_v16 }
  0x32   : > { %1650 = vmatpush3.bf16.msra.mxu0 %v1875_v17  ;;  %1816 = vmatpush3.bf16.msra.mxu1 %v1875_v17 }
  0x33   : > { %1765 = vmatprep.subr.bf16.mxu1 %v1882_v18 }
  0x35   : > { %785 = vmatmul.mubr.bf16.vlgmr.msra.gmra.mrb[0].mxu0 %v1876_v19  ;;  %881 = vmatmul.mubr.bf16.vlgmr.msra.gmra.mrb[0].mxu1 %v1879_v20 }
  0x36   : > { %1766 = vmatpush3.bf16.msra.mxu1 %v1882_v18  ;;  %792 = vmatprep.mubr.bf16.mxu0 %v1883_v21 }
  0x37   : > { %888 = vmatprep.mubr.bf16.mxu1 %v1885_v22  ;;  %1767 = vmatprep.subr.bf16.mxu1 %v1895_v23 }
  0x3a   : > { %1768 = vmatpush3.bf16.msra.mxu1 %v1895_v23 }
  0x3d   : > { %793 = vmatmul.mubr.bf16.gmra.mrb[4].mxu0 %v1887_v24  ;;  %889 = vmatmul.mubr.bf16.gmra.mrb[4].mxu1 %v1888_v25 }
  0x3e   : > { %800 = vmatprep.mubr.bf16.mxu0 %v1889_v26  ;;  %896 = vmatprep.mubr.bf16.mxu1 %v1891_v27 }
  0x45   : > { %801 = vmatmul.mubr.bf16.gmra.mrb[8].mxu0 %v1893_v28  ;;  %897 = vmatmul.mubr.bf16.gmra.mrb[8].mxu1 %v1894_v29 }
  0x46   : > { %808 = vmatprep.mubr.bf16.mxu0 %v1896_v30  ;;  %904 = vmatprep.mubr.bf16.mxu1 %v1898_v31 }
  0x4d   : > { %809 = vmatmul.mubr.bf16.gmra.mrb[12].mxu0 %v1900_v32  ;;  %905 = vmatmul.mubr.bf16.gmra.mrb[12].mxu1 %v1901_v33 }
  0x4e   : > { %816 = vmatprep.mubr.bf16.mxu0 %v1902_v34  ;;  %1769 = vmatprep.mubr.msk.bf16.mxu1 %vm703_vm0, %v1904_v35 }
  0x55   : > { %817 = vmatmul.mubr.bf16.gmra.mrb[16].mxu0 %v1905_v36  ;;  %1770 = vmatmul.mubr.msk.bf16.vlgmr.msra.gmra.mrb[16].mxu1 %vm703_vm0, %v1906_v37 }
  0x56   : > { %824 = vmatprep.mubr.bf16.mxu0 %v1907_v38  ;;  %1773 = vmatprep.mubr.msk.bf16.mxu1 %vm703_vm0, %v1909_v39 }
  0x5d   : > { %825 = vmatmul.mubr.bf16.gmra.mrb[20].mxu0 %v1910_v40  ;;  %1774 = vmatmul.mubr.msk.bf16.gmra.mrb[20].mxu1 %vm703_vm0, %v1911_v41 }
  0x5e   : > { %832 = vmatprep.mubr.bf16.mxu0 %v1912_v42  ;;  %1777 = vmatprep.mubr.msk.bf16.mxu1 %vm703_vm0, %v1914_v43 }
  0x65   : > { %833 = vmatmul.mubr.bf16.gmra.mrb[24].mxu0 %v1915_v44  ;;  %1778 = vmatmul.mubr.msk.bf16.gmra.mrb[24].mxu1 %vm703_vm0, %v1916_v45 }
  0x66   : > { %840 = vmatprep.mubr.bf16.mxu0 %v1917_v46  ;;  %1781 = vmatprep.mubr.msk.bf16.mxu1 %vm703_vm0, %v1919_v47 }
  0x6d   : > { %841 = vmatmul.mubr.bf16.gmra.mrb[28].mxu0 %v1920_v48  ;;  %1782 = vmatmul.mubr.msk.bf16.gmra.mrb[28].mxu1 %vm703_vm0, %v1921_v49 }
  0x6e   : > { %848 = vmatprep.mubr.bf16.mxu0 %v1922_v50  ;;  %1785 = vmatprep.mubr.msk.bf16.mxu1 %vm703_vm0, %v1924_v51  ;;  %v2151_v50 = vld [vmem:[%s236_s6] ss:$0 sm:$0xff] }
  0x75   : > { %849 = vmatmul.mubr.bf16.gmra.mrb[32].mxu0 %v1925_v52  ;;  %1786 = vmatmul.mubr.msk.bf16.gmra.mrb[32].mxu1 %vm703_vm0, %v1926_v53 }
  0x76   : > { %856 = vmatprep.mubr.bf16.mxu0 %v1927_v54  ;;  %1789 = vmatprep.mubr.msk.bf16.mxu1 %vm703_vm0, %v1929_v55 }
  0x7d   : > { %857 = vmatmul.mubr.bf16.gmra.mrb[36].mxu0 %v1930_v56  ;;  %1790 = vmatmul.mubr.msk.bf16.gmra.mrb[36].mxu1 %vm703_vm0, %v1931_v57 }
  0x7e   : > { %864 = vmatprep.mubr.bf16.mxu0 %v1932_v58  ;;  %1793 = vmatprep.mubr.msk.bf16.mxu1 %vm703_vm0, %v1934_v59 }
  0x85   : > { %865 = vmatmul.mubr.bf16.gmra.mrb[40].mxu0 %v1935_v60  ;;  %1794 = vmatmul.mubr.msk.bf16.gmra.mrb[40].mxu1 %vm703_vm0, %v1936_v61 }
  0x86   : > { %872 = vmatprep.mubr.bf16.mxu0 %v1937_v62  ;;  %1797 = vmatprep.mubr.msk.bf16.mxu1 %vm703_vm0, %v1939_v63 }
  0x8d   : > { %873 = vmatmul.mubr.bf16.gmra.mrb[44].mxu0 %v1940_v0  ;;  %1798 = vmatmul.mubr.msk.bf16.gmra.mrb[44].mxu1 %vm703_vm0, %v1941_v1 }
 0x108   : > { %v1651_v2 = vpop.f32.mrb[0].mxu0  ;;  %v1723_v3 = vpop.f32.mrb[0].mxu1 }
 0x109   : > { %v1652_v4 = vpop.f32.mrb[1].mxu0  ;;  %v1724_v5 = vpop.f32.mrb[1].mxu1 }
 0x10a   : > { %v1653_v6 = vadd.f32 %v1652_v4, %v1651_v2  ;;  %v1654_v7 = vpop.f32.mrb[2].mxu0  ;;  %v2131_v8 = vadd.f32 %v1724_v5, %v1723_v3  ;;  %v1726_v9 = vpop.f32.mrb[2].mxu1 }
 0x10b   : > { %v1655_v10 = vpop.f32.mrb[3].mxu0  ;;  %v1727_v11 = vpop.f32.mrb[3].mxu1 }
 0x10c   : > { %v1656_v12 = vadd.f32 %v1655_v10, %v1654_v7  ;;  %v2133_v13 = vadd.f32 %v1727_v11, %v1726_v9  ;;  %v787_v54 = vadd.f32 %v1653_v6, %v2151_v50 }
 0x10e   : > { %v790_v63 = vadd.f32 %v1656_v12, %v2151_v50 }
 0x110   : > { %v1657_v14 = vpop.f32.mrb[4].mxu0  ;;  %v1729_v15 = vpop.f32.mrb[4].mxu1 }
 0x111   : > { %v1658_v16 = vpop.f32.mrb[5].mxu0  ;;  %v1730_v17 = vpop.f32.mrb[5].mxu1 }
 0x112   : > { %v1659_v18 = vadd.f32 %v1658_v16, %v1657_v14  ;;  %v1660_v19 = vpop.f32.mrb[6].mxu0  ;;  %v2135_v20 = vadd.f32 %v1730_v17, %v1729_v15  ;;  %v1732_v21 = vpop.f32.mrb[6].mxu1 }
 0x113   : > { %v1661_v22 = vpop.f32.mrb[7].mxu0  ;;  %v1733_v23 = vpop.f32.mrb[7].mxu1 }
 0x114   : > { %v1662_v24 = vadd.f32 %v1661_v22, %v1660_v19  ;;  %v2137_v25 = vadd.f32 %v1733_v23, %v1732_v21  ;;  %v795_v51 = vadd.f32 %v1659_v18, %v2151_v50 }
 0x116   : > { %v798_v58 = vadd.f32 %v1662_v24, %v2151_v50 }
 0x118   : > { %v1663_v26 = vpop.f32.mrb[8].mxu0  ;;  %v1735_v27 = vpop.f32.mrb[8].mxu1 }
 0x119   : > { %v1664_v28 = vpop.f32.mrb[9].mxu0  ;;  %v1736_v29 = vpop.f32.mrb[9].mxu1 }
 0x11a   : > { %v1665_v30 = vadd.f32 %v1664_v28, %v1663_v26  ;;  %v1666_v31 = vpop.f32.mrb[10].mxu0  ;;  %v2139_v32 = vadd.f32 %v1736_v29, %v1735_v27  ;;  %v1738_v33 = vpop.f32.mrb[10].mxu1 }
 0x11b   : > { %v1667_v34 = vpop.f32.mrb[11].mxu0  ;;  %v1739_v35 = vpop.f32.mrb[11].mxu1 }
 0x11c   : > { %v1668_v36 = vadd.f32 %v1667_v34, %v1666_v31  ;;  %v2141_v37 = vadd.f32 %v1739_v35, %v1738_v33  ;;  %v803_v16 = vadd.f32 %v1665_v30, %v2151_v50 }
 0x11e   : > { %v806_v27 = vadd.f32 %v1668_v36, %v2151_v50 }
 0x120   : > { %v1669_v38 = vpop.f32.mrb[12].mxu0  ;;  %v1741_v39 = vpop.f32.mrb[12].mxu1 }
 0x121   : > { %v1670_v40 = vpop.f32.mrb[13].mxu0  ;;  %v1742_v41 = vpop.f32.mrb[13].mxu1 }
 0x122   : > { %v1671_v42 = vadd.f32 %v1670_v40, %v1669_v38  ;;  %v1672_v43 = vpop.f32.mrb[14].mxu0  ;;  %v2143_v44 = vadd.f32 %v1742_v41, %v1741_v39  ;;  %v1744_v45 = vpop.f32.mrb[14].mxu1 }
 0x123   : > { %v1673_v46 = vpop.f32.mrb[15].mxu0  ;;  %v1745_v47 = vpop.f32.mrb[15].mxu1 }
 0x124   : > { %v1674_v48 = vadd.f32 %v1673_v46, %v1672_v43  ;;  %v2149_v49 = vadd.f32 %v1745_v47, %v1744_v45  ;;  %v811_v11 = vadd.f32 %v1671_v42, %v2151_v50 }
 0x126   : > { %v814_v21 = vadd.f32 %v1674_v48, %v2151_v50 }
 0x128   : > { %v1675_v52 = vpop.f32.mrb[16].mxu0  ;;  %v1771_v53 = vpop.f32.mrb[16].mxu1 }
 0x129   : > { %v956_v55 = vadd.f32 %v1771_v53, %v795_v51  ;;  %v1676_v56 = vpop.f32.mrb[17].mxu0  ;;  %v947_v57 = vpop.f32.mrb[17].mxu1 }
 0x12a   : > { %v1677_v59 = vadd.f32 %v1676_v56, %v1675_v52  ;;  %v948_v60 = vadd.f32 %v947_v57, %v787_v54  ;;  %v1678_v61 = vpop.f32.mrb[18].mxu0  ;;  %v1772_v62 = vpop.f32.mrb[18].mxu1 }
 0x12b   : > { %v959_v0 = vadd.f32 %v1772_v62, %v798_v58  ;;  %v1679_v1 = vpop.f32.mrb[19].mxu0  ;;  %v950_v2 = vpop.f32.mrb[19].mxu1  ;;  %v1076_v5 = vmax.f32 %v956_v55, 0.0 }
 0x12c   : > { %v1680_v3 = vadd.f32 %v1679_v1, %v1678_v61  ;;  %v951_v4 = vadd.f32 %v950_v2, %v790_v63  ;;  %v1074_v7 = vmax.f32 %v948_v60, 0.0  ;;  %v819_v46 = vadd.f32 %v1677_v59, %v2151_v50 }
 0x12d   : > { %v1077_v6 = vmax.f32 %v959_v0, 0.0 }
 0x12e   : > { %v1075_v9 = vmax.f32 %v951_v4, 0.0  ;;  %v822_v56 = vadd.f32 %v1680_v3, %v2151_v50 }
 0x12f   : > { %v1548_v10 = vpack.c.bf16 %v1077_v6, %v1076_v5 }
 0x130   : > { %v1543_v12 = vpack.c.bf16 %v1075_v9, %v1074_v7  ;;  %v1681_v14 = vpop.f32.mrb[20].mxu0  ;;  %v1775_v15 = vpop.f32.mrb[20].mxu1 }
 0x131   : > { %1620 = vst [vmem:[%s2162_s12 + $0x8] sm:$0xff] %v1548_v10   ;;  %v972_v17 = vadd.f32 %v1775_v15, %v811_v11  ;;  %v1682_v18 = vpop.f32.mrb[21].mxu0  ;;  %v963_v19 = vpop.f32.mrb[21].mxu1 }
 0x132   : > { %1544 = vst [vmem:[%s2162_s12] sm:$0xff] %v1543_v12   ;;  %v1683_v22 = vadd.f32 %v1682_v18, %v1681_v14  ;;  %v964_v23 = vadd.f32 %v963_v19, %v803_v16  ;;  %v1684_v24 = vpop.f32.mrb[22].mxu0  ;;  %v1776_v26 = vpop.f32.mrb[22].mxu1 }
 0x133   : > { %v975_v28 = vadd.f32 %v1776_v26, %v814_v21  ;;  %v1685_v29 = vpop.f32.mrb[23].mxu0  ;;  %v966_v31 = vpop.f32.mrb[23].mxu1  ;;  %v1080_v30 = vmax.f32 %v972_v17, 0.0 }
 0x134   : > { %v1686_v33 = vadd.f32 %v1685_v29, %v1684_v24  ;;  %v967_v34 = vadd.f32 %v966_v31, %v806_v27  ;;  %v1078_v38 = vmax.f32 %v964_v23, 0.0  ;;  %v827_v41 = vadd.f32 %v1683_v22, %v2151_v50 }
 0x135   : > { %v1081_v35 = vmax.f32 %v975_v28, 0.0 }
 0x136   : > { %v1079_v39 = vmax.f32 %v967_v34, 0.0  ;;  %v830_v51 = vadd.f32 %v1686_v33, %v2151_v50 }
 0x137   : > { %v1558_v40 = vpack.c.bf16 %v1081_v35, %v1080_v30 }
 0x138   : > { %v1553_v42 = vpack.c.bf16 %v1079_v39, %v1078_v38  ;;  %v1687_v43 = vpop.f32.mrb[24].mxu0  ;;  %v1779_v45 = vpop.f32.mrb[24].mxu1 }
 0x139   : > { %1622 = vst [vmem:[%s2162_s12 + $0x18] sm:$0xff] %v1558_v40   ;;  %v988_v36 = vadd.f32 %v1779_v45, %v827_v41  ;;  %v1688_v47 = vpop.f32.mrb[25].mxu0  ;;  %v979_v48 = vpop.f32.mrb[25].mxu1 }
 0x13a   : > { %1621 = vst [vmem:[%s2162_s12 + $0x10] sm:$0xff] %v1553_v42   ;;  %v1689_v52 = vadd.f32 %v1688_v47, %v1687_v43  ;;  %v980_v53 = vadd.f32 %v979_v48, %v819_v46  ;;  %v1690_v54 = vpop.f32.mrb[26].mxu0  ;;  %v1780_v55 = vpop.f32.mrb[26].mxu1 }
 0x13b   : > { %v991_v57 = vadd.f32 %v1780_v55, %v830_v51  ;;  %v1691_v58 = vpop.f32.mrb[27].mxu0  ;;  %v982_v60 = vpop.f32.mrb[27].mxu1  ;;  %v1084_v62 = vmax.f32 %v988_v36, 0.0 }
 0x13c   : > { %v1692_v61 = vadd.f32 %v1691_v58, %v1690_v54  ;;  %v983_v59 = vadd.f32 %v982_v60, %v822_v56  ;;  %v1082_v0 = vmax.f32 %v980_v53, 0.0  ;;  %v835_v7 = vadd.f32 %v1689_v52, %v2151_v50 }
 0x13d   : > { %v1085_v63 = vmax.f32 %v991_v57, 0.0 }
 0x13e   : > { %v1083_v1 = vmax.f32 %v983_v59, 0.0  ;;  %v838_v15 = vadd.f32 %v1692_v61, %v2151_v50 }
 0x13f   : > { %v1568_v2 = vpack.c.bf16 %v1085_v63, %v1084_v62 }
 0x140   : > { %v1563_v4 = vpack.c.bf16 %v1083_v1, %v1082_v0  ;;  %v1693_v5 = vpop.f32.mrb[28].mxu0  ;;  %v1783_v6 = vpop.f32.mrb[28].mxu1 }
 0x141   : > { %1624 = vst [vmem:[%s2162_s12 + $0x28] sm:$0xff] %v1568_v2   ;;  %v1694_v9 = vpop.f32.mrb[29].mxu0  ;;  %v995_v10 = vpop.f32.mrb[29].mxu1 }
 0x142   : > { %1623 = vst [vmem:[%s2162_s12 + $0x20] sm:$0xff] %v1563_v4   ;;  %v1695_v3 = vadd.f32 %v1694_v9, %v1693_v5  ;;  %v996_v11 = vadd.f32 %v995_v10, %v835_v7  ;;  %v1696_v12 = vpop.f32.mrb[30].mxu0  ;;  %v1784_v14 = vpop.f32.mrb[30].mxu1  ;;  %v891_v4 = vadd.f32 %v2135_v20, %v2151_v50  ;;  %v883_v9 = vadd.f32 %v2131_v8, %v2151_v50 }
 0x143   : > { %v1697_v16 = vpop.f32.mrb[31].mxu0  ;;  %v998_v17 = vpop.f32.mrb[31].mxu1 }
 0x144   : > { %v843_v18 = vadd.f32 %v1695_v3, %v2151_v50  ;;  %v1698_v19 = vadd.f32 %v1697_v16, %v1696_v12  ;;  %v999_v21 = vadd.f32 %v998_v17, %v838_v15  ;;  %v1086_v23 = vmax.f32 %v996_v11, 0.0 }
 0x145   : > { %v894_v12 = vadd.f32 %v2137_v25, %v2151_v50 }
 0x146   : > { %v1004_v22 = vadd.f32 %v1783_v6, %v843_v18  ;;  %v846_v24 = vadd.f32 %v1698_v19, %v2151_v50  ;;  %v1087_v26 = vmax.f32 %v999_v21, 0.0 }
 0x148   : > { %v1007_v27 = vadd.f32 %v1784_v14, %v846_v24  ;;  %v1573_v28 = vpack.c.bf16 %v1087_v26, %v1086_v23  ;;  %v1699_v29 = vpop.f32.mrb[32].mxu0  ;;  %v1787_v31 = vpop.f32.mrb[32].mxu1  ;;  %v1088_v30 = vmax.f32 %v1004_v22, 0.0  ;;  %v886_v22 = vadd.f32 %v2133_v13, %v2151_v50 }
 0x149   : > { %v1700_v33 = vpop.f32.mrb[33].mxu0  ;;  %v1011_v34 = vpop.f32.mrb[33].mxu1 }
 0x14a   : > { %v1089_v35 = vmax.f32 %v1007_v27, 0.0  ;;  %1625 = vst [vmem:[%s2162_s12 + $0x30] sm:$0xff] %v1573_v28   ;;  %v1701_v38 = vadd.f32 %v1700_v33, %v1699_v29  ;;  %v1702_v39 = vpop.f32.mrb[34].mxu0  ;;  %v1788_v40 = vpop.f32.mrb[34].mxu1 }
 0x14b   : > { %v1703_v41 = vpop.f32.mrb[35].mxu0  ;;  %v1014_v42 = vpop.f32.mrb[35].mxu1 }
 0x14c   : > { %v1578_v43 = vpack.c.bf16 %v1089_v35, %v1088_v30  ;;  %v851_v45 = vadd.f32 %v1701_v38, %v2151_v50  ;;  %v1704_v46 = vadd.f32 %v1703_v41, %v1702_v39  ;;  %v907_v35 = vadd.f32 %v2143_v44, %v2151_v50 }
 0x14e   : > { %1626 = vst [vmem:[%s2162_s12 + $0x38] sm:$0xff] %v1578_v43   ;;  %v1012_v36 = vadd.f32 %v1011_v34, %v851_v45  ;;  %v854_v47 = vadd.f32 %v1704_v46, %v2151_v50  ;;  %v910_v46 = vadd.f32 %v2149_v49, %v2151_v50 }
 0x150   : > { %v1015_v48 = vadd.f32 %v1014_v42, %v854_v47  ;;  %v1705_v51 = vpop.f32.mrb[36].mxu0  ;;  %v2186_v52 = vpop.f32.mrb[36].mxu1  ;;  %v1090_v55 = vmax.f32 %v1012_v36, 0.0 }
 0x151   : > { %v1706_v53 = vpop.f32.mrb[37].mxu0  ;;  %v1027_v54 = vpop.f32.mrb[37].mxu1 }
 0x152   : > { %v1091_v56 = vmax.f32 %v1015_v48, 0.0  ;;  %v1707_v57 = vadd.f32 %v1706_v53, %v1705_v51  ;;  %v1708_v58 = vpop.f32.mrb[38].mxu0  ;;  %v2188_v60 = vpop.f32.mrb[38].mxu1 }
 0x153   : > { %v1709_v61 = vpop.f32.mrb[39].mxu0  ;;  %v1030_v59 = vpop.f32.mrb[39].mxu1 }
 0x154   : > { %v1583_v62 = vpack.c.bf16 %v1091_v56, %v1090_v55  ;;  %v859_v63 = vadd.f32 %v1707_v57, %v2151_v50  ;;  %v1710_v0 = vadd.f32 %v1709_v61, %v1708_v58 }
 0x156   : > { %1627 = vst [vmem:[%s2162_s12 + $0x40] sm:$0xff] %v1583_v62   ;;  %v1020_v1 = vadd.f32 %v1787_v31, %v859_v63  ;;  %v862_v2 = vadd.f32 %v1710_v0, %v2151_v50 }
 0x158   : > { %v1023_v5 = vadd.f32 %v1788_v40, %v862_v2  ;;  %v1711_v6 = vpop.f32.mrb[40].mxu0  ;;  %v1795_v7 = vpop.f32.mrb[40].mxu1  ;;  %v1092_v14 = vmax.f32 %v1020_v1, 0.0  ;;  %v899_v40 = vadd.f32 %v2139_v32, %v2151_v50  ;;  %v902_v32 = vadd.f32 %v2141_v37, %v2151_v50 }
 0x159   : > { %v1052_v10 = vadd.f32 %v1795_v7, %v891_v4  ;;  %v1712_v3 = vpop.f32.mrb[41].mxu0  ;;  %v1043_v11 = vpop.f32.mrb[41].mxu1 }
 0x15a   : > { %v1093_v15 = vmax.f32 %v1023_v5, 0.0  ;;  %v1713_v16 = vadd.f32 %v1712_v3, %v1711_v6  ;;  %v1044_v17 = vadd.f32 %v1043_v11, %v883_v9  ;;  %v1714_v18 = vpop.f32.mrb[42].mxu0  ;;  %v1796_v19 = vpop.f32.mrb[42].mxu1 }
 0x15b   : > { %v1055_v20 = vadd.f32 %v1796_v19, %v894_v12  ;;  %v1715_v21 = vpop.f32.mrb[43].mxu0  ;;  %v1046_v23 = vpop.f32.mrb[43].mxu1  ;;  %v1100_v27 = vmax.f32 %v1052_v10, 0.0 }
 0x15c   : > { %v1588_v8 = vpack.c.bf16 %v1093_v15, %v1092_v14  ;;  %v867_v24 = vadd.f32 %v1713_v16, %v2151_v50  ;;  %v1716_v26 = vadd.f32 %v1715_v21, %v1714_v18  ;;  %v1047_v28 = vadd.f32 %v1046_v23, %v886_v22 }
 0x15d   : > { %v1101_v25 = vmax.f32 %v1055_v20, 0.0  ;;  %v1098_v33 = vmax.f32 %v1044_v17, 0.0 }
 0x15e   : > { %1628 = vst [vmem:[%s2162_s12 + $0x48] sm:$0xff] %v1588_v8   ;;  %v1028_v29 = vadd.f32 %v1027_v54, %v867_v24  ;;  %v870_v31 = vadd.f32 %v1716_v26, %v2151_v50  ;;  %v1099_v30 = vmax.f32 %v1047_v28, 0.0 }
 0x15f   : > { %v1608_v34 = vpack.c.bf16 %v1101_v25, %v1100_v27 }
 0x160   : > { %v1031_v13 = vadd.f32 %v1030_v59, %v870_v31  ;;  %v1717_v38 = vpop.f32.mrb[44].mxu0  ;;  %v1799_v39 = vpop.f32.mrb[44].mxu1  ;;  %v1603_v41 = vpack.c.bf16 %v1099_v30, %v1098_v33  ;;  %v1094_v36 = vmax.f32 %v1028_v29, 0.0 }
 0x161   : > { %1632 = vst [vmem:[%s2162_s12 + $0x68] sm:$0xff] %v1608_v34   ;;  %v1068_v42 = vadd.f32 %v1799_v39, %v907_v35  ;;  %v1718_v43 = vpop.f32.mrb[45].mxu0  ;;  %v1059_v45 = vpop.f32.mrb[45].mxu1 }
 0x162   : > { %v1095_v47 = vmax.f32 %v1031_v13, 0.0  ;;  %v1719_v48 = vadd.f32 %v1718_v43, %v1717_v38  ;;  %v1060_v44 = vadd.f32 %v1059_v45, %v899_v40  ;;  %v1720_v51 = vpop.f32.mrb[46].mxu0  ;;  %v1800_v53 = vpop.f32.mrb[46].mxu1  ;;  %1631 = vst [vmem:[%s2162_s12 + $0x60] sm:$0xff] %v1603_v41  }
 0x163   : > { %v1071_v54 = vadd.f32 %v1800_v53, %v910_v46  ;;  %v1721_v55 = vpop.f32.mrb[47].mxu0  ;;  %v1062_v56 = vpop.f32.mrb[47].mxu1  ;;  %v1104_v61 = vmax.f32 %v1068_v42, 0.0 }
 0x164   : > { %v1593_v57 = vpack.c.bf16 %v1095_v47, %v1094_v36  ;;  %v875_v58 = vadd.f32 %v1719_v48, %v2151_v50  ;;  %v1722_v49 = vadd.f32 %v1721_v55, %v1720_v51  ;;  %v1063_v62 = vadd.f32 %v1062_v56, %v902_v32 }
 0x165   : > { %v1105_v59 = vmax.f32 %v1071_v54, 0.0  ;;  %v1102_v1 = vmax.f32 %v1060_v44, 0.0 }
 0x166   : > { %1629 = vst [vmem:[%s2162_s12 + $0x50] sm:$0xff] %v1593_v57   ;;  %v1036_v63 = vadd.f32 %v2186_v52, %v875_v58  ;;  %v878_v0 = vadd.f32 %v1722_v49, %v2151_v50  ;;  %v1103_v4 = vmax.f32 %v1063_v62, 0.0 }
 0x167   : > { %v1618_v2 = vpack.c.bf16 %v1105_v59, %v1104_v61 }
 0x168   : > { %v1039_v37 = vadd.f32 %v2188_v60, %v878_v0  ;;  %v1613_v5 = vpack.c.bf16 %v1103_v4, %v1102_v1  ;;  %v1096_v6 = vmax.f32 %v1036_v63, 0.0 }
 0x169   : > { %1634 = vst [vmem:[%s2162_s12 + $0x78] sm:$0xff] %v1618_v2  }
 0x16a   : > { %v1097_v7 = vmax.f32 %v1039_v37, 0.0  ;;  %1633 = vst [vmem:[%s2162_s12 + $0x70] sm:$0xff] %v1613_v5  }
 0x16c   : > { %v1598_v9 = vpack.c.bf16 %v1097_v7, %v1096_v6 }
 0x16e   : > { %1630 = vst [vmem:[%s2162_s12 + $0x58] sm:$0xff] %v1598_v9  }
 0x16f PF: > { %s13_s16 = sadd.s32 1, %s1980_s16   ;;  %s2241_s12 = smov %s1972_s14 }
 0x170   : > { %p10_p7 = scmp.ge.s32.totalorder %s13_s16, 6   ;;  %s2242_s13 = smov %s1976_s15 }
 0x171   : > { %s2243_s14 = smov %s2246_s17  ;;  %s2244_s15 = smov %s2250_s18 }
 0x172   :  { %12 = sbr.rel (!%p10_p7) target bundleno = 3 (0x3), region = 68 }

// kernel: block35_forward.6
= control target key start
LH: loop header
LB: loop body
LE: loop exit
PB: predicated region body
PF: predicated region fallthrough
CT: control target
= control target key end

     0   :  { %s1971_s12 = smov 0   ;;  %s1973_s13 = smov 0   ;;  %s2213_s0 = inlined_call_operand.vmem [shape: bf16[1,512,288], index: 0, kind: input, shape index: {}]   ;;  %s2214_s1 = inlined_call_operand.vmem [shape: bf16[1,288,128], index: 1, kind: input, shape index: {}]   ;;  %s2215_s2 = inlined_call_operand.vmem [shape: f32[1,1,128], index: 2, kind: input, shape index: {}]   ;;  %s2216_s3 = inlined_call_operand.vmem [shape: bf16[1,512,128], index: 3, kind: output, shape index: {}]  }
   0x1   :  { %s1975_s14 = smov 0  }
   0x2 LB: > { %s22_s15 = sadd.s32 1, %s1945_s13  ;;  %p1389_p0 = scmp.ge.s32.totalorder %s1949_s14, 1  ;;  %s1949_s14 = sphi %s1975_s14, %s13_s14   ;;  %s1945_s13 = sphi %s1973_s13, %s2218_s13   ;;  %s1941_s12 = sphi %s1971_s12, %s2217_s12  }
   0x3   : > { %p23_p1 = scmp.ge.s32.totalorder %s22_s15, 2  ;;  %p177_p2 = scmp.lt.s32.totalorder %s1949_s14, 3 }
   0x5   : > { %s2220_s15 = smov (%p23_p1, %s22_s15), 0  ;;  %p178_p3 = pnand %p1389_p0, %p177_p2 }
   0x6   : > { %v1845_v0 = vld [vmem:[%s2214_s1 + $0x40] sm:$0xff] (!%p178_p3)   ;;  %s1390_s18 = sshll.u32 (!%p178_p3), %s1941_s12, 5  ;;  %v1847_v2 = vld [vmem:[%s2214_s1 + $0x48] sm:$0xff] (!%p178_p3)   ;;  %v1849_v4 = vld [vmem:[%s2214_s1 + $0x50] sm:$0xff] (!%p178_p3)   ;;  %vm703_vm0 = vcmask (!%p178_p3), 261120  }
   0x7   : > { %181 = sbr.rel (%p178_p3) target bundleno = 353 (0x161), region = 32  ;;  %v1846_v1 = vld [vmem:[%s2214_s1] sm:$0xff] (!%p178_p3)   ;;  %1638 = vmatprep.subr.bf16.mxu0 (!%p178_p3), %v1845_v0  ;;  %1804 = vmatprep.subr.bf16.mxu1 (!%p178_p3), %v1845_v0  ;;  %p221_p4 = scmp.lt.s32.totalorder (!%p178_p3), %s1390_s18, 63  ;;  %v1848_v3 = vld [vmem:[%s2214_s1 + $0x8] sm:$0xff] (!%p178_p3)   ;;  %v1850_v5 = vld [vmem:[%s2214_s1 + $0x10] sm:$0xff] (!%p178_p3)  }
   0x8   : > { %1639 = vmatpush3.bf16.msra.mxu0 (!%p178_p3), %v1846_v1  ;;  %1812 = vmatpush3.bf16.msra.mxu1 (!%p178_p3), %v1846_v1  ;;  %v1851_v6 = vld [vmem:[%s2214_s1 + $0x58] sm:$0xff] (!%p178_p3)   ;;  %v1853_v8 = vld [vmem:[%s2214_s1 + $0x60] sm:$0xff] (!%p178_p3)   ;;  %v1855_v10 = vld [vmem:[%s2214_s1 + $0x68] sm:$0xff] (!%p178_p3)  }
   0x9   : > { %1640 = vmatprep.subr.bf16.mxu0 (!%p178_p3), %v1847_v2  ;;  %1805 = vmatprep.subr.bf16.mxu1 (!%p178_p3), %v1847_v2  ;;  %v1852_v7 = vld [vmem:[%s2214_s1 + $0x18] sm:$0xff] (!%p178_p3)   ;;  %v1854_v9 = vld [vmem:[%s2214_s1 + $0x20] sm:$0xff] (!%p178_p3)   ;;  %v1856_v13 = vld [vmem:[%s2214_s1 + $0x28] sm:$0xff] (!%p178_p3)  }
   0xa   : > { %v1857_v14 = vld [vmem:[%s2214_s1 + $0x70] sm:$0xff] (!%p178_p3)   ;;  %v1859_v16 = vld [vmem:[%s2214_s1 + $0x78] sm:$0xff] (!%p178_p3)   ;;  %v1867_v18 = vld [vmem:[%s2214_s1 + $0x80] sm:$0xff] (!%p178_p3)  }
   0xb   : > { %v1858_v15 = vld [vmem:[%s2214_s1 + $0x30] sm:$0xff] (!%p178_p3)   ;;  %v1860_v17 = vld [vmem:[%s2214_s1 + $0x38] sm:$0xff] (!%p178_p3)   ;;  %v1880_v23 = vld [vmem:[%s2214_s1 + $0x88] sm:$0xff] (!%p178_p3)  }
   0xc   : > { %1641 = vmatpush3.bf16.msra.mxu0 (!%p178_p3), %v1848_v3  ;;  %1813 = vmatpush3.bf16.msra.mxu1 (!%p178_p3), %v1848_v3 }
   0xd   : > { %1642 = vmatprep.subr.bf16.mxu0 (!%p178_p3), %v1849_v4  ;;  %1806 = vmatprep.subr.bf16.mxu1 (!%p178_p3), %v1849_v4 }
   0xe   : > { %s2222_s18 = smov (!%p221_p4, %s1390_s18), 63 }
   0xf   : > { %s1820_s4 = smul.u32 12, %s2222_s18  ;;  %s1393_s9 = sshll.u32 %s2222_s18, 2 }
  0x10   : > { %1643 = vmatpush3.bf16.msra.mxu0 %v1850_v5  ;;  %1814 = vmatpush3.bf16.msra.mxu1 %v1850_v5  ;;  %s2144_s12 = scalar_lea.vmem %s2216_s3, %s1393_s9 }
  0x11   : > { %1644 = vmatprep.subr.bf16.mxu0 %v1851_v6  ;;  %1807 = vmatprep.subr.bf16.mxu1 %v1851_v6  ;;  %s2022_s11 = scalar_lea.vmem %s2213_s0, %s1820_s4 }
  0x12   : > { %v1863_v11 = vld [vmem:[%s2022_s11 + $0x4] ss:$12 sps:$4 sm:$0xff]   ;;  %v1861_v19 = vld [vmem:[%s2022_s11] ss:$12 sps:$4 sm:$0xff]   ;;  %v1868_v21 = vld [vmem:[%s2022_s11 + $0x1c] ss:$12 sps:$4 sm:$0xff]  }
  0x13   : > { %v1866_v12 = vld [vmem:[%s2022_s11 + $0x124] ss:$12 sps:$4 sm:$0xff]   ;;  %784 = vmatprep.mubr.bf16.mxu0 %v1863_v11  ;;  %v1864_v20 = vld [vmem:[%s2022_s11 + $0x120] ss:$12 sps:$4 sm:$0xff]   ;;  %v1870_v22 = vld [vmem:[%s2022_s11 + $0x13c] ss:$12 sps:$4 sm:$0xff]  }
  0x14   : > { %1645 = vmatpush3.bf16.msra.mxu0 %v1852_v7  ;;  %1815 = vmatpush3.bf16.msra.mxu1 %v1852_v7  ;;  %v1872_v24 = vld [vmem:[%s2022_s11 + $0x18] ss:$12 sps:$4 sm:$0xff]   ;;  %v1874_v26 = vld [vmem:[%s2022_s11 + $0x34] ss:$12 sps:$4 sm:$0xff]   ;;  %v1878_v28 = vld [vmem:[%s2022_s11 + $0x30] ss:$12 sps:$4 sm:$0xff]  }
  0x15   : > { %1646 = vmatprep.subr.bf16.mxu0 %v1853_v8  ;;  %1808 = vmatprep.subr.bf16.mxu1 %v1853_v8  ;;  %v1873_v25 = vld [vmem:[%s2022_s11 + $0x138] ss:$12 sps:$4 sm:$0xff]   ;;  %v1876_v27 = vld [vmem:[%s2022_s11 + $0x154] ss:$12 sps:$4 sm:$0xff]   ;;  %v1879_v29 = vld [vmem:[%s2022_s11 + $0x150] ss:$12 sps:$4 sm:$0xff]  }
  0x16   : > { %880 = vmatprep.mubr.bf16.mxu1 %v1866_v12  ;;  %v1881_v30 = vld [vmem:[%s2022_s11 + $0x4c] ss:$12 sps:$4 sm:$0xff]   ;;  %v1885_v32 = vld [vmem:[%s2022_s11 + $0x48] ss:$12 sps:$4 sm:$0xff]   ;;  %v1887_v34 = vld [vmem:[%s2022_s11 + $0x64] ss:$12 sps:$4 sm:$0xff]  }
  0x17   : > { %v1883_v31 = vld [vmem:[%s2022_s11 + $0x16c] ss:$12 sps:$4 sm:$0xff]   ;;  %v1886_v33 = vld [vmem:[%s2022_s11 + $0x168] ss:$12 sps:$4 sm:$0xff]   ;;  %v1896_v41 = vld [vmem:[%s2022_s11 + $0x50] ss:$12 sps:$4 sm:$0xff]  }
  0x18   : > { %1647 = vmatpush3.bf16.msra.mxu0 %v1854_v9  ;;  %1816 = vmatpush3.bf16.msra.mxu1 %v1854_v9  ;;  %v1889_v35 = vld [vmem:[%s2022_s11 + $0x8] ss:$12 sps:$4 sm:$0xff]   ;;  %v1890_v36 = vld [vmem:[%s2022_s11 + $0x60] ss:$12 sps:$4 sm:$0xff]   ;;  %v1894_v39 = vld [vmem:[%s2022_s11 + $0x38] ss:$12 sps:$4 sm:$0xff]  }
  0x19   : > { %1648 = vmatprep.subr.bf16.mxu0 %v1855_v10  ;;  %1809 = vmatprep.subr.bf16.mxu1 %v1855_v10  ;;  %v1891_v37 = vld [vmem:[%s2022_s11 + $0x20] ss:$12 sps:$4 sm:$0xff]   ;;  %v1892_v38 = vld [vmem:[%s2022_s11 + $0x7c] ss:$12 sps:$4 sm:$0xff]   ;;  %v1895_v40 = vld [vmem:[%s2022_s11 + $0x78] ss:$12 sps:$4 sm:$0xff]  }
  0x1a   : > { %v1897_v42 = vld [vmem:[%s2022_s11 + $0x94] ss:$12 sps:$4 sm:$0xff]   ;;  %v1900_v44 = vld [vmem:[%s2022_s11 + $0x90] ss:$12 sps:$4 sm:$0xff]   ;;  %v1902_v46 = vld [vmem:[%s2022_s11 + $0xac] ss:$12 sps:$4 sm:$0xff]  }
  0x1b   : > { %v1899_v43 = vld [vmem:[%s2022_s11 + $0x68] ss:$12 sps:$4 sm:$0xff]   ;;  %v1901_v45 = vld [vmem:[%s2022_s11 + $0x80] ss:$12 sps:$4 sm:$0xff]   ;;  %v1904_v47 = vld [vmem:[%s2022_s11 + $0x98] ss:$12 sps:$4 sm:$0xff]  }
  0x1c   : > { %1649 = vmatpush3.bf16.msra.mxu0 %v1856_v13  ;;  %1817 = vmatpush3.bf16.msra.mxu1 %v1856_v13  ;;  %v1905_v48 = vld [vmem:[%s2022_s11 + $0xa8] ss:$12 sps:$4 sm:$0xff]   ;;  %v1906_v49 = vld [vmem:[%s2022_s11 + $0xb0] ss:$12 sps:$4 sm:$0xff]   ;;  %v1910_v52 = vld [vmem:[%s2022_s11 + $0xc0] ss:$12 sps:$4 sm:$0xff]  }
  0x1d   : > { %1650 = vmatprep.subr.bf16.mxu0 %v1857_v14  ;;  %1810 = vmatprep.subr.bf16.mxu1 %v1857_v14  ;;  %v1907_v50 = vld [vmem:[%s2022_s11 + $0xc4] ss:$12 sps:$4 sm:$0xff]   ;;  %v1909_v51 = vld [vmem:[%s2022_s11 + $0xc8] ss:$12 sps:$4 sm:$0xff]   ;;  %v1911_v53 = vld [vmem:[%s2022_s11 + $0xe0] ss:$12 sps:$4 sm:$0xff]  }
  0x1e   : > { %v1912_v54 = vld [vmem:[%s2022_s11 + $0xdc] ss:$12 sps:$4 sm:$0xff]   ;;  %v1914_v55 = vld [vmem:[%s2022_s11 + $0xf8] ss:$12 sps:$4 sm:$0xff]   ;;  %v1917_v58 = vld [vmem:[%s2022_s11 + $0xf4] ss:$12 sps:$4 sm:$0xff]  }
  0x1f   : > { %v1915_v56 = vld [vmem:[%s2022_s11 + $0xd8] ss:$12 sps:$4 sm:$0xff]   ;;  %v1916_v57 = vld [vmem:[%s2022_s11 + $0x110] ss:$12 sps:$4 sm:$0xff]   ;;  %v1919_v59 = vld [vmem:[%s2022_s11 + $0x128] ss:$12 sps:$4 sm:$0xff]  }
  0x20   : > { %1651 = vmatpush3.bf16.msra.mxu0 %v1858_v15  ;;  %1818 = vmatpush3.bf16.msra.mxu1 %v1858_v15  ;;  %v1920_v60 = vld [vmem:[%s2022_s11 + $0xf0] ss:$12 sps:$4 sm:$0xff]   ;;  %v1921_v61 = vld [vmem:[%s2022_s11 + $0x140] ss:$12 sps:$4 sm:$0xff]   ;;  %v1924_v63 = vld [vmem:[%s2022_s11 + $0x158] ss:$12 sps:$4 sm:$0xff]  }
  0x21   : > { %1652 = vmatprep.subr.bf16.mxu0 %v1859_v16  ;;  %1811 = vmatprep.subr.bf16.mxu1 %v1859_v16  ;;  %v1922_v62 = vld [vmem:[%s2022_s11 + $0x10c] ss:$12 sps:$4 sm:$0xff]   ;;  %v1925_v0 = vld [vmem:[%s2022_s11 + $0x108] ss:$12 sps:$4 sm:$0xff]   ;;  %v1926_v1 = vld [vmem:[%s2022_s11 + $0x170] ss:$12 sps:$4 sm:$0xff]  }
  0x24   : > { %1653 = vmatpush3.bf16.msra.mxu0 %v1860_v17  ;;  %1819 = vmatpush3.bf16.msra.mxu1 %v1860_v17 }
  0x25   : > { %1768 = vmatprep.subr.bf16.mxu1 %v1867_v18 }
  0x27   : > { %785 = vmatmul.mubr.bf16.vlgmr.msra.gmra.mrb[0].mxu0 %v1861_v19  ;;  %881 = vmatmul.mubr.bf16.vlgmr.msra.gmra.mrb[0].mxu1 %v1864_v20 }
  0x28   : > { %1769 = vmatpush3.bf16.msra.mxu1 %v1867_v18  ;;  %792 = vmatprep.mubr.bf16.mxu0 %v1868_v21 }
  0x29   : > { %888 = vmatprep.mubr.bf16.mxu1 %v1870_v22  ;;  %1770 = vmatprep.subr.bf16.mxu1 %v1880_v23 }
  0x2c   : > { %1771 = vmatpush3.bf16.msra.mxu1 %v1880_v23 }
  0x2f   : > { %793 = vmatmul.mubr.bf16.gmra.mrb[4].mxu0 %v1872_v24  ;;  %889 = vmatmul.mubr.bf16.gmra.mrb[4].mxu1 %v1873_v25 }
  0x30   : > { %800 = vmatprep.mubr.bf16.mxu0 %v1874_v26  ;;  %896 = vmatprep.mubr.bf16.mxu1 %v1876_v27 }
  0x37   : > { %801 = vmatmul.mubr.bf16.gmra.mrb[8].mxu0 %v1878_v28  ;;  %897 = vmatmul.mubr.bf16.gmra.mrb[8].mxu1 %v1879_v29 }
  0x38   : > { %808 = vmatprep.mubr.bf16.mxu0 %v1881_v30  ;;  %904 = vmatprep.mubr.bf16.mxu1 %v1883_v31 }
  0x3f   : > { %809 = vmatmul.mubr.bf16.gmra.mrb[12].mxu0 %v1885_v32  ;;  %905 = vmatmul.mubr.bf16.gmra.mrb[12].mxu1 %v1886_v33 }
  0x40   : > { %816 = vmatprep.mubr.bf16.mxu0 %v1887_v34  ;;  %1772 = vmatprep.mubr.msk.bf16.mxu1 %vm703_vm0, %v1889_v35 }
  0x47   : > { %817 = vmatmul.mubr.bf16.gmra.mrb[16].mxu0 %v1890_v36  ;;  %1773 = vmatmul.mubr.msk.bf16.vlgmr.msra.gmra.mrb[16].mxu1 %vm703_vm0, %v1891_v37 }
  0x48   : > { %824 = vmatprep.mubr.bf16.mxu0 %v1892_v38  ;;  %1776 = vmatprep.mubr.msk.bf16.mxu1 %vm703_vm0, %v1894_v39 }
  0x4f   : > { %825 = vmatmul.mubr.bf16.gmra.mrb[20].mxu0 %v1895_v40  ;;  %1777 = vmatmul.mubr.msk.bf16.gmra.mrb[20].mxu1 %vm703_vm0, %v1896_v41 }
  0x50   : > { %832 = vmatprep.mubr.bf16.mxu0 %v1897_v42  ;;  %1780 = vmatprep.mubr.msk.bf16.mxu1 %vm703_vm0, %v1899_v43 }
  0x57   : > { %833 = vmatmul.mubr.bf16.gmra.mrb[24].mxu0 %v1900_v44  ;;  %1781 = vmatmul.mubr.msk.bf16.gmra.mrb[24].mxu1 %vm703_vm0, %v1901_v45 }
  0x58   : > { %840 = vmatprep.mubr.bf16.mxu0 %v1902_v46  ;;  %1784 = vmatprep.mubr.msk.bf16.mxu1 %vm703_vm0, %v1904_v47 }
  0x5f   : > { %841 = vmatmul.mubr.bf16.gmra.mrb[28].mxu0 %v1905_v48  ;;  %1785 = vmatmul.mubr.msk.bf16.gmra.mrb[28].mxu1 %vm703_vm0, %v1906_v49 }
  0x60   : > { %848 = vmatprep.mubr.bf16.mxu0 %v1907_v50  ;;  %1788 = vmatprep.mubr.msk.bf16.mxu1 %vm703_vm0, %v1909_v51  ;;  %v2134_v50 = vld [vmem:[%s2215_s2] ss:$0 sm:$0xff] }
  0x67   : > { %849 = vmatmul.mubr.bf16.gmra.mrb[32].mxu0 %v1910_v52  ;;  %1789 = vmatmul.mubr.msk.bf16.gmra.mrb[32].mxu1 %vm703_vm0, %v1911_v53 }
  0x68   : > { %856 = vmatprep.mubr.bf16.mxu0 %v1912_v54  ;;  %1792 = vmatprep.mubr.msk.bf16.mxu1 %vm703_vm0, %v1914_v55 }
  0x6f   : > { %857 = vmatmul.mubr.bf16.gmra.mrb[36].mxu0 %v1915_v56  ;;  %1793 = vmatmul.mubr.msk.bf16.gmra.mrb[36].mxu1 %vm703_vm0, %v1916_v57 }
  0x70   : > { %864 = vmatprep.mubr.bf16.mxu0 %v1917_v58  ;;  %1796 = vmatprep.mubr.msk.bf16.mxu1 %vm703_vm0, %v1919_v59 }
  0x77   : > { %865 = vmatmul.mubr.bf16.gmra.mrb[40].mxu0 %v1920_v60  ;;  %1797 = vmatmul.mubr.msk.bf16.gmra.mrb[40].mxu1 %vm703_vm0, %v1921_v61 }
  0x78   : > { %872 = vmatprep.mubr.bf16.mxu0 %v1922_v62  ;;  %1800 = vmatprep.mubr.msk.bf16.mxu1 %vm703_vm0, %v1924_v63 }
  0x7f   : > { %873 = vmatmul.mubr.bf16.gmra.mrb[44].mxu0 %v1925_v0  ;;  %1801 = vmatmul.mubr.msk.bf16.gmra.mrb[44].mxu1 %vm703_vm0, %v1926_v1 }
  0xfa   : > { %v1654_v2 = vpop.f32.mrb[0].mxu0  ;;  %v1726_v3 = vpop.f32.mrb[0].mxu1 }
  0xfb   : > { %v1655_v4 = vpop.f32.mrb[1].mxu0  ;;  %v1727_v5 = vpop.f32.mrb[1].mxu1 }
  0xfc   : > { %v1656_v6 = vadd.f32 %v1655_v4, %v1654_v2  ;;  %v1657_v7 = vpop.f32.mrb[2].mxu0  ;;  %v2115_v8 = vadd.f32 %v1727_v5, %v1726_v3  ;;  %v1729_v9 = vpop.f32.mrb[2].mxu1 }
  0xfd   : > { %v1658_v10 = vpop.f32.mrb[3].mxu0  ;;  %v1730_v11 = vpop.f32.mrb[3].mxu1 }
  0xfe   : > { %v1659_v12 = vadd.f32 %v1658_v10, %v1657_v7  ;;  %v2117_v13 = vadd.f32 %v1730_v11, %v1729_v9  ;;  %v787_v54 = vadd.f32 %v1656_v6, %v2134_v50 }
 0x100   : > { %v790_v63 = vadd.f32 %v1659_v12, %v2134_v50 }
 0x102   : > { %v1660_v14 = vpop.f32.mrb[4].mxu0  ;;  %v1732_v15 = vpop.f32.mrb[4].mxu1 }
 0x103   : > { %v1661_v16 = vpop.f32.mrb[5].mxu0  ;;  %v1733_v17 = vpop.f32.mrb[5].mxu1 }
 0x104   : > { %v1662_v18 = vadd.f32 %v1661_v16, %v1660_v14  ;;  %v1663_v19 = vpop.f32.mrb[6].mxu0  ;;  %v2119_v20 = vadd.f32 %v1733_v17, %v1732_v15  ;;  %v1735_v21 = vpop.f32.mrb[6].mxu1 }
 0x105   : > { %v1664_v22 = vpop.f32.mrb[7].mxu0  ;;  %v1736_v23 = vpop.f32.mrb[7].mxu1 }
 0x106   : > { %v1665_v24 = vadd.f32 %v1664_v22, %v1663_v19  ;;  %v2121_v25 = vadd.f32 %v1736_v23, %v1735_v21  ;;  %v795_v51 = vadd.f32 %v1662_v18, %v2134_v50 }
 0x108   : > { %v798_v58 = vadd.f32 %v1665_v24, %v2134_v50 }
 0x10a   : > { %v1666_v26 = vpop.f32.mrb[8].mxu0  ;;  %v1738_v27 = vpop.f32.mrb[8].mxu1 }
 0x10b   : > { %v1667_v28 = vpop.f32.mrb[9].mxu0  ;;  %v1739_v29 = vpop.f32.mrb[9].mxu1 }
 0x10c   : > { %v1668_v30 = vadd.f32 %v1667_v28, %v1666_v26  ;;  %v1669_v31 = vpop.f32.mrb[10].mxu0  ;;  %v2123_v32 = vadd.f32 %v1739_v29, %v1738_v27  ;;  %v1741_v33 = vpop.f32.mrb[10].mxu1 }
 0x10d   : > { %v1670_v34 = vpop.f32.mrb[11].mxu0  ;;  %v1742_v35 = vpop.f32.mrb[11].mxu1 }
 0x10e   : > { %v1671_v36 = vadd.f32 %v1670_v34, %v1669_v31  ;;  %v2125_v37 = vadd.f32 %v1742_v35, %v1741_v33  ;;  %v803_v16 = vadd.f32 %v1668_v30, %v2134_v50 }
 0x110   : > { %v806_v27 = vadd.f32 %v1671_v36, %v2134_v50 }
 0x112   : > { %v1672_v38 = vpop.f32.mrb[12].mxu0  ;;  %v1744_v39 = vpop.f32.mrb[12].mxu1 }
 0x113   : > { %v1673_v40 = vpop.f32.mrb[13].mxu0  ;;  %v1745_v41 = vpop.f32.mrb[13].mxu1 }
 0x114   : > { %v1674_v42 = vadd.f32 %v1673_v40, %v1672_v38  ;;  %v1675_v43 = vpop.f32.mrb[14].mxu0  ;;  %v2127_v44 = vadd.f32 %v1745_v41, %v1744_v39  ;;  %v1747_v45 = vpop.f32.mrb[14].mxu1 }
 0x115   : > { %v1676_v46 = vpop.f32.mrb[15].mxu0  ;;  %v1748_v47 = vpop.f32.mrb[15].mxu1 }
 0x116   : > { %v1677_v48 = vadd.f32 %v1676_v46, %v1675_v43  ;;  %v2129_v49 = vadd.f32 %v1748_v47, %v1747_v45  ;;  %v811_v11 = vadd.f32 %v1674_v42, %v2134_v50 }
 0x118   : > { %v814_v21 = vadd.f32 %v1677_v48, %v2134_v50 }
 0x11a   : > { %v1678_v52 = vpop.f32.mrb[16].mxu0  ;;  %v1774_v53 = vpop.f32.mrb[16].mxu1 }
 0x11b   : > { %v956_v55 = vadd.f32 %v1774_v53, %v795_v51  ;;  %v1679_v56 = vpop.f32.mrb[17].mxu0  ;;  %v947_v57 = vpop.f32.mrb[17].mxu1 }
 0x11c   : > { %v1680_v59 = vadd.f32 %v1679_v56, %v1678_v52  ;;  %v948_v60 = vadd.f32 %v947_v57, %v787_v54  ;;  %v1681_v61 = vpop.f32.mrb[18].mxu0  ;;  %v1775_v62 = vpop.f32.mrb[18].mxu1 }
 0x11d   : > { %v959_v0 = vadd.f32 %v1775_v62, %v798_v58  ;;  %v1682_v1 = vpop.f32.mrb[19].mxu0  ;;  %v950_v2 = vpop.f32.mrb[19].mxu1  ;;  %v1076_v5 = vmax.f32 %v956_v55, 0.0 }
 0x11e   : > { %v1683_v3 = vadd.f32 %v1682_v1, %v1681_v61  ;;  %v951_v4 = vadd.f32 %v950_v2, %v790_v63  ;;  %v1074_v6 = vmax.f32 %v948_v60, 0.0  ;;  %v819_v46 = vadd.f32 %v1680_v59, %v2134_v50 }
 0x11f   : > { %v1077_v7 = vmax.f32 %v959_v0, 0.0 }
 0x120   : > { %v1075_v9 = vmax.f32 %v951_v4, 0.0  ;;  %v822_v56 = vadd.f32 %v1683_v3, %v2134_v50 }
 0x121   : > { %v1551_v10 = vpack.c.bf16 %v1077_v7, %v1076_v5 }
 0x122   : > { %v1546_v12 = vpack.c.bf16 %v1075_v9, %v1074_v6  ;;  %v1684_v14 = vpop.f32.mrb[20].mxu0  ;;  %v1778_v15 = vpop.f32.mrb[20].mxu1 }
 0x123   : > { %1623 = vst [vmem:[%s2144_s12 + $0x8] sm:$0xff] %v1551_v10   ;;  %v972_v17 = vadd.f32 %v1778_v15, %v811_v11  ;;  %v1685_v18 = vpop.f32.mrb[21].mxu0  ;;  %v963_v19 = vpop.f32.mrb[21].mxu1 }
 0x124   : > { %1547 = vst [vmem:[%s2144_s12] sm:$0xff] %v1546_v12   ;;  %v1686_v22 = vadd.f32 %v1685_v18, %v1684_v14  ;;  %v964_v23 = vadd.f32 %v963_v19, %v803_v16  ;;  %v1687_v24 = vpop.f32.mrb[22].mxu0  ;;  %v1779_v26 = vpop.f32.mrb[22].mxu1 }
 0x125   : > { %v975_v28 = vadd.f32 %v1779_v26, %v814_v21  ;;  %v1688_v29 = vpop.f32.mrb[23].mxu0  ;;  %v966_v31 = vpop.f32.mrb[23].mxu1  ;;  %v1080_v30 = vmax.f32 %v972_v17, 0.0 }
 0x126   : > { %v1689_v33 = vadd.f32 %v1688_v29, %v1687_v24  ;;  %v967_v34 = vadd.f32 %v966_v31, %v806_v27  ;;  %v1078_v38 = vmax.f32 %v964_v23, 0.0  ;;  %v827_v41 = vadd.f32 %v1686_v22, %v2134_v50 }
 0x127   : > { %v1081_v35 = vmax.f32 %v975_v28, 0.0 }
 0x128   : > { %v1079_v39 = vmax.f32 %v967_v34, 0.0  ;;  %v830_v51 = vadd.f32 %v1689_v33, %v2134_v50 }
 0x129   : > { %v1561_v40 = vpack.c.bf16 %v1081_v35, %v1080_v30 }
 0x12a   : > { %v1556_v42 = vpack.c.bf16 %v1079_v39, %v1078_v38  ;;  %v1690_v43 = vpop.f32.mrb[24].mxu0  ;;  %v1782_v45 = vpop.f32.mrb[24].mxu1 }
 0x12b   : > { %1625 = vst [vmem:[%s2144_s12 + $0x18] sm:$0xff] %v1561_v40   ;;  %v988_v36 = vadd.f32 %v1782_v45, %v827_v41  ;;  %v1691_v47 = vpop.f32.mrb[25].mxu0  ;;  %v979_v48 = vpop.f32.mrb[25].mxu1 }
 0x12c   : > { %1624 = vst [vmem:[%s2144_s12 + $0x10] sm:$0xff] %v1556_v42   ;;  %v1692_v52 = vadd.f32 %v1691_v47, %v1690_v43  ;;  %v980_v53 = vadd.f32 %v979_v48, %v819_v46  ;;  %v1693_v54 = vpop.f32.mrb[26].mxu0  ;;  %v1783_v55 = vpop.f32.mrb[26].mxu1 }
 0x12d   : > { %v991_v57 = vadd.f32 %v1783_v55, %v830_v51  ;;  %v1694_v58 = vpop.f32.mrb[27].mxu0  ;;  %v982_v60 = vpop.f32.mrb[27].mxu1  ;;  %v1084_v62 = vmax.f32 %v988_v36, 0.0 }
 0x12e   : > { %v1695_v61 = vadd.f32 %v1694_v58, %v1693_v54  ;;  %v983_v59 = vadd.f32 %v982_v60, %v822_v56  ;;  %v1082_v0 = vmax.f32 %v980_v53, 0.0  ;;  %v835_v6 = vadd.f32 %v1692_v52, %v2134_v50 }
 0x12f   : > { %v1085_v63 = vmax.f32 %v991_v57, 0.0 }
 0x130   : > { %v1083_v1 = vmax.f32 %v983_v59, 0.0  ;;  %v838_v15 = vadd.f32 %v1695_v61, %v2134_v50 }
 0x131   : > { %v1571_v2 = vpack.c.bf16 %v1085_v63, %v1084_v62 }
 0x132   : > { %v1566_v4 = vpack.c.bf16 %v1083_v1, %v1082_v0  ;;  %v1696_v5 = vpop.f32.mrb[28].mxu0  ;;  %v1786_v7 = vpop.f32.mrb[28].mxu1 }
 0x133   : > { %1627 = vst [vmem:[%s2144_s12 + $0x28] sm:$0xff] %v1571_v2   ;;  %v1697_v9 = vpop.f32.mrb[29].mxu0  ;;  %v995_v10 = vpop.f32.mrb[29].mxu1 }
 0x134   : > { %1626 = vst [vmem:[%s2144_s12 + $0x20] sm:$0xff] %v1566_v4   ;;  %v1698_v3 = vadd.f32 %v1697_v9, %v1696_v5  ;;  %v996_v11 = vadd.f32 %v995_v10, %v835_v6  ;;  %v1699_v12 = vpop.f32.mrb[30].mxu0  ;;  %v1787_v14 = vpop.f32.mrb[30].mxu1  ;;  %v891_v4 = vadd.f32 %v2119_v20, %v2134_v50  ;;  %v883_v9 = vadd.f32 %v2115_v8, %v2134_v50 }
 0x135   : > { %v1700_v16 = vpop.f32.mrb[31].mxu0  ;;  %v998_v17 = vpop.f32.mrb[31].mxu1 }
 0x136   : > { %v843_v18 = vadd.f32 %v1698_v3, %v2134_v50  ;;  %v1701_v19 = vadd.f32 %v1700_v16, %v1699_v12  ;;  %v999_v21 = vadd.f32 %v998_v17, %v838_v15  ;;  %v1086_v23 = vmax.f32 %v996_v11, 0.0 }
 0x137   : > { %v894_v12 = vadd.f32 %v2121_v25, %v2134_v50 }
 0x138   : > { %v1004_v22 = vadd.f32 %v1786_v7, %v843_v18  ;;  %v846_v24 = vadd.f32 %v1701_v19, %v2134_v50  ;;  %v1087_v26 = vmax.f32 %v999_v21, 0.0 }
 0x13a   : > { %v1007_v27 = vadd.f32 %v1787_v14, %v846_v24  ;;  %v1576_v28 = vpack.c.bf16 %v1087_v26, %v1086_v23  ;;  %v1702_v29 = vpop.f32.mrb[32].mxu0  ;;  %v1790_v31 = vpop.f32.mrb[32].mxu1  ;;  %v1088_v30 = vmax.f32 %v1004_v22, 0.0  ;;  %v886_v22 = vadd.f32 %v2117_v13, %v2134_v50 }
 0x13b   : > { %v1703_v33 = vpop.f32.mrb[33].mxu0  ;;  %v1011_v34 = vpop.f32.mrb[33].mxu1 }
 0x13c   : > { %v1089_v35 = vmax.f32 %v1007_v27, 0.0  ;;  %1628 = vst [vmem:[%s2144_s12 + $0x30] sm:$0xff] %v1576_v28   ;;  %v1704_v38 = vadd.f32 %v1703_v33, %v1702_v29  ;;  %v1705_v39 = vpop.f32.mrb[34].mxu0  ;;  %v1791_v40 = vpop.f32.mrb[34].mxu1 }
 0x13d   : > { %v1706_v41 = vpop.f32.mrb[35].mxu0  ;;  %v1014_v42 = vpop.f32.mrb[35].mxu1 }
 0x13e   : > { %v1581_v43 = vpack.c.bf16 %v1089_v35, %v1088_v30  ;;  %v851_v45 = vadd.f32 %v1704_v38, %v2134_v50  ;;  %v1707_v46 = vadd.f32 %v1706_v41, %v1705_v39  ;;  %v907_v35 = vadd.f32 %v2127_v44, %v2134_v50 }
 0x140   : > { %1629 = vst [vmem:[%s2144_s12 + $0x38] sm:$0xff] %v1581_v43   ;;  %v1012_v36 = vadd.f32 %v1011_v34, %v851_v45  ;;  %v854_v47 = vadd.f32 %v1707_v46, %v2134_v50  ;;  %v910_v46 = vadd.f32 %v2129_v49, %v2134_v50 }
 0x142   : > { %v1015_v48 = vadd.f32 %v1014_v42, %v854_v47  ;;  %v1708_v51 = vpop.f32.mrb[36].mxu0  ;;  %v2168_v52 = vpop.f32.mrb[36].mxu1  ;;  %v1090_v55 = vmax.f32 %v1012_v36, 0.0 }
 0x143   : > { %v1709_v53 = vpop.f32.mrb[37].mxu0  ;;  %v1027_v54 = vpop.f32.mrb[37].mxu1 }
 0x144   : > { %v1091_v56 = vmax.f32 %v1015_v48, 0.0  ;;  %v1710_v57 = vadd.f32 %v1709_v53, %v1708_v51  ;;  %v1711_v58 = vpop.f32.mrb[38].mxu0  ;;  %v2170_v60 = vpop.f32.mrb[38].mxu1 }
 0x145   : > { %v1712_v61 = vpop.f32.mrb[39].mxu0  ;;  %v1030_v59 = vpop.f32.mrb[39].mxu1 }
 0x146   : > { %v1586_v62 = vpack.c.bf16 %v1091_v56, %v1090_v55  ;;  %v859_v63 = vadd.f32 %v1710_v57, %v2134_v50  ;;  %v1713_v0 = vadd.f32 %v1712_v61, %v1711_v58 }
 0x148   : > { %1630 = vst [vmem:[%s2144_s12 + $0x40] sm:$0xff] %v1586_v62   ;;  %v1020_v1 = vadd.f32 %v1790_v31, %v859_v63  ;;  %v862_v2 = vadd.f32 %v1713_v0, %v2134_v50 }
 0x14a   : > { %v1023_v5 = vadd.f32 %v1791_v40, %v862_v2  ;;  %v1714_v7 = vpop.f32.mrb[40].mxu0  ;;  %v1798_v6 = vpop.f32.mrb[40].mxu1  ;;  %v1092_v14 = vmax.f32 %v1020_v1, 0.0  ;;  %v899_v40 = vadd.f32 %v2123_v32, %v2134_v50  ;;  %v902_v32 = vadd.f32 %v2125_v37, %v2134_v50 }
 0x14b   : > { %v1052_v10 = vadd.f32 %v1798_v6, %v891_v4  ;;  %v1715_v3 = vpop.f32.mrb[41].mxu0  ;;  %v1043_v11 = vpop.f32.mrb[41].mxu1 }
 0x14c   : > { %v1093_v15 = vmax.f32 %v1023_v5, 0.0  ;;  %v1716_v16 = vadd.f32 %v1715_v3, %v1714_v7  ;;  %v1044_v17 = vadd.f32 %v1043_v11, %v883_v9  ;;  %v1717_v18 = vpop.f32.mrb[42].mxu0  ;;  %v1799_v19 = vpop.f32.mrb[42].mxu1 }
 0x14d   : > { %v1055_v20 = vadd.f32 %v1799_v19, %v894_v12  ;;  %v1718_v21 = vpop.f32.mrb[43].mxu0  ;;  %v1046_v23 = vpop.f32.mrb[43].mxu1  ;;  %v1100_v27 = vmax.f32 %v1052_v10, 0.0 }
 0x14e   : > { %v1591_v8 = vpack.c.bf16 %v1093_v15, %v1092_v14  ;;  %v867_v24 = vadd.f32 %v1716_v16, %v2134_v50  ;;  %v1719_v26 = vadd.f32 %v1718_v21, %v1717_v18  ;;  %v1047_v28 = vadd.f32 %v1046_v23, %v886_v22 }
 0x14f   : > { %v1101_v25 = vmax.f32 %v1055_v20, 0.0  ;;  %v1098_v33 = vmax.f32 %v1044_v17, 0.0 }
 0x150   : > { %1631 = vst [vmem:[%s2144_s12 + $0x48] sm:$0xff] %v1591_v8   ;;  %v1028_v29 = vadd.f32 %v1027_v54, %v867_v24  ;;  %v870_v31 = vadd.f32 %v1719_v26, %v2134_v50  ;;  %v1099_v30 = vmax.f32 %v1047_v28, 0.0 }
 0x151   : > { %v1611_v34 = vpack.c.bf16 %v1101_v25, %v1100_v27 }
 0x152   : > { %v1031_v13 = vadd.f32 %v1030_v59, %v870_v31  ;;  %v1720_v38 = vpop.f32.mrb[44].mxu0  ;;  %v1802_v39 = vpop.f32.mrb[44].mxu1  ;;  %v1606_v41 = vpack.c.bf16 %v1099_v30, %v1098_v33  ;;  %v1094_v36 = vmax.f32 %v1028_v29, 0.0 }
 0x153   : > { %1635 = vst [vmem:[%s2144_s12 + $0x68] sm:$0xff] %v1611_v34   ;;  %v1068_v42 = vadd.f32 %v1802_v39, %v907_v35  ;;  %v1721_v43 = vpop.f32.mrb[45].mxu0  ;;  %v1059_v45 = vpop.f32.mrb[45].mxu1 }
 0x154   : > { %v1095_v47 = vmax.f32 %v1031_v13, 0.0  ;;  %v1722_v48 = vadd.f32 %v1721_v43, %v1720_v38  ;;  %v1060_v44 = vadd.f32 %v1059_v45, %v899_v40  ;;  %v1723_v51 = vpop.f32.mrb[46].mxu0  ;;  %v1803_v53 = vpop.f32.mrb[46].mxu1  ;;  %1634 = vst [vmem:[%s2144_s12 + $0x60] sm:$0xff] %v1606_v41  }
 0x155   : > { %v1071_v54 = vadd.f32 %v1803_v53, %v910_v46  ;;  %v1724_v55 = vpop.f32.mrb[47].mxu0  ;;  %v1062_v56 = vpop.f32.mrb[47].mxu1  ;;  %v1104_v61 = vmax.f32 %v1068_v42, 0.0 }
 0x156   : > { %v1596_v57 = vpack.c.bf16 %v1095_v47, %v1094_v36  ;;  %v875_v58 = vadd.f32 %v1722_v48, %v2134_v50  ;;  %v1725_v49 = vadd.f32 %v1724_v55, %v1723_v51  ;;  %v1063_v62 = vadd.f32 %v1062_v56, %v902_v32 }
 0x157   : > { %v1105_v59 = vmax.f32 %v1071_v54, 0.0  ;;  %v1102_v1 = vmax.f32 %v1060_v44, 0.0 }
 0x158   : > { %1632 = vst [vmem:[%s2144_s12 + $0x50] sm:$0xff] %v1596_v57   ;;  %v1036_v63 = vadd.f32 %v2168_v52, %v875_v58  ;;  %v878_v0 = vadd.f32 %v1725_v49, %v2134_v50  ;;  %v1103_v4 = vmax.f32 %v1063_v62, 0.0 }
 0x159   : > { %v1621_v2 = vpack.c.bf16 %v1105_v59, %v1104_v61 }
 0x15a   : > { %v1039_v37 = vadd.f32 %v2170_v60, %v878_v0  ;;  %v1616_v5 = vpack.c.bf16 %v1103_v4, %v1102_v1  ;;  %v1096_v7 = vmax.f32 %v1036_v63, 0.0 }
 0x15b   : > { %1637 = vst [vmem:[%s2144_s12 + $0x78] sm:$0xff] %v1621_v2  }
 0x15c   : > { %v1097_v6 = vmax.f32 %v1039_v37, 0.0  ;;  %1636 = vst [vmem:[%s2144_s12 + $0x70] sm:$0xff] %v1616_v5  }
 0x15e   : > { %v1601_v9 = vpack.c.bf16 %v1097_v6, %v1096_v7 }
 0x160   : > { %1633 = vst [vmem:[%s2144_s12 + $0x58] sm:$0xff] %v1601_v9  }
 0x161 PF: > { %s13_s14 = sadd.s32 1, %s1949_s14   ;;  %s2217_s12 = smov %s1945_s13 }
 0x162   : > { %p10_p5 = scmp.ge.s32.totalorder %s13_s14, 4   ;;  %s2218_s13 = smov %s2220_s15 }
 0x164   :  { %12 = sbr.rel (!%p10_p5) target bundleno = 2 (0x2), region = 68 }

// kernel: block35_forward.7
= control target key start
LH: loop header
LB: loop body
LE: loop exit
PB: predicated region body
PF: predicated region fallthrough
CT: control target
= control target key end

     0   :  { %9 = vsyncpa [#allocation3], 0  ;;  %s1643_s0 = inlined_call_operand.vmem [shape: bf16[512,128], index: 0, kind: input, shape index: {}]   ;;  %s1644_s1 = inlined_call_operand.vmem [shape: bf16[128,256], index: 1, kind: input, shape index: {}]   ;;  %s1645_s2 = inlined_call_operand.vmem [shape: f32[1,256], index: 2, kind: input, shape index: {}]   ;;  %s1646_s3 = inlined_call_operand.vmem [shape: f32[512,256], index: 3, kind: input, shape index: {}]   ;;  %s1647_s4 = inlined_call_operand.hbm [shape: f32[512,256], index: 4, kind: output, shape index: {}]  }
   0x1   :  { %11 = vsyncpa [#allocation3 + $0x1], 0  ;;  %s1241_s15 = smov 0   ;;  %s1243_s16 = smov 0  }
   0x2   :  { %s1245_s17 = smov 0   ;;  %s1247_s18 = smov 0  }
   0x3 LB: > { %s1262_s19 = sadd.s32 4294967295, %s1210_s18   ;;  %s999_s20 = sadd.s32 4294967294, %s1210_s18   ;;  %s1210_s18 = sphi %s1247_s18, %s1653_s18   ;;  %s1206_s17 = sphi %s1245_s17, %s1652_s17   ;;  %s1202_s16 = sphi %s1243_s16, %s1651_s16   ;;  %s1198_s15 = sphi %s1241_s15, %s1650_s15  }
   0x4   : > { %s1266_s21 = sadd.s32 1, %s1210_s18   ;;  %s118_s22 = sadd.s32 1, %s1206_s17 }
   0x5   : > { %s115_s23 = ssub.s32 %s1210_s18, %s1266_s21  ;;  %p128_p0 = scmp.ne.s32.totalorder %s1206_s17, %s1202_s16 }
   0x6   : > { %p116_p1 = scmp.eq.s32.totalorder %s115_s23, 0  ;;  %p129_p2 = scmp.eq.s32.totalorder %s1262_s19, 1 }
   0x7   : > { %p134_p3 = scmp.ne.s32.totalorder %s1202_s16, %s1198_s15  ;;  %p135_p4 = scmp.eq.s32.totalorder %s999_s20, 1 }
   0x8   : > { %s1277_s24 = scalar_select %p116_p1, %s1206_s17, %s118_s22  }
   0x9   : > { %p1279_p5 = por %p129_p2, %p128_p0  ;;  %p1283_p6 = por %p135_p4, %p134_p3 }
   0xa   : > { %p1002_p7 = scmp.ge.s32.totalorder %s1210_s18, 1  ;;  %p178_p8 = scmp.lt.s32.totalorder %s1210_s18, 3 }
   0xc   : > { %p179_p9 = pnand %p1002_p7, %p178_p8 }
   0xd   : > { %v1108_v0 = vld [vmem:[%s1644_s1 + $0x4] ss:$8 sps:$4 sm:$0xff] (!%p179_p9)   ;;  %s1004_s29 = sshll.u32 (!%p179_p9), %s1262_s19, 5  ;;  %v1110_v1 = vld [vmem:[%s1644_s1] ss:$8 sps:$4 sm:$0xff] (!%p179_p9)   ;;  %v1212_v2 = vmov (!%p179_p9), 0   ;;  %v275_v33 = vlaneseq (!%p179_p9) }
   0xe   : > { %182 = sbr.rel (%p179_p9) target bundleno = 339 (0x153), region = 36  ;;  %493 = vmatprep.mubr.bf16.mxu0 (!%p179_p9), %v1212_v2  ;;  %573 = vmatprep.mubr.bf16.mxu1 (!%p179_p9), %v1212_v2  ;;  %p211_p10 = scmp.lt.s32.totalorder (!%p179_p9), %s1004_s29, 63  ;;  %v1111_v3 = vld [vmem:[%s1644_s1 + $0x14] ss:$8 sps:$4 sm:$0xff] (!%p179_p9)   ;;  %v1113_v4 = vld [vmem:[%s1644_s1 + $0x10] ss:$8 sps:$4 sm:$0xff] (!%p179_p9)  }
   0xf   : > { %461 = vmatprep.subr.bf16.mxu0 (!%p179_p9), %v1108_v0  ;;  %1050 = vmatprep.subr.bf16.mxu1 (!%p179_p9), %v1108_v0  ;;  %v1114_v5 = vld [vmem:[%s1644_s1 + $0x24] ss:$8 sps:$4 sm:$0xff] (!%p179_p9)   ;;  %v1116_v6 = vld [vmem:[%s1644_s1 + $0x20] ss:$8 sps:$4 sm:$0xff] (!%p179_p9)   ;;  %v1117_v7 = vld [vmem:[%s1644_s1 + $0x34] ss:$8 sps:$4 sm:$0xff] (!%p179_p9)  }
  0x10   : > { %462 = vmatpush1.bf16.msra.mxu0 (!%p179_p9), %v1110_v1  ;;  %1058 = vmatpush1.bf16.msra.mxu1 (!%p179_p9), %v1110_v1  ;;  %v1119_v8 = vld [vmem:[%s1644_s1 + $0x30] ss:$8 sps:$4 sm:$0xff] (!%p179_p9)   ;;  %v1120_v9 = vld [vmem:[%s1644_s1 + $0x44] ss:$8 sps:$4 sm:$0xff] (!%p179_p9)   ;;  %v1122_v10 = vld [vmem:[%s1644_s1 + $0x40] ss:$8 sps:$4 sm:$0xff] (!%p179_p9)  }
  0x11   : > { %463 = vmatprep.subr.bf16.mxu0 (!%p179_p9), %v1111_v3  ;;  %1051 = vmatprep.subr.bf16.mxu1 (!%p179_p9), %v1111_v3  ;;  %v1123_v11 = vld [vmem:[%s1644_s1 + $0x54] ss:$8 sps:$4 sm:$0xff] (!%p179_p9)   ;;  %v1125_v12 = vld [vmem:[%s1644_s1 + $0x50] ss:$8 sps:$4 sm:$0xff] (!%p179_p9)   ;;  %v1126_v13 = vld [vmem:[%s1644_s1 + $0x64] ss:$8 sps:$4 sm:$0xff] (!%p179_p9)  }
  0x12   : > { %v1128_v14 = vld [vmem:[%s1644_s1 + $0x60] ss:$8 sps:$4 sm:$0xff] (!%p179_p9)   ;;  %v1129_v15 = vld [vmem:[%s1644_s1 + $0x74] ss:$8 sps:$4 sm:$0xff] (!%p179_p9)   ;;  %v1131_v16 = vld [vmem:[%s1644_s1 + $0x70] ss:$8 sps:$4 sm:$0xff] (!%p179_p9)  }
  0x13   : > { %v276_v34 = vshrl.u32 (!%p179_p9), %v275_v33, 7  ;;  %v273_v36 = vld [vmem:[%s1645_s2] sm:$0x3] (!%p179_p9)  ;;  %s1049_s14 = sshll.u32 (!%p179_p9), %s1262_s19, 13  ;;  %s1213_s5 = smov (!%p179_p9), [#allocation2]  }
  0x14   : > { %464 = vmatpush1.bf16.msra.mxu0 (!%p179_p9), %v1113_v4  ;;  %1059 = vmatpush1.bf16.msra.mxu1 (!%p179_p9), %v1113_v4  ;;  %s1590_s23 = scalar_lea.hbm (!%p179_p9), %s1647_s4, %s1049_s14  ;;  %s1152_s6 = sshll.u32 (!%p179_p9), %s1213_s5, 4  ;;  %s1153_s6 = int_to_ptr.vmem [resolvable:$false] %s1152_s6 }
  0x15   : > { %s1655_s29 = smov (!%p211_p10, %s1004_s29), 63  ;;  %465 = vmatprep.subr.bf16.mxu0 %v1114_v5  ;;  %1052 = vmatprep.subr.bf16.mxu1 %v1114_v5  ;;  %v277_v35 = vsub.s32 0, %v276_v34  ;;  %v281_v37 = vsub.s32 1, %v276_v34 }
  0x16   : > { %s1005_s12 = sshll.u32 %s1655_s29, 2  ;;  %s1047_s7 = sshll.u32 %s1655_s29, 4 }
  0x17   : > { %s1319_s28 = scalar_lea.vmem %s1643_s0, %s1005_s12  ;;  %s1385_s12 = scalar_lea.vmem %s1646_s3, %s1047_s7  ;;  %v1387_v38 = vrot.slane %v273_v36, %v277_v35  ;;  %v1390_v39 = vrot.slane %v273_v36, %v281_v37 }
  0x18   : > { %466 = vmatpush1.bf16.msra.mxu0 %v1116_v6  ;;  %1060 = vmatpush1.bf16.msra.mxu1 %v1116_v6  ;;  %v1132_v17 = vld [vmem:[%s1319_s28] sm:$0xff]   ;;  %v1134_v19 = vld [vmem:[%s1319_s28 + $0x8] sm:$0xff]   ;;  %v1136_v21 = vld [vmem:[%s1319_s28 + $0x10] sm:$0xff]   ;;  %s1154_s7 = scalar_lea.vmem %s1153_s6, 16384 }
  0x19   : > { %467 = vmatprep.subr.bf16.mxu0 %v1117_v7  ;;  %1053 = vmatprep.subr.bf16.mxu1 %v1117_v7  ;;  %v1133_v18 = vld [vmem:[%s1319_s28 + $0x40] sm:$0xff]   ;;  %v1135_v20 = vld [vmem:[%s1319_s28 + $0x48] sm:$0xff]   ;;  %v1137_v22 = vld [vmem:[%s1319_s28 + $0x50] sm:$0xff]  }
  0x1a   : > { %v1138_v23 = vld [vmem:[%s1319_s28 + $0x18] sm:$0xff]   ;;  %v1140_v25 = vld [vmem:[%s1319_s28 + $0x20] sm:$0xff]   ;;  %v1142_v27 = vld [vmem:[%s1319_s28 + $0x28] sm:$0xff]  }
  0x1b   : > { %v1139_v24 = vld [vmem:[%s1319_s28 + $0x58] sm:$0xff]   ;;  %v1141_v26 = vld [vmem:[%s1319_s28 + $0x60] sm:$0xff]   ;;  %v1143_v28 = vld [vmem:[%s1319_s28 + $0x68] sm:$0xff]  }
  0x1c   : > { %468 = vmatpush1.bf16.msra.mxu0 %v1119_v8  ;;  %1061 = vmatpush1.bf16.msra.mxu1 %v1119_v8  ;;  %v1144_v29 = vld [vmem:[%s1319_s28 + $0x30] sm:$0xff]   ;;  %v1146_v31 = vld [vmem:[%s1319_s28 + $0x38] sm:$0xff]   ;;  %v654_v41 = vld [vmem:[%s1385_s12] sm:$0xff] }
  0x1d   : > { %469 = vmatprep.subr.bf16.mxu0 %v1120_v9  ;;  %1054 = vmatprep.subr.bf16.mxu1 %v1120_v9  ;;  %v1145_v30 = vld [vmem:[%s1319_s28 + $0x70] sm:$0xff]   ;;  %v1147_v32 = vld [vmem:[%s1319_s28 + $0x78] sm:$0xff]   ;;  %s207_s28 = sand.u32 1, %s1202_s16   ;;  %v686_v43 = vld [vmem:[%s1385_s12 + $0x100] sm:$0xff] }
  0x1e   : > { %s1396_s29 = sshll.u32 %s207_s28, 9  ;;  %v655_v47 = vld [vmem:[%s1385_s12 + $0x8] sm:$0xff]  ;;  %v656_v53 = vld [vmem:[%s1385_s12 + $0x10] sm:$0xff]  ;;  %v657_v61 = vld [vmem:[%s1385_s12 + $0x18] sm:$0xff]  ;;  %s1602_s27 = scalar_lea.sflag [#allocation3], %s207_s28 }
  0x1f   : > { %v687_v49 = vld [vmem:[%s1385_s12 + $0x108] sm:$0xff]  ;;  %v688_v55 = vld [vmem:[%s1385_s12 + $0x110] sm:$0xff]  ;;  %v689_v63 = vld [vmem:[%s1385_s12 + $0x118] sm:$0xff]  ;;  %s1413_s13 = scalar_lea.vmem [#allocation2], %s1396_s29 }
  0x20   : > { %470 = vmatpush1.bf16.msra.mxu0 %v1122_v10  ;;  %1062 = vmatpush1.bf16.msra.mxu1 %v1122_v10  ;;  %v661_v37 = vld [vmem:[%s1385_s12 + $0x38] sm:$0xff]  ;;  %s925_s20 = sshll.u32 %s1413_s13, 4  ;;  %s1592_s20 = int_to_ptr.vmem [resolvable:$true] %s925_s20 }
  0x21   : > { %471 = vmatprep.subr.bf16.mxu0 %v1123_v11  ;;  %1055 = vmatprep.subr.bf16.mxu1 %v1123_v11  ;;  %s1148_s30 = scalar_lea.vmem %s1592_s20, 8192  ;;  %p1155_p0 = scmp.lt.s32.totalorder %s1592_s20, %s1153_s6 }
  0x22   : > { %p1149_p11 = scmp.ne.s32.totalorder %s1592_s20, %s1148_s30  ;;  %p1156_p1 = scmp.lt.s32.totalorder %s1154_s7, %s1148_s30 }
  0x24   : > { %472 = vmatpush1.bf16.msra.mxu0 %v1125_v12  ;;  %1063 = vmatpush1.bf16.msra.mxu1 %v1125_v12  ;;  %p1150_p12 = pnand %p1149_p11, %p1279_p5  ;;  %p1157_p2 = por %p1156_p1, %p1155_p0 }
  0x25   : > { %473 = vmatprep.subr.bf16.mxu0 %v1126_v13  ;;  %1056 = vmatprep.subr.bf16.mxu1 %v1126_v13 }
  0x26   : > { %p1151_p13 = pneg %p1150_p12 }
  0x28   : > { %474 = vmatpush1.bf16.msra.mxu0 %v1128_v14  ;;  %1064 = vmatpush1.bf16.msra.mxu1 %v1128_v14  ;;  %p1158_p3 = pnand %p1157_p2, %p1151_p13 }
  0x29   : > { %475 = vmatprep.subr.bf16.mxu0 %v1129_v15  ;;  %1057 = vmatprep.subr.bf16.mxu1 %v1129_v15 }
  0x2c   : > { %476 = vmatpush1.bf16.msra.mxu0 %v1131_v16  ;;  %1065 = vmatpush1.bf16.msra.mxu1 %v1131_v16 }
  0x2f   : > { %494 = vmatmul.mubr.bf16.vlgmr.msra.gmra.mrb[0].mxu0 %v1132_v17  ;;  %574 = vmatmul.mubr.bf16.vlgmr.msra.gmra.mrb[0].mxu1 %v1133_v18  ;;  %v658_v17 = vld [vmem:[%s1385_s12 + $0x20] sm:$0xff] }
  0x30   : > { %503 = vmatprep.mubr.bf16.mxu0 %v1212_v2  ;;  %583 = vmatprep.mubr.bf16.mxu1 %v1212_v2 }
  0x37   : > { %504 = vmatmul.mubr.bf16.gmra.mrb[4].mxu0 %v1134_v19  ;;  %584 = vmatmul.mubr.bf16.gmra.mrb[4].mxu1 %v1135_v20  ;;  %v690_v19 = vld [vmem:[%s1385_s12 + $0x120] sm:$0xff] }
  0x38   : > { %513 = vmatprep.mubr.bf16.mxu0 %v1212_v2  ;;  %593 = vmatprep.mubr.bf16.mxu1 %v1212_v2 }
  0x3f   : > { %514 = vmatmul.mubr.bf16.gmra.mrb[8].mxu0 %v1136_v21  ;;  %594 = vmatmul.mubr.bf16.gmra.mrb[8].mxu1 %v1137_v22 }
  0x40   : > { %523 = vmatprep.mubr.bf16.mxu0 %v1212_v2  ;;  %603 = vmatprep.mubr.bf16.mxu1 %v1212_v2 }
  0x47   : > { %524 = vmatmul.mubr.bf16.gmra.mrb[12].mxu0 %v1138_v23  ;;  %604 = vmatmul.mubr.bf16.gmra.mrb[12].mxu1 %v1139_v24  ;;  %v659_v23 = vld [vmem:[%s1385_s12 + $0x28] sm:$0xff] }
  0x48   : > { %533 = vmatprep.mubr.bf16.mxu0 %v1212_v2  ;;  %613 = vmatprep.mubr.bf16.mxu1 %v1212_v2 }
  0x4f   : > { %534 = vmatmul.mubr.bf16.gmra.mrb[16].mxu0 %v1140_v25  ;;  %614 = vmatmul.mubr.bf16.gmra.mrb[16].mxu1 %v1141_v26  ;;  %v691_v25 = vld [vmem:[%s1385_s12 + $0x128] sm:$0xff] }
  0x50   : > { %543 = vmatprep.mubr.bf16.mxu0 %v1212_v2  ;;  %623 = vmatprep.mubr.bf16.mxu1 %v1212_v2 }
  0x57   : > { %544 = vmatmul.mubr.bf16.gmra.mrb[20].mxu0 %v1142_v27  ;;  %624 = vmatmul.mubr.bf16.gmra.mrb[20].mxu1 %v1143_v28 }
  0x58   : > { %553 = vmatprep.mubr.bf16.mxu0 %v1212_v2  ;;  %633 = vmatprep.mubr.bf16.mxu1 %v1212_v2 }
  0x5f   : > { %554 = vmatmul.mubr.bf16.gmra.mrb[24].mxu0 %v1144_v29  ;;  %634 = vmatmul.mubr.bf16.gmra.mrb[24].mxu1 %v1145_v30  ;;  %v660_v29 = vld [vmem:[%s1385_s12 + $0x30] sm:$0xff] }
  0x60   : > { %563 = vmatprep.mubr.bf16.mxu0 %v1212_v2  ;;  %643 = vmatprep.mubr.bf16.mxu1 %v1212_v2 }
  0x67   : > { %564 = vmatmul.mubr.bf16.gmra.mrb[28].mxu0 %v1146_v31  ;;  %644 = vmatmul.mubr.bf16.gmra.mrb[28].mxu1 %v1147_v32  ;;  %v692_v31 = vld [vmem:[%s1385_s12 + $0x130] sm:$0xff] }
 0x102   : > { %v495_v40 = vpop.f32.mrb[0].mxu0  ;;  %v575_v42 = vpop.f32.mrb[0].mxu1 }
 0x103   : > { %v496_v44 = vadd.f32 %v495_v40, %v1387_v38  ;;  %v576_v45 = vadd.f32 %v575_v42, %v1387_v38  ;;  %v497_v46 = vpop.f32.mrb[1].mxu0  ;;  %v577_v48 = vpop.f32.mrb[1].mxu1 }
 0x104   : > { %v498_v50 = vadd.f32 %v497_v46, %v1390_v39  ;;  %v578_v51 = vadd.f32 %v577_v48, %v1390_v39  ;;  %v499_v52 = vpop.f32.mrb[2].mxu0  ;;  %v579_v54 = vpop.f32.mrb[2].mxu1 }
 0x105   : > { %v718_v56 = vadd.f32 %v654_v41, %v496_v44  ;;  %v750_v57 = vadd.f32 %v686_v43, %v576_v45  ;;  %v500_v58 = vadd.f32 %v499_v52, %v1387_v38  ;;  %v580_v59 = vadd.f32 %v579_v54, %v1387_v38  ;;  %v501_v60 = vpop.f32.mrb[3].mxu0  ;;  %v581_v62 = vpop.f32.mrb[3].mxu1  ;;  %v693_v41 = vld [vmem:[%s1385_s12 + $0x138] sm:$0xff] }
 0x106   : > { %v719_v0 = vadd.f32 %v655_v47, %v498_v50  ;;  %v751_v1 = vadd.f32 %v687_v49, %v578_v51  ;;  %v502_v2 = vadd.f32 %v501_v60, %v1390_v39  ;;  %v582_v3 = vadd.f32 %v581_v62, %v1390_v39 }
 0x107   : > { %v782_v4 = vmax.f32 %v718_v56, 0.0  ;;  %v814_v5 = vmax.f32 %v750_v57, 0.0  ;;  %v720_v6 = vadd.f32 %v656_v53, %v500_v58  ;;  %v752_v7 = vadd.f32 %v688_v55, %v580_v59  ;;  %v662_v59 = vld [vmem:[%s1385_s12 + $0x40] sm:$0xff] }
 0x108   : > { %v783_v8 = vmax.f32 %v719_v0, 0.0  ;;  %v815_v9 = vmax.f32 %v751_v1, 0.0  ;;  %v721_v10 = vadd.f32 %v657_v61, %v502_v2  ;;  %v753_v11 = vadd.f32 %v689_v63, %v582_v3  ;;  %v694_v61 = vld [vmem:[%s1385_s12 + $0x140] sm:$0xff]  ;;  %v663_v1 = vld [vmem:[%s1385_s12 + $0x48] sm:$0xff] }
 0x109   : > { %846 = vst [vmem:[%s1413_s13] sm:$0xff] %v782_v4  ;;  %878 = vst [vmem:[%s1413_s13 + $0x100] sm:$0xff] %v814_v5  ;;  %v784_v12 = vmax.f32 %v720_v6, 0.0  ;;  %v816_v13 = vmax.f32 %v752_v7, 0.0  ;;  %v695_v3 = vld [vmem:[%s1385_s12 + $0x148] sm:$0xff]  ;;  %v664_v7 = vld [vmem:[%s1385_s12 + $0x50] sm:$0xff] }
 0x10a   : > { %847 = vst [vmem:[%s1413_s13 + $0x8] sm:$0xff] %v783_v8  ;;  %879 = vst [vmem:[%s1413_s13 + $0x108] sm:$0xff] %v815_v9  ;;  %v785_v14 = vmax.f32 %v721_v10, 0.0  ;;  %v817_v15 = vmax.f32 %v753_v11, 0.0  ;;  %v505_v16 = vpop.f32.mrb[4].mxu0  ;;  %v585_v18 = vpop.f32.mrb[4].mxu1 }
 0x10b   : > { %848 = vst [vmem:[%s1413_s13 + $0x10] sm:$0xff] %v784_v12  ;;  %880 = vst [vmem:[%s1413_s13 + $0x110] sm:$0xff] %v816_v13  ;;  %v506_v20 = vadd.f32 %v505_v16, %v1387_v38  ;;  %v586_v21 = vadd.f32 %v585_v18, %v1387_v38  ;;  %v507_v22 = vpop.f32.mrb[5].mxu0  ;;  %v587_v24 = vpop.f32.mrb[5].mxu1  ;;  %v696_v9 = vld [vmem:[%s1385_s12 + $0x150] sm:$0xff] }
 0x10c   : > { %849 = vst [vmem:[%s1413_s13 + $0x18] sm:$0xff] %v785_v14  ;;  %881 = vst [vmem:[%s1413_s13 + $0x118] sm:$0xff] %v817_v15  ;;  %v508_v26 = vadd.f32 %v507_v22, %v1390_v39  ;;  %v588_v27 = vadd.f32 %v587_v24, %v1390_v39  ;;  %v509_v28 = vpop.f32.mrb[6].mxu0  ;;  %v589_v30 = vpop.f32.mrb[6].mxu1  ;;  %v665_v15 = vld [vmem:[%s1385_s12 + $0x58] sm:$0xff] }
 0x10d   : > { %v722_v32 = vadd.f32 %v658_v17, %v506_v20  ;;  %v754_v33 = vadd.f32 %v690_v19, %v586_v21  ;;  %v510_v34 = vadd.f32 %v509_v28, %v1387_v38  ;;  %v590_v35 = vadd.f32 %v589_v30, %v1387_v38  ;;  %v511_v36 = vpop.f32.mrb[7].mxu0  ;;  %v591_v40 = vpop.f32.mrb[7].mxu1  ;;  %v697_v17 = vld [vmem:[%s1385_s12 + $0x158] sm:$0xff] }
 0x10e   : > { %v723_v42 = vadd.f32 %v659_v23, %v508_v26  ;;  %v755_v43 = vadd.f32 %v691_v25, %v588_v27  ;;  %v512_v44 = vadd.f32 %v511_v36, %v1390_v39  ;;  %v592_v45 = vadd.f32 %v591_v40, %v1390_v39 }
 0x10f   : > { %v786_v46 = vmax.f32 %v722_v32, 0.0  ;;  %v818_v47 = vmax.f32 %v754_v33, 0.0  ;;  %v724_v48 = vadd.f32 %v660_v29, %v510_v34  ;;  %v756_v49 = vadd.f32 %v692_v31, %v590_v35  ;;  %v666_v35 = vld [vmem:[%s1385_s12 + $0x60] sm:$0xff] }
 0x110   : > { %v787_v50 = vmax.f32 %v723_v42, 0.0  ;;  %v819_v51 = vmax.f32 %v755_v43, 0.0  ;;  %v725_v52 = vadd.f32 %v661_v37, %v512_v44  ;;  %v757_v53 = vadd.f32 %v693_v41, %v592_v45  ;;  %v698_v37 = vld [vmem:[%s1385_s12 + $0x160] sm:$0xff]  ;;  %v667_v43 = vld [vmem:[%s1385_s12 + $0x68] sm:$0xff] }
 0x111   : > { %850 = vst [vmem:[%s1413_s13 + $0x20] sm:$0xff] %v786_v46  ;;  %882 = vst [vmem:[%s1413_s13 + $0x120] sm:$0xff] %v818_v47  ;;  %v788_v54 = vmax.f32 %v724_v48, 0.0  ;;  %v820_v55 = vmax.f32 %v756_v49, 0.0  ;;  %v699_v45 = vld [vmem:[%s1385_s12 + $0x168] sm:$0xff]  ;;  %v668_v49 = vld [vmem:[%s1385_s12 + $0x70] sm:$0xff] }
 0x112   : > { %851 = vst [vmem:[%s1413_s13 + $0x28] sm:$0xff] %v787_v50  ;;  %883 = vst [vmem:[%s1413_s13 + $0x128] sm:$0xff] %v819_v51  ;;  %v789_v56 = vmax.f32 %v725_v52, 0.0  ;;  %v821_v57 = vmax.f32 %v757_v53, 0.0  ;;  %v515_v58 = vpop.f32.mrb[8].mxu0  ;;  %v595_v60 = vpop.f32.mrb[8].mxu1 }
 0x113   : > { %852 = vst [vmem:[%s1413_s13 + $0x30] sm:$0xff] %v788_v54  ;;  %884 = vst [vmem:[%s1413_s13 + $0x130] sm:$0xff] %v820_v55  ;;  %v516_v62 = vadd.f32 %v515_v58, %v1387_v38  ;;  %v596_v63 = vadd.f32 %v595_v60, %v1387_v38  ;;  %v517_v0 = vpop.f32.mrb[9].mxu0  ;;  %v597_v2 = vpop.f32.mrb[9].mxu1  ;;  %v700_v51 = vld [vmem:[%s1385_s12 + $0x170] sm:$0xff] }
 0x114   : > { %853 = vst [vmem:[%s1413_s13 + $0x38] sm:$0xff] %v789_v56  ;;  %885 = vst [vmem:[%s1413_s13 + $0x138] sm:$0xff] %v821_v57  ;;  %v518_v4 = vadd.f32 %v517_v0, %v1390_v39  ;;  %v598_v5 = vadd.f32 %v597_v2, %v1390_v39  ;;  %v519_v6 = vpop.f32.mrb[10].mxu0  ;;  %v599_v8 = vpop.f32.mrb[10].mxu1  ;;  %v669_v57 = vld [vmem:[%s1385_s12 + $0x78] sm:$0xff] }
 0x115   : > { %v726_v10 = vadd.f32 %v662_v59, %v516_v62  ;;  %v758_v11 = vadd.f32 %v694_v61, %v596_v63  ;;  %v520_v12 = vadd.f32 %v519_v6, %v1387_v38  ;;  %v600_v13 = vadd.f32 %v599_v8, %v1387_v38  ;;  %v521_v14 = vpop.f32.mrb[11].mxu0  ;;  %v601_v16 = vpop.f32.mrb[11].mxu1  ;;  %v701_v59 = vld [vmem:[%s1385_s12 + $0x178] sm:$0xff] }
 0x116   : > { %v727_v18 = vadd.f32 %v663_v1, %v518_v4  ;;  %v759_v19 = vadd.f32 %v695_v3, %v598_v5  ;;  %v522_v20 = vadd.f32 %v521_v14, %v1390_v39  ;;  %v602_v21 = vadd.f32 %v601_v16, %v1390_v39 }
 0x117   : > { %v790_v22 = vmax.f32 %v726_v10, 0.0  ;;  %v822_v23 = vmax.f32 %v758_v11, 0.0  ;;  %v728_v24 = vadd.f32 %v664_v7, %v520_v12  ;;  %v760_v25 = vadd.f32 %v696_v9, %v600_v13  ;;  %v670_v13 = vld [vmem:[%s1385_s12 + $0x80] sm:$0xff] }
 0x118   : > { %v791_v26 = vmax.f32 %v727_v18, 0.0  ;;  %v823_v27 = vmax.f32 %v759_v19, 0.0  ;;  %v729_v28 = vadd.f32 %v665_v15, %v522_v20  ;;  %v761_v29 = vadd.f32 %v697_v17, %v602_v21  ;;  %v702_v15 = vld [vmem:[%s1385_s12 + $0x180] sm:$0xff]  ;;  %v671_v19 = vld [vmem:[%s1385_s12 + $0x88] sm:$0xff] }
 0x119   : > { %854 = vst [vmem:[%s1413_s13 + $0x40] sm:$0xff] %v790_v22  ;;  %886 = vst [vmem:[%s1413_s13 + $0x140] sm:$0xff] %v822_v23  ;;  %v792_v30 = vmax.f32 %v728_v24, 0.0  ;;  %v824_v31 = vmax.f32 %v760_v25, 0.0  ;;  %v703_v21 = vld [vmem:[%s1385_s12 + $0x188] sm:$0xff]  ;;  %v672_v25 = vld [vmem:[%s1385_s12 + $0x90] sm:$0xff] }
 0x11a   : > { %855 = vst [vmem:[%s1413_s13 + $0x48] sm:$0xff] %v791_v26  ;;  %887 = vst [vmem:[%s1413_s13 + $0x148] sm:$0xff] %v823_v27  ;;  %v793_v32 = vmax.f32 %v729_v28, 0.0  ;;  %v825_v33 = vmax.f32 %v761_v29, 0.0  ;;  %v525_v34 = vpop.f32.mrb[12].mxu0  ;;  %v605_v36 = vpop.f32.mrb[12].mxu1 }
 0x11b   : > { %856 = vst [vmem:[%s1413_s13 + $0x50] sm:$0xff] %v792_v30  ;;  %888 = vst [vmem:[%s1413_s13 + $0x150] sm:$0xff] %v824_v31  ;;  %v526_v40 = vadd.f32 %v525_v34, %v1387_v38  ;;  %v606_v41 = vadd.f32 %v605_v36, %v1387_v38  ;;  %v527_v42 = vpop.f32.mrb[13].mxu0  ;;  %v607_v44 = vpop.f32.mrb[13].mxu1  ;;  %v704_v27 = vld [vmem:[%s1385_s12 + $0x190] sm:$0xff] }
 0x11c   : > { %857 = vst [vmem:[%s1413_s13 + $0x58] sm:$0xff] %v793_v32  ;;  %889 = vst [vmem:[%s1413_s13 + $0x158] sm:$0xff] %v825_v33  ;;  %v528_v46 = vadd.f32 %v527_v42, %v1390_v39  ;;  %v608_v47 = vadd.f32 %v607_v44, %v1390_v39  ;;  %v529_v48 = vpop.f32.mrb[14].mxu0  ;;  %v609_v50 = vpop.f32.mrb[14].mxu1  ;;  %v673_v33 = vld [vmem:[%s1385_s12 + $0x98] sm:$0xff] }
 0x11d   : > { %v730_v52 = vadd.f32 %v666_v35, %v526_v40  ;;  %v762_v53 = vadd.f32 %v698_v37, %v606_v41  ;;  %v530_v54 = vadd.f32 %v529_v48, %v1387_v38  ;;  %v610_v55 = vadd.f32 %v609_v50, %v1387_v38  ;;  %v531_v56 = vpop.f32.mrb[15].mxu0  ;;  %v611_v58 = vpop.f32.mrb[15].mxu1  ;;  %v705_v35 = vld [vmem:[%s1385_s12 + $0x198] sm:$0xff] }
 0x11e   : > { %v731_v60 = vadd.f32 %v667_v43, %v528_v46  ;;  %v763_v61 = vadd.f32 %v699_v45, %v608_v47  ;;  %v532_v62 = vadd.f32 %v531_v56, %v1390_v39  ;;  %v612_v63 = vadd.f32 %v611_v58, %v1390_v39 }
 0x11f   : > { %v794_v0 = vmax.f32 %v730_v52, 0.0  ;;  %v826_v1 = vmax.f32 %v762_v53, 0.0  ;;  %v732_v2 = vadd.f32 %v668_v49, %v530_v54  ;;  %v764_v3 = vadd.f32 %v700_v51, %v610_v55  ;;  %v674_v55 = vld [vmem:[%s1385_s12 + $0xa0] sm:$0xff] }
 0x120   : > { %v795_v4 = vmax.f32 %v731_v60, 0.0  ;;  %v827_v5 = vmax.f32 %v763_v61, 0.0  ;;  %v733_v6 = vadd.f32 %v669_v57, %v532_v62  ;;  %v765_v7 = vadd.f32 %v701_v59, %v612_v63  ;;  %v706_v57 = vld [vmem:[%s1385_s12 + $0x1a0] sm:$0xff]  ;;  %v675_v61 = vld [vmem:[%s1385_s12 + $0xa8] sm:$0xff] }
 0x121   : > { %858 = vst [vmem:[%s1413_s13 + $0x60] sm:$0xff] %v794_v0  ;;  %890 = vst [vmem:[%s1413_s13 + $0x160] sm:$0xff] %v826_v1  ;;  %v796_v8 = vmax.f32 %v732_v2, 0.0  ;;  %v828_v9 = vmax.f32 %v764_v3, 0.0  ;;  %v707_v63 = vld [vmem:[%s1385_s12 + $0x1a8] sm:$0xff]  ;;  %v676_v3 = vld [vmem:[%s1385_s12 + $0xb0] sm:$0xff] }
 0x122   : > { %859 = vst [vmem:[%s1413_s13 + $0x68] sm:$0xff] %v795_v4  ;;  %891 = vst [vmem:[%s1413_s13 + $0x168] sm:$0xff] %v827_v5  ;;  %v797_v10 = vmax.f32 %v733_v6, 0.0  ;;  %v829_v11 = vmax.f32 %v765_v7, 0.0  ;;  %v535_v12 = vpop.f32.mrb[16].mxu0  ;;  %v615_v14 = vpop.f32.mrb[16].mxu1 }
 0x123   : > { %860 = vst [vmem:[%s1413_s13 + $0x70] sm:$0xff] %v796_v8  ;;  %892 = vst [vmem:[%s1413_s13 + $0x170] sm:$0xff] %v828_v9  ;;  %v536_v16 = vadd.f32 %v535_v12, %v1387_v38  ;;  %v616_v17 = vadd.f32 %v615_v14, %v1387_v38  ;;  %v537_v18 = vpop.f32.mrb[17].mxu0  ;;  %v617_v20 = vpop.f32.mrb[17].mxu1  ;;  %v708_v5 = vld [vmem:[%s1385_s12 + $0x1b0] sm:$0xff] }
 0x124   : > { %861 = vst [vmem:[%s1413_s13 + $0x78] sm:$0xff] %v797_v10  ;;  %893 = vst [vmem:[%s1413_s13 + $0x178] sm:$0xff] %v829_v11  ;;  %v538_v22 = vadd.f32 %v537_v18, %v1390_v39  ;;  %v618_v23 = vadd.f32 %v617_v20, %v1390_v39  ;;  %v539_v24 = vpop.f32.mrb[18].mxu0  ;;  %v619_v26 = vpop.f32.mrb[18].mxu1  ;;  %v677_v11 = vld [vmem:[%s1385_s12 + $0xb8] sm:$0xff] }
 0x125   : > { %v734_v28 = vadd.f32 %v670_v13, %v536_v16  ;;  %v766_v29 = vadd.f32 %v702_v15, %v616_v17  ;;  %v540_v30 = vadd.f32 %v539_v24, %v1387_v38  ;;  %v620_v31 = vadd.f32 %v619_v26, %v1387_v38  ;;  %v541_v32 = vpop.f32.mrb[19].mxu0  ;;  %v621_v34 = vpop.f32.mrb[19].mxu1  ;;  %v709_v13 = vld [vmem:[%s1385_s12 + $0x1b8] sm:$0xff] }
 0x126   : > { %v735_v36 = vadd.f32 %v671_v19, %v538_v22  ;;  %v767_v37 = vadd.f32 %v703_v21, %v618_v23  ;;  %v542_v40 = vadd.f32 %v541_v32, %v1390_v39  ;;  %v622_v41 = vadd.f32 %v621_v34, %v1390_v39 }
 0x127   : > { %v798_v42 = vmax.f32 %v734_v28, 0.0  ;;  %v830_v43 = vmax.f32 %v766_v29, 0.0  ;;  %v736_v44 = vadd.f32 %v672_v25, %v540_v30  ;;  %v768_v45 = vadd.f32 %v704_v27, %v620_v31  ;;  %v678_v31 = vld [vmem:[%s1385_s12 + $0xc0] sm:$0xff] }
 0x128   : > { %v799_v46 = vmax.f32 %v735_v36, 0.0  ;;  %v831_v47 = vmax.f32 %v767_v37, 0.0  ;;  %v737_v48 = vadd.f32 %v673_v33, %v542_v40  ;;  %v769_v49 = vadd.f32 %v705_v35, %v622_v41  ;;  %v710_v33 = vld [vmem:[%s1385_s12 + $0x1c0] sm:$0xff]  ;;  %v679_v37 = vld [vmem:[%s1385_s12 + $0xc8] sm:$0xff] }
 0x129   : > { %862 = vst [vmem:[%s1413_s13 + $0x80] sm:$0xff] %v798_v42  ;;  %894 = vst [vmem:[%s1413_s13 + $0x180] sm:$0xff] %v830_v43  ;;  %v800_v50 = vmax.f32 %v736_v44, 0.0  ;;  %v832_v51 = vmax.f32 %v768_v45, 0.0  ;;  %v711_v41 = vld [vmem:[%s1385_s12 + $0x1c8] sm:$0xff]  ;;  %v680_v45 = vld [vmem:[%s1385_s12 + $0xd0] sm:$0xff] }
 0x12a   : > { %863 = vst [vmem:[%s1413_s13 + $0x88] sm:$0xff] %v799_v46  ;;  %895 = vst [vmem:[%s1413_s13 + $0x188] sm:$0xff] %v831_v47  ;;  %v801_v52 = vmax.f32 %v737_v48, 0.0  ;;  %v833_v53 = vmax.f32 %v769_v49, 0.0  ;;  %v545_v54 = vpop.f32.mrb[20].mxu0  ;;  %v625_v56 = vpop.f32.mrb[20].mxu1 }
 0x12b   : > { %864 = vst [vmem:[%s1413_s13 + $0x90] sm:$0xff] %v800_v50  ;;  %896 = vst [vmem:[%s1413_s13 + $0x190] sm:$0xff] %v832_v51  ;;  %v546_v58 = vadd.f32 %v545_v54, %v1387_v38  ;;  %v626_v59 = vadd.f32 %v625_v56, %v1387_v38  ;;  %v547_v60 = vpop.f32.mrb[21].mxu0  ;;  %v627_v62 = vpop.f32.mrb[21].mxu1  ;;  %v712_v47 = vld [vmem:[%s1385_s12 + $0x1d0] sm:$0xff] }
 0x12c   : > { %865 = vst [vmem:[%s1413_s13 + $0x98] sm:$0xff] %v801_v52  ;;  %897 = vst [vmem:[%s1413_s13 + $0x198] sm:$0xff] %v833_v53  ;;  %v548_v0 = vadd.f32 %v547_v60, %v1390_v39  ;;  %v628_v1 = vadd.f32 %v627_v62, %v1390_v39  ;;  %v549_v2 = vpop.f32.mrb[22].mxu0  ;;  %v629_v4 = vpop.f32.mrb[22].mxu1  ;;  %v681_v53 = vld [vmem:[%s1385_s12 + $0xd8] sm:$0xff] }
 0x12d   : > { %v738_v6 = vadd.f32 %v674_v55, %v546_v58  ;;  %v770_v7 = vadd.f32 %v706_v57, %v626_v59  ;;  %v550_v8 = vadd.f32 %v549_v2, %v1387_v38  ;;  %v630_v9 = vadd.f32 %v629_v4, %v1387_v38  ;;  %v551_v10 = vpop.f32.mrb[23].mxu0  ;;  %v631_v12 = vpop.f32.mrb[23].mxu1  ;;  %v713_v55 = vld [vmem:[%s1385_s12 + $0x1d8] sm:$0xff] }
 0x12e   : > { %v739_v14 = vadd.f32 %v675_v61, %v548_v0  ;;  %v771_v15 = vadd.f32 %v707_v63, %v628_v1  ;;  %v552_v16 = vadd.f32 %v551_v10, %v1390_v39  ;;  %v632_v17 = vadd.f32 %v631_v12, %v1390_v39 }
 0x12f   : > { %v802_v18 = vmax.f32 %v738_v6, 0.0  ;;  %v834_v19 = vmax.f32 %v770_v7, 0.0  ;;  %v740_v20 = vadd.f32 %v676_v3, %v550_v8  ;;  %v772_v21 = vadd.f32 %v708_v5, %v630_v9  ;;  %v682_v9 = vld [vmem:[%s1385_s12 + $0xe0] sm:$0xff] }
 0x130   : > { %v803_v22 = vmax.f32 %v739_v14, 0.0  ;;  %v835_v23 = vmax.f32 %v771_v15, 0.0  ;;  %v741_v24 = vadd.f32 %v677_v11, %v552_v16  ;;  %v773_v25 = vadd.f32 %v709_v13, %v632_v17  ;;  %v714_v11 = vld [vmem:[%s1385_s12 + $0x1e0] sm:$0xff]  ;;  %v683_v15 = vld [vmem:[%s1385_s12 + $0xe8] sm:$0xff] }
 0x131   : > { %866 = vst [vmem:[%s1413_s13 + $0xa0] sm:$0xff] %v802_v18  ;;  %898 = vst [vmem:[%s1413_s13 + $0x1a0] sm:$0xff] %v834_v19  ;;  %v804_v26 = vmax.f32 %v740_v20, 0.0  ;;  %v836_v27 = vmax.f32 %v772_v21, 0.0  ;;  %v715_v17 = vld [vmem:[%s1385_s12 + $0x1e8] sm:$0xff]  ;;  %v684_v21 = vld [vmem:[%s1385_s12 + $0xf0] sm:$0xff] }
 0x132   : > { %867 = vst [vmem:[%s1413_s13 + $0xa8] sm:$0xff] %v803_v22  ;;  %899 = vst [vmem:[%s1413_s13 + $0x1a8] sm:$0xff] %v835_v23  ;;  %v805_v28 = vmax.f32 %v741_v24, 0.0  ;;  %v837_v29 = vmax.f32 %v773_v25, 0.0  ;;  %v555_v30 = vpop.f32.mrb[24].mxu0  ;;  %v635_v32 = vpop.f32.mrb[24].mxu1 }
 0x133   : > { %868 = vst [vmem:[%s1413_s13 + $0xb0] sm:$0xff] %v804_v26  ;;  %900 = vst [vmem:[%s1413_s13 + $0x1b0] sm:$0xff] %v836_v27  ;;  %v556_v34 = vadd.f32 %v555_v30, %v1387_v38  ;;  %v636_v35 = vadd.f32 %v635_v32, %v1387_v38  ;;  %v557_v36 = vpop.f32.mrb[25].mxu0  ;;  %v637_v40 = vpop.f32.mrb[25].mxu1  ;;  %v716_v23 = vld [vmem:[%s1385_s12 + $0x1f0] sm:$0xff] }
 0x134   : > { %869 = vst [vmem:[%s1413_s13 + $0xb8] sm:$0xff] %v805_v28  ;;  %901 = vst [vmem:[%s1413_s13 + $0x1b8] sm:$0xff] %v837_v29  ;;  %v558_v42 = vadd.f32 %v557_v36, %v1390_v39  ;;  %v638_v43 = vadd.f32 %v637_v40, %v1390_v39  ;;  %v559_v44 = vpop.f32.mrb[26].mxu0  ;;  %v639_v46 = vpop.f32.mrb[26].mxu1  ;;  %v685_v29 = vld [vmem:[%s1385_s12 + $0xf8] sm:$0xff] }
 0x135   : > { %v742_v48 = vadd.f32 %v678_v31, %v556_v34  ;;  %v774_v49 = vadd.f32 %v710_v33, %v636_v35  ;;  %v560_v50 = vadd.f32 %v559_v44, %v1387_v38  ;;  %v640_v51 = vadd.f32 %v639_v46, %v1387_v38  ;;  %v561_v52 = vpop.f32.mrb[27].mxu0  ;;  %v641_v54 = vpop.f32.mrb[27].mxu1  ;;  %v717_v31 = vld [vmem:[%s1385_s12 + $0x1f8] sm:$0xff] }
 0x136   : > { %v743_v56 = vadd.f32 %v679_v37, %v558_v42  ;;  %v775_v57 = vadd.f32 %v711_v41, %v638_v43  ;;  %v562_v58 = vadd.f32 %v561_v52, %v1390_v39  ;;  %v642_v59 = vadd.f32 %v641_v54, %v1390_v39 }
 0x137   : > { %v806_v60 = vmax.f32 %v742_v48, 0.0  ;;  %v838_v61 = vmax.f32 %v774_v49, 0.0  ;;  %v744_v62 = vadd.f32 %v680_v45, %v560_v50  ;;  %v776_v63 = vadd.f32 %v712_v47, %v640_v51 }
 0x138   : > { %v807_v0 = vmax.f32 %v743_v56, 0.0  ;;  %v839_v1 = vmax.f32 %v775_v57, 0.0  ;;  %v745_v2 = vadd.f32 %v681_v53, %v562_v58  ;;  %v777_v3 = vadd.f32 %v713_v55, %v642_v59 }
 0x139   : > { %870 = vst [vmem:[%s1413_s13 + $0xc0] sm:$0xff] %v806_v60  ;;  %902 = vst [vmem:[%s1413_s13 + $0x1c0] sm:$0xff] %v838_v61  ;;  %v808_v4 = vmax.f32 %v744_v62, 0.0  ;;  %v840_v5 = vmax.f32 %v776_v63, 0.0 }
 0x13a   : > { %871 = vst [vmem:[%s1413_s13 + $0xc8] sm:$0xff] %v807_v0  ;;  %903 = vst [vmem:[%s1413_s13 + $0x1c8] sm:$0xff] %v839_v1  ;;  %v809_v6 = vmax.f32 %v745_v2, 0.0  ;;  %v841_v7 = vmax.f32 %v777_v3, 0.0  ;;  %v565_v8 = vpop.f32.mrb[28].mxu0  ;;  %v645_v10 = vpop.f32.mrb[28].mxu1 }
 0x13b   : > { %872 = vst [vmem:[%s1413_s13 + $0xd0] sm:$0xff] %v808_v4  ;;  %904 = vst [vmem:[%s1413_s13 + $0x1d0] sm:$0xff] %v840_v5  ;;  %v566_v12 = vadd.f32 %v565_v8, %v1387_v38  ;;  %v646_v13 = vadd.f32 %v645_v10, %v1387_v38  ;;  %v567_v14 = vpop.f32.mrb[29].mxu0  ;;  %v647_v16 = vpop.f32.mrb[29].mxu1 }
 0x13c   : > { %873 = vst [vmem:[%s1413_s13 + $0xd8] sm:$0xff] %v809_v6  ;;  %905 = vst [vmem:[%s1413_s13 + $0x1d8] sm:$0xff] %v841_v7  ;;  %v568_v18 = vadd.f32 %v567_v14, %v1390_v39  ;;  %v648_v19 = vadd.f32 %v647_v16, %v1390_v39  ;;  %v569_v20 = vpop.f32.mrb[30].mxu0  ;;  %v649_v22 = vpop.f32.mrb[30].mxu1 }
 0x13d   : > { %v746_v24 = vadd.f32 %v682_v9, %v566_v12  ;;  %v778_v25 = vadd.f32 %v714_v11, %v646_v13  ;;  %v570_v26 = vadd.f32 %v569_v20, %v1387_v38  ;;  %v650_v27 = vadd.f32 %v649_v22, %v1387_v38  ;;  %v571_v28 = vpop.f32.mrb[31].mxu0  ;;  %v651_v30 = vpop.f32.mrb[31].mxu1 }
 0x13e   : > { %v747_v32 = vadd.f32 %v683_v15, %v568_v18  ;;  %v779_v33 = vadd.f32 %v715_v17, %v648_v19  ;;  %v572_v34 = vadd.f32 %v571_v28, %v1390_v39  ;;  %v652_v35 = vadd.f32 %v651_v30, %v1390_v39 }
 0x13f   : > { %v810_v36 = vmax.f32 %v746_v24, 0.0  ;;  %v842_v37 = vmax.f32 %v778_v25, 0.0  ;;  %v748_v40 = vadd.f32 %v684_v21, %v570_v26  ;;  %v780_v38 = vadd.f32 %v716_v23, %v650_v27 }
 0x140   : > { %v811_v41 = vmax.f32 %v747_v32, 0.0  ;;  %v843_v42 = vmax.f32 %v779_v33, 0.0  ;;  %v749_v43 = vadd.f32 %v685_v29, %v572_v34  ;;  %v781_v44 = vadd.f32 %v717_v31, %v652_v35 }
 0x141   : > { %874 = vst [vmem:[%s1413_s13 + $0xe0] sm:$0xff] %v810_v36  ;;  %906 = vst [vmem:[%s1413_s13 + $0x1e0] sm:$0xff] %v842_v37  ;;  %v812_v39 = vmax.f32 %v748_v40, 0.0  ;;  %v844_v45 = vmax.f32 %v780_v38, 0.0 }
 0x142   : > { %875 = vst [vmem:[%s1413_s13 + $0xe8] sm:$0xff] %v811_v41  ;;  %907 = vst [vmem:[%s1413_s13 + $0x1e8] sm:$0xff] %v843_v42  ;;  %v813_v46 = vmax.f32 %v749_v43, 0.0  ;;  %v845_v47 = vmax.f32 %v781_v44, 0.0 }
 0x143   : > { %876 = vst [vmem:[%s1413_s13 + $0xf0] sm:$0xff] %v812_v39  ;;  %908 = vst [vmem:[%s1413_s13 + $0x1f0] sm:$0xff] %v844_v45 }
 0x144   : > { %877 = vst [vmem:[%s1413_s13 + $0xf8] sm:$0xff] %v813_v46  ;;  %909 = vst [vmem:[%s1413_s13 + $0x1f8] sm:$0xff] %v845_v47 }
 0x145   : > { %1161 = shalt.err (!%p1158_p3)
}
 0x146   : > { %s1162_s8 = scalar_lea.hbm %s1590_s23, 8192  ;;  %s1166_s11 = scalar_lea.hbm %s1647_s4, 16384 }
 0x147   : > { %p1163_p4 = scmp.ne.s32.totalorder %s1590_s23, %s1162_s8  ;;  %p1167_p9 = scmp.lt.u32.totalorder %s1590_s23, %s1647_s4 }
 0x148   : > { %p1168_p10 = scmp.lt.u32.totalorder %s1166_s11, %s1162_s8  ;;  %p1170_p12 = scmp.lt.u32.totalorder %s1162_s8, %s1590_s23 }
 0x149   : > { %p1164_p7 = pnand %p1163_p4, %p1279_p5 }
 0x14a   : > { %p1169_p11 = por %p1168_p10, %p1167_p9 }
 0x14b   : > { %p1165_p8 = pneg %p1164_p7 }
 0x14c   : > { %p1171_p13 = por %p1170_p12, %p1169_p11 }
 0x14e   : > { %p1172_p0 = pnand %p1171_p13, %p1165_p8 }
 0x150   : > { %1175 = shalt.err (!%p1172_p0)
}
 0x151   : > { %s1214_s29 = smov 256   ;;  %s1215_s13 = smov 16  }
 0x152   : > { %1066 = dma.vmem_to_hbm [thread:$0]  (%p1279_p5), %s1592_s20, 8192, %s1590_s23, %s1602_s27, %s1214_s29, %s1214_s29, %s1215_s13  }
 0x153 PF: > { %p1072_p1 = scmp.ge.s32.totalorder %s1210_s18, 2  ;;  %s940_s14 = sand.u32 1, %s1198_s15  }
 0x154   : > { %s941_s19 = scalar_lea.sflag [#allocation3], %s940_s14 }
 0x155   : > { %p1069_p2 = pnand %p1072_p1, %p1283_p6 }
 0x157   : > { %1193 = dma.done.wait (!%p1069_p2), %s941_s19, 8192  }
 0x158   : > { %1195 = vsyncadd (!%p1069_p2), %s941_s19, 4294959104  ;;  %p14_p3 = scmp.ge.s32.totalorder %s1266_s21, 4   ;;  %s1650_s15 = smov %s1202_s16 }
 0x159   : > { %s1651_s16 = smov %s1206_s17  ;;  %s1652_s17 = smov %s1277_s24 }
 0x15a   : > { %s1653_s18 = smov %s1266_s21  ;;  %16 = sbr.rel (!%p14_p3) target bundleno = 3 (0x3), region = 74 }
 0x161   :  { %946 = vsyncpa [#allocation3], 1 }
 0x162   :  { %948 = vsyncpa [#allocation3 + $0x1], 1 }

</bundles_post_ra>
